<compile_context>
chip_gen: v5e
topology: v5e:2x2
jax: 0.10.0
libtpu: 0.0.40
codegen_flags: <defaults>
</compile_context>

<pallas_src>
import jax
import jax.numpy as jnp
import numpy as np
from jax.experimental import pallas as pl
from jax.experimental.pallas import tpu as pltpu

KSIZE = 7
PAD = 3  # padding = 3 for kernel_size = 7 (matches the PyTorch module)


def _make_kernel(H, W, C):
    HW = H * W

    def kernel(w_ref, x_ref, o_ref):
        # w_ref : SMEM (2*7*7,) f32 -- conv weights flattened as [in_ch, kh, kw]
        # x_ref : VMEM (NB, C, HW)  -- NB batch elements, spatial dims flattened
        # o_ref : VMEM (NB, 1, HW)
        NB = x_ref.shape[0]

        # ---- fused channel mean + max: single pass over C ------------------
        p0 = x_ref[:, 0, :].astype(jnp.float32)            # (NB, HW)
        ch_sum, ch_max = p0, p0
        for c in range(1, C):                              # small static C
            p = x_ref[:, c, :].astype(jnp.float32)
            ch_sum = ch_sum + p
            ch_max = jnp.maximum(ch_max, p)
        feats = (ch_sum * (1.0 / C), ch_max)               # cat([avg, max])

        # ---- hoisted edge masks on the flattened spatial axis ---------------
        lin = jax.lax.broadcasted_iota(jnp.int32, (1, HW), 1)
        if (W & (W - 1)) == 0:
            col = jnp.bitwise_and(lin, W - 1)              # lin % W (pow2 W)
        else:
            col = lin % W

        row_mask, col_mask = [], []
        for kh in range(KSIZE):
            dy = kh - PAD
            if dy > 0:
                row_mask.append(lin < (H - dy) * W)        # row < H - dy
            elif dy < 0:
                row_mask.append(lin >= (-dy) * W)          # row >= -dy
            else:
                row_mask.append(None)
        for kw in range(KSIZE):
            dx = kw - PAD
            if dx > 0:
                col_mask.append(col < (W - dx))
            elif dx < 0:
                col_mask.append(col >= (-dx))
            else:
                col_mask.append(None)

        # ---- 7x7 conv (2 -> 1 channels): rolls + masks, f32 accumulation ---
        acc = jnp.zeros((NB, HW), jnp.float32)
        for ci, feat in enumerate(feats):
            for kh in range(KSIZE):
                dy = kh - PAD
                slab = feat
                if dy != 0:                                # row shift, reused for all kw
                    slab = pltpu.roll(slab, shift=(-dy * W) % HW, axis=1)
                if row_mask[kh] is not None:
                    slab = jnp.where(row_mask[kh], slab, 0.0)
                for kw in range(KSIZE):
                    dx = kw - PAD
                    tap = slab
                    if dx != 0:                            # column shift
                        tap = pltpu.roll(tap, shift=(-dx) % HW, axis=1)
                    if col_mask[kw] is not None:
                        tap = jnp.where(col_mask[kw], tap, 0.0)
                    wv = w_ref[ci * KSIZE * KSIZE + kh * KSIZE + kw]
                    acc = acc + tap * wv

        o_ref[:, 0, :] = jax.nn.sigmoid(acc).astype(o_ref.dtype)

    return kernel


def spatial_attention(x, w):
    """x: (N, C, H, W); w: (1, 2, KSIZE, KSIZE) conv weights (OIHW, no bias)."""
    N, C, H, W = x.shape
    HW = H * W

    x_flat = x.reshape(N, C, HW)                 # lane-dense last dim for the kernel
    w_flat = w.reshape(-1).astype(jnp.float32)   # (2*7*7,) laid out [in, kh, kw]

    # Batch elements per grid step: as many as fit a modest VMEM budget
    # (double-buffered input + output), so tiny problems run in one grid step.
    budget = 8 * 1024 * 1024
    per_elem = (C + 1) * HW * x.dtype.itemsize * 2
    nb = 1
    for cand in range(N, 0, -1):
        if N % cand == 0 and cand * per_elem <= budget:
            nb = cand
            break
    grid = (N // nb,)
    # TODO(synk): for very large C*H*W add H-strip tiling with a PAD-row halo so a
    # single batch element never has to be fully resident in VMEM (v7x/v5e limits).

    cost = pl.CostEstimate(
        flops=N * HW * (2 * C + 4 * 2 * KSIZE * KSIZE),
        transcendentals=N * HW,
        bytes_accessed=(N * C * HW + N * HW) * x.dtype.itemsize + w_flat.size * 4,
    )

    out = pl.pallas_call(
        _make_kernel(H, W, C),
        out_shape=jax.ShapeDtypeStruct((N, 1, HW), x.dtype),
        grid_spec=pltpu.PrefetchScalarGridSpec(
            num_scalar_prefetch=0,
            grid=grid,
            in_specs=[
                pl.BlockSpec(memory_space=pltpu.MemorySpace.SMEM),     # weights
                pl.BlockSpec((nb, C, HW), lambda b: (b, 0, 0)),        # x block
            ],
            out_specs=pl.BlockSpec((nb, 1, HW), lambda b: (b, 0, 0)),
        ),
        compiler_params=pltpu.CompilerParams(
            dimension_semantics=("parallel",),
        ),
        cost_estimate=cost,
    )(w_flat, x_flat)

    return out.reshape(N, 1, H, W)


def reference(x, w):
    """Pure-JAX reference mirroring the PyTorch forward pass."""
    avg = jnp.mean(x, axis=1, keepdims=True)
    mx = jnp.max(x, axis=1, keepdims=True)
    feat = jnp.concatenate([avg, mx], axis=1)
    y = jax.lax.conv_general_dilated(
        feat, w, window_strides=(1, 1),
        padding=((PAD, PAD), (PAD, PAD)),
        dimension_numbers=("NCHW", "OIHW", "NCHW"),
    )
    return jax.nn.sigmoid(y)


if __name__ == "__main__":
    key = jax.random.PRNGKey(0)
    kx, kw = jax.random.split(key)

    # Small shapes consistent with the module: batch=2, channels=4, spatial=16.
    x = jax.random.normal(kx, (2, 4, 16, 16), dtype=jnp.float32)
    # Deterministic synthetic conv1 weights: shape (out=1, in=2, 7, 7), no bias.
    w = jax.random.normal(kw, (1, 2, KSIZE, KSIZE), dtype=jnp.float32) * 0.1

    out = spatial_attention(x, w)
    out = jax.block_until_ready(out)

    assert out.shape == (2, 1, 16, 16)
    ref = reference(x, w)
    np.testing.assert_allclose(np.asarray(out), np.asarray(ref),
                               rtol=1e-5, atol=1e-5)

    print("KERNEL_OK")
</pallas_src>

<mosaic_0001>
module attributes {stable_mosaic.version = 11 : i64} {
  func.func @kernel(%arg0: i32, %arg1: memref<98xf32, #tpu.memory_space<smem>>, %arg2: memref<2x4x256xf32, #tpu.memory_space<vmem>>, %arg3: memref<2x1x256xf32, #tpu.memory_space<vmem>>) attributes {dimension_semantics = [#tpu.dimension_semantics<parallel>], iteration_bounds = array<i64: 1>, scalar_prefetch = 0 : i64, scratch_operands = 0 : i64, tpu.core_type = #tpu.core_type<tc>, window_params = [{transform_indices = @transform_0, window_bounds = array<i64: 98>}, {transform_indices = @transform_1, window_bounds = array<i64: 2, 4, 256>}, {transform_indices = @transform_2, window_bounds = array<i64: 2, 1, 256>}]} {
    %c0 = arith.constant 0 : index
    %c0_0 = arith.constant 0 : index
    %c0_1 = arith.constant 0 : index
    %0 = vector.load %arg2[%c0, %c0_0, %c0_1] : memref<2x4x256xf32, #tpu.memory_space<vmem>>, vector<2x1x256xf32>
    %1 = vector.shape_cast %0 : vector<2x1x256xf32> to vector<2x256xf32>
    %c0_2 = arith.constant 0 : index
    %c1 = arith.constant 1 : index
    %c0_3 = arith.constant 0 : index
    %2 = vector.load %arg2[%c0_2, %c1, %c0_3] : memref<2x4x256xf32, #tpu.memory_space<vmem>>, vector<2x1x256xf32>
    %3 = vector.shape_cast %2 : vector<2x1x256xf32> to vector<2x256xf32>
    %4 = arith.addf %1, %3 : vector<2x256xf32>
    %5 = arith.maximumf %1, %3 : vector<2x256xf32>
    %c0_4 = arith.constant 0 : index
    %c2 = arith.constant 2 : index
    %c0_5 = arith.constant 0 : index
    %6 = vector.load %arg2[%c0_4, %c2, %c0_5] : memref<2x4x256xf32, #tpu.memory_space<vmem>>, vector<2x1x256xf32>
    %7 = vector.shape_cast %6 : vector<2x1x256xf32> to vector<2x256xf32>
    %8 = arith.addf %4, %7 : vector<2x256xf32>
    %9 = arith.maximumf %5, %7 : vector<2x256xf32>
    %c0_6 = arith.constant 0 : index
    %c3 = arith.constant 3 : index
    %c0_7 = arith.constant 0 : index
    %10 = vector.load %arg2[%c0_6, %c3, %c0_7] : memref<2x4x256xf32, #tpu.memory_space<vmem>>, vector<2x1x256xf32>
    %11 = vector.shape_cast %10 : vector<2x1x256xf32> to vector<2x256xf32>
    %12 = arith.addf %8, %11 : vector<2x256xf32>
    %13 = arith.maximumf %9, %11 : vector<2x256xf32>
    %cst = arith.constant 2.500000e-01 : f32
    %14 = vector.broadcast %cst : f32 to vector<2x256xf32>
    %15 = arith.mulf %12, %14 : vector<2x256xf32>
    %16 = tpu.iota {dimensions = array<i32: 1>} : vector<1x256xi32>
    %c15_i32 = arith.constant 15 : i32
    %17 = vector.broadcast %c15_i32 : i32 to vector<1x256xi32>
    %18 = arith.andi %16, %17 : vector<1x256xi32>
    %c48_i32 = arith.constant 48 : i32
    %19 = vector.broadcast %c48_i32 : i32 to vector<1x256xi32>
    %20 = arith.cmpi sge, %16, %19 : vector<1x256xi32>
    %c32_i32 = arith.constant 32 : i32
    %21 = vector.broadcast %c32_i32 : i32 to vector<1x256xi32>
    %22 = arith.cmpi sge, %16, %21 : vector<1x256xi32>
    %c16_i32 = arith.constant 16 : i32
    %23 = vector.broadcast %c16_i32 : i32 to vector<1x256xi32>
    %24 = arith.cmpi sge, %16, %23 : vector<1x256xi32>
    %c240_i32 = arith.constant 240 : i32
    %25 = vector.broadcast %c240_i32 : i32 to vector<1x256xi32>
    %26 = arith.cmpi slt, %16, %25 : vector<1x256xi32>
    %c224_i32 = arith.constant 224 : i32
    %27 = vector.broadcast %c224_i32 : i32 to vector<1x256xi32>
    %28 = arith.cmpi slt, %16, %27 : vector<1x256xi32>
    %c208_i32 = arith.constant 208 : i32
    %29 = vector.broadcast %c208_i32 : i32 to vector<1x256xi32>
    %30 = arith.cmpi slt, %16, %29 : vector<1x256xi32>
    %c3_i32 = arith.constant 3 : i32
    %31 = vector.broadcast %c3_i32 : i32 to vector<1x256xi32>
    %32 = arith.cmpi sge, %18, %31 : vector<1x256xi32>
    %c2_i32 = arith.constant 2 : i32
    %33 = vector.broadcast %c2_i32 : i32 to vector<1x256xi32>
    %34 = arith.cmpi sge, %18, %33 : vector<1x256xi32>
    %c1_i32 = arith.constant 1 : i32
    %35 = vector.broadcast %c1_i32 : i32 to vector<1x256xi32>
    %36 = arith.cmpi sge, %18, %35 : vector<1x256xi32>
    %c15_i32_8 = arith.constant 15 : i32
    %37 = vector.broadcast %c15_i32_8 : i32 to vector<1x256xi32>
    %38 = arith.cmpi slt, %18, %37 : vector<1x256xi32>
    %c14_i32 = arith.constant 14 : i32
    %39 = vector.broadcast %c14_i32 : i32 to vector<1x256xi32>
    %40 = arith.cmpi slt, %18, %39 : vector<1x256xi32>
    %c13_i32 = arith.constant 13 : i32
    %41 = vector.broadcast %c13_i32 : i32 to vector<1x256xi32>
    %42 = arith.cmpi slt, %18, %41 : vector<1x256xi32>
    %cst_9 = arith.constant 0.000000e+00 : f32
    %43 = vector.broadcast %cst_9 : f32 to vector<2x256xf32>
    %c48_i32_10 = arith.constant 48 : i32
    %44 = tpu.dynamic_rotate %15 by %c48_i32_10 dim 1 : vector<2x256xf32>, i32 -> vector<2x256xf32>
    %cst_11 = arith.constant 0.000000e+00 : f32
    %45 = vector.shape_cast %20 : vector<1x256xi1> to vector<1x256xi1>
    %46 = vector.broadcast %45 : vector<1x256xi1> to vector<2x256xi1>
    %47 = vector.broadcast %cst_11 : f32 to vector<2x256xf32>
    %48 = arith.select %46, %44, %47 : vector<2x256xi1>, vector<2x256xf32>
    %c3_i32_12 = arith.constant 3 : i32
    %49 = tpu.dynamic_rotate %48 by %c3_i32_12 dim 1 : vector<2x256xf32>, i32 -> vector<2x256xf32>
    %cst_13 = arith.constant 0.000000e+00 : f32
    %50 = vector.shape_cast %32 : vector<1x256xi1> to vector<1x256xi1>
    %51 = vector.broadcast %50 : vector<1x256xi1> to vector<2x256xi1>
    %52 = vector.broadcast %cst_13 : f32 to vector<2x256xf32>
    %53 = arith.select %51, %49, %52 : vector<2x256xi1>, vector<2x256xf32>
    %c0_14 = arith.constant 0 : index
    %54 = memref.load %arg1[%c0_14] : memref<98xf32, #tpu.memory_space<smem>>
    %55 = vector.broadcast %54 : f32 to vector<2x256xf32>
    %56 = arith.mulf %53, %55 : vector<2x256xf32>
    %57 = arith.addf %43, %56 : vector<2x256xf32>
    %c2_i32_15 = arith.constant 2 : i32
    %58 = tpu.dynamic_rotate %48 by %c2_i32_15 dim 1 : vector<2x256xf32>, i32 -> vector<2x256xf32>
    %cst_16 = arith.constant 0.000000e+00 : f32
    %59 = vector.shape_cast %34 : vector<1x256xi1> to vector<1x256xi1>
    %60 = vector.broadcast %59 : vector<1x256xi1> to vector<2x256xi1>
    %61 = vector.broadcast %cst_16 : f32 to vector<2x256xf32>
    %62 = arith.select %60, %58, %61 : vector<2x256xi1>, vector<2x256xf32>
    %c1_17 = arith.constant 1 : index
    %63 = memref.load %arg1[%c1_17] : memref<98xf32, #tpu.memory_space<smem>>
    %64 = vector.broadcast %63 : f32 to vector<2x256xf32>
    %65 = arith.mulf %62, %64 : vector<2x256xf32>
    %66 = arith.addf %57, %65 : vector<2x256xf32>
    %c1_i32_18 = arith.constant 1 : i32
    %67 = tpu.dynamic_rotate %48 by %c1_i32_18 dim 1 : vector<2x256xf32>, i32 -> vector<2x256xf32>
    %cst_19 = arith.constant 0.000000e+00 : f32
    %68 = vector.shape_cast %36 : vector<1x256xi1> to vector<1x256xi1>
    %69 = vector.broadcast %68 : vector<1x256xi1> to vector<2x256xi1>
    %70 = vector.broadcast %cst_19 : f32 to vector<2x256xf32>
    %71 = arith.select %69, %67, %70 : vector<2x256xi1>, vector<2x256xf32>
    %c2_20 = arith.constant 2 : index
    %72 = memref.load %arg1[%c2_20] : memref<98xf32, #tpu.memory_space<smem>>
    %73 = vector.broadcast %72 : f32 to vector<2x256xf32>
    %74 = arith.mulf %71, %73 : vector<2x256xf32>
    %75 = arith.addf %66, %74 : vector<2x256xf32>
    %c3_21 = arith.constant 3 : index
    %76 = memref.load %arg1[%c3_21] : memref<98xf32, #tpu.memory_space<smem>>
    %77 = vector.broadcast %76 : f32 to vector<2x256xf32>
    %78 = arith.mulf %48, %77 : vector<2x256xf32>
    %79 = arith.addf %75, %78 : vector<2x256xf32>
    %c255_i32 = arith.constant 255 : i32
    %80 = tpu.dynamic_rotate %48 by %c255_i32 dim 1 : vector<2x256xf32>, i32 -> vector<2x256xf32>
    %cst_22 = arith.constant 0.000000e+00 : f32
    %81 = vector.shape_cast %38 : vector<1x256xi1> to vector<1x256xi1>
    %82 = vector.broadcast %81 : vector<1x256xi1> to vector<2x256xi1>
    %83 = vector.broadcast %cst_22 : f32 to vector<2x256xf32>
    %84 = arith.select %82, %80, %83 : vector<2x256xi1>, vector<2x256xf32>
    %c4 = arith.constant 4 : index
    %85 = memref.load %arg1[%c4] : memref<98xf32, #tpu.memory_space<smem>>
    %86 = vector.broadcast %85 : f32 to vector<2x256xf32>
    %87 = arith.mulf %84, %86 : vector<2x256xf32>
    %88 = arith.addf %79, %87 : vector<2x256xf32>
    %c254_i32 = arith.constant 254 : i32
    %89 = tpu.dynamic_rotate %48 by %c254_i32 dim 1 : vector<2x256xf32>, i32 -> vector<2x256xf32>
    %cst_23 = arith.constant 0.000000e+00 : f32
    %90 = vector.shape_cast %40 : vector<1x256xi1> to vector<1x256xi1>
    %91 = vector.broadcast %90 : vector<1x256xi1> to vector<2x256xi1>
    %92 = vector.broadcast %cst_23 : f32 to vector<2x256xf32>
    %93 = arith.select %91, %89, %92 : vector<2x256xi1>, vector<2x256xf32>
    %c5 = arith.constant 5 : index
    %94 = memref.load %arg1[%c5] : memref<98xf32, #tpu.memory_space<smem>>
    %95 = vector.broadcast %94 : f32 to vector<2x256xf32>
    %96 = arith.mulf %93, %95 : vector<2x256xf32>
    %97 = arith.addf %88, %96 : vector<2x256xf32>
    %c253_i32 = arith.constant 253 : i32
    %98 = tpu.dynamic_rotate %48 by %c253_i32 dim 1 : vector<2x256xf32>, i32 -> vector<2x256xf32>
    %cst_24 = arith.constant 0.000000e+00 : f32
    %99 = vector.shape_cast %42 : vector<1x256xi1> to vector<1x256xi1>
    %100 = vector.broadcast %99 : vector<1x256xi1> to vector<2x256xi1>
    %101 = vector.broadcast %cst_24 : f32 to vector<2x256xf32>
    %102 = arith.select %100, %98, %101 : vector<2x256xi1>, vector<2x256xf32>
    %c6 = arith.constant 6 : index
    %103 = memref.load %arg1[%c6] : memref<98xf32, #tpu.memory_space<smem>>
    %104 = vector.broadcast %103 : f32 to vector<2x256xf32>
    %105 = arith.mulf %102, %104 : vector<2x256xf32>
    %106 = arith.addf %97, %105 : vector<2x256xf32>
    %c32_i32_25 = arith.constant 32 : i32
    %107 = tpu.dynamic_rotate %15 by %c32_i32_25 dim 1 : vector<2x256xf32>, i32 -> vector<2x256xf32>
    %cst_26 = arith.constant 0.000000e+00 : f32
    %108 = vector.shape_cast %22 : vector<1x256xi1> to vector<1x256xi1>
    %109 = vector.broadcast %108 : vector<1x256xi1> to vector<2x256xi1>
    %110 = vector.broadcast %cst_26 : f32 to vector<2x256xf32>
    %111 = arith.select %109, %107, %110 : vector<2x256xi1>, vector<2x256xf32>
    %c3_i32_27 = arith.constant 3 : i32
    %112 = tpu.dynamic_rotate %111 by %c3_i32_27 dim 1 : vector<2x256xf32>, i32 -> vector<2x256xf32>
    %cst_28 = arith.constant 0.000000e+00 : f32
    %113 = vector.shape_cast %32 : vector<1x256xi1> to vector<1x256xi1>
    %114 = vector.broadcast %113 : vector<1x256xi1> to vector<2x256xi1>
    %115 = vector.broadcast %cst_28 : f32 to vector<2x256xf32>
    %116 = arith.select %114, %112, %115 : vector<2x256xi1>, vector<2x256xf32>
    %c7 = arith.constant 7 : index
    %117 = memref.load %arg1[%c7] : memref<98xf32, #tpu.memory_space<smem>>
    %118 = vector.broadcast %117 : f32 to vector<2x256xf32>
    %119 = arith.mulf %116, %118 : vector<2x256xf32>
    %120 = arith.addf %106, %119 : vector<2x256xf32>
    %c2_i32_29 = arith.constant 2 : i32
    %121 = tpu.dynamic_rotate %111 by %c2_i32_29 dim 1 : vector<2x256xf32>, i32 -> vector<2x256xf32>
    %cst_30 = arith.constant 0.000000e+00 : f32
    %122 = vector.shape_cast %34 : vector<1x256xi1> to vector<1x256xi1>
    %123 = vector.broadcast %122 : vector<1x256xi1> to vector<2x256xi1>
    %124 = vector.broadcast %cst_30 : f32 to vector<2x256xf32>
    %125 = arith.select %123, %121, %124 : vector<2x256xi1>, vector<2x256xf32>
    %c8 = arith.constant 8 : index
    %126 = memref.load %arg1[%c8] : memref<98xf32, #tpu.memory_space<smem>>
    %127 = vector.broadcast %126 : f32 to vector<2x256xf32>
    %128 = arith.mulf %125, %127 : vector<2x256xf32>
    %129 = arith.addf %120, %128 : vector<2x256xf32>
    %c1_i32_31 = arith.constant 1 : i32
    %130 = tpu.dynamic_rotate %111 by %c1_i32_31 dim 1 : vector<2x256xf32>, i32 -> vector<2x256xf32>
    %cst_32 = arith.constant 0.000000e+00 : f32
    %131 = vector.shape_cast %36 : vector<1x256xi1> to vector<1x256xi1>
    %132 = vector.broadcast %131 : vector<1x256xi1> to vector<2x256xi1>
    %133 = vector.broadcast %cst_32 : f32 to vector<2x256xf32>
    %134 = arith.select %132, %130, %133 : vector<2x256xi1>, vector<2x256xf32>
    %c9 = arith.constant 9 : index
    %135 = memref.load %arg1[%c9] : memref<98xf32, #tpu.memory_space<smem>>
    %136 = vector.broadcast %135 : f32 to vector<2x256xf32>
    %137 = arith.mulf %134, %136 : vector<2x256xf32>
    %138 = arith.addf %129, %137 : vector<2x256xf32>
    %c10 = arith.constant 10 : index
    %139 = memref.load %arg1[%c10] : memref<98xf32, #tpu.memory_space<smem>>
    %140 = vector.broadcast %139 : f32 to vector<2x256xf32>
    %141 = arith.mulf %111, %140 : vector<2x256xf32>
    %142 = arith.addf %138, %141 : vector<2x256xf32>
    %c255_i32_33 = arith.constant 255 : i32
    %143 = tpu.dynamic_rotate %111 by %c255_i32_33 dim 1 : vector<2x256xf32>, i32 -> vector<2x256xf32>
    %cst_34 = arith.constant 0.000000e+00 : f32
    %144 = vector.shape_cast %38 : vector<1x256xi1> to vector<1x256xi1>
    %145 = vector.broadcast %144 : vector<1x256xi1> to vector<2x256xi1>
    %146 = vector.broadcast %cst_34 : f32 to vector<2x256xf32>
    %147 = arith.select %145, %143, %146 : vector<2x256xi1>, vector<2x256xf32>
    %c11 = arith.constant 11 : index
    %148 = memref.load %arg1[%c11] : memref<98xf32, #tpu.memory_space<smem>>
    %149 = vector.broadcast %148 : f32 to vector<2x256xf32>
    %150 = arith.mulf %147, %149 : vector<2x256xf32>
    %151 = arith.addf %142, %150 : vector<2x256xf32>
    %c254_i32_35 = arith.constant 254 : i32
    %152 = tpu.dynamic_rotate %111 by %c254_i32_35 dim 1 : vector<2x256xf32>, i32 -> vector<2x256xf32>
    %cst_36 = arith.constant 0.000000e+00 : f32
    %153 = vector.shape_cast %40 : vector<1x256xi1> to vector<1x256xi1>
    %154 = vector.broadcast %153 : vector<1x256xi1> to vector<2x256xi1>
    %155 = vector.broadcast %cst_36 : f32 to vector<2x256xf32>
    %156 = arith.select %154, %152, %155 : vector<2x256xi1>, vector<2x256xf32>
    %c12 = arith.constant 12 : index
    %157 = memref.load %arg1[%c12] : memref<98xf32, #tpu.memory_space<smem>>
    %158 = vector.broadcast %157 : f32 to vector<2x256xf32>
    %159 = arith.mulf %156, %158 : vector<2x256xf32>
    %160 = arith.addf %151, %159 : vector<2x256xf32>
    %c253_i32_37 = arith.constant 253 : i32
    %161 = tpu.dynamic_rotate %111 by %c253_i32_37 dim 1 : vector<2x256xf32>, i32 -> vector<2x256xf32>
    %cst_38 = arith.constant 0.000000e+00 : f32
    %162 = vector.shape_cast %42 : vector<1x256xi1> to vector<1x256xi1>
    %163 = vector.broadcast %162 : vector<1x256xi1> to vector<2x256xi1>
    %164 = vector.broadcast %cst_38 : f32 to vector<2x256xf32>
    %165 = arith.select %163, %161, %164 : vector<2x256xi1>, vector<2x256xf32>
    %c13 = arith.constant 13 : index
    %166 = memref.load %arg1[%c13] : memref<98xf32, #tpu.memory_space<smem>>
    %167 = vector.broadcast %166 : f32 to vector<2x256xf32>
    %168 = arith.mulf %165, %167 : vector<2x256xf32>
    %169 = arith.addf %160, %168 : vector<2x256xf32>
    %c16_i32_39 = arith.constant 16 : i32
    %170 = tpu.dynamic_rotate %15 by %c16_i32_39 dim 1 : vector<2x256xf32>, i32 -> vector<2x256xf32>
    %cst_40 = arith.constant 0.000000e+00 : f32
    %171 = vector.shape_cast %24 : vector<1x256xi1> to vector<1x256xi1>
    %172 = vector.broadcast %171 : vector<1x256xi1> to vector<2x256xi1>
    %173 = vector.broadcast %cst_40 : f32 to vector<2x256xf32>
    %174 = arith.select %172, %170, %173 : vector<2x256xi1>, vector<2x256xf32>
    %c3_i32_41 = arith.constant 3 : i32
    %175 = tpu.dynamic_rotate %174 by %c3_i32_41 dim 1 : vector<2x256xf32>, i32 -> vector<2x256xf32>
    %cst_42 = arith.constant 0.000000e+00 : f32
    %176 = vector.shape_cast %32 : vector<1x256xi1> to vector<1x256xi1>
    %177 = vector.broadcast %176 : vector<1x256xi1> to vector<2x256xi1>
    %178 = vector.broadcast %cst_42 : f32 to vector<2x256xf32>
    %179 = arith.select %177, %175, %178 : vector<2x256xi1>, vector<2x256xf32>
    %c14 = arith.constant 14 : index
    %180 = memref.load %arg1[%c14] : memref<98xf32, #tpu.memory_space<smem>>
    %181 = vector.broadcast %180 : f32 to vector<2x256xf32>
    %182 = arith.mulf %179, %181 : vector<2x256xf32>
    %183 = arith.addf %169, %182 : vector<2x256xf32>
    %c2_i32_43 = arith.constant 2 : i32
    %184 = tpu.dynamic_rotate %174 by %c2_i32_43 dim 1 : vector<2x256xf32>, i32 -> vector<2x256xf32>
    %cst_44 = arith.constant 0.000000e+00 : f32
    %185 = vector.shape_cast %34 : vector<1x256xi1> to vector<1x256xi1>
    %186 = vector.broadcast %185 : vector<1x256xi1> to vector<2x256xi1>
    %187 = vector.broadcast %cst_44 : f32 to vector<2x256xf32>
    %188 = arith.select %186, %184, %187 : vector<2x256xi1>, vector<2x256xf32>
    %c15 = arith.constant 15 : index
    %189 = memref.load %arg1[%c15] : memref<98xf32, #tpu.memory_space<smem>>
    %190 = vector.broadcast %189 : f32 to vector<2x256xf32>
    %191 = arith.mulf %188, %190 : vector<2x256xf32>
    %192 = arith.addf %183, %191 : vector<2x256xf32>
    %c1_i32_45 = arith.constant 1 : i32
    %193 = tpu.dynamic_rotate %174 by %c1_i32_45 dim 1 : vector<2x256xf32>, i32 -> vector<2x256xf32>
    %cst_46 = arith.constant 0.000000e+00 : f32
    %194 = vector.shape_cast %36 : vector<1x256xi1> to vector<1x256xi1>
    %195 = vector.broadcast %194 : vector<1x256xi1> to vector<2x256xi1>
    %196 = vector.broadcast %cst_46 : f32 to vector<2x256xf32>
    %197 = arith.select %195, %193, %196 : vector<2x256xi1>, vector<2x256xf32>
    %c16 = arith.constant 16 : index
    %198 = memref.load %arg1[%c16] : memref<98xf32, #tpu.memory_space<smem>>
    %199 = vector.broadcast %198 : f32 to vector<2x256xf32>
    %200 = arith.mulf %197, %199 : vector<2x256xf32>
    %201 = arith.addf %192, %200 : vector<2x256xf32>
    %c17 = arith.constant 17 : index
    %202 = memref.load %arg1[%c17] : memref<98xf32, #tpu.memory_space<smem>>
    %203 = vector.broadcast %202 : f32 to vector<2x256xf32>
    %204 = arith.mulf %174, %203 : vector<2x256xf32>
    %205 = arith.addf %201, %204 : vector<2x256xf32>
    %c255_i32_47 = arith.constant 255 : i32
    %206 = tpu.dynamic_rotate %174 by %c255_i32_47 dim 1 : vector<2x256xf32>, i32 -> vector<2x256xf32>
    %cst_48 = arith.constant 0.000000e+00 : f32
    %207 = vector.shape_cast %38 : vector<1x256xi1> to vector<1x256xi1>
    %208 = vector.broadcast %207 : vector<1x256xi1> to vector<2x256xi1>
    %209 = vector.broadcast %cst_48 : f32 to vector<2x256xf32>
    %210 = arith.select %208, %206, %209 : vector<2x256xi1>, vector<2x256xf32>
    %c18 = arith.constant 18 : index
    %211 = memref.load %arg1[%c18] : memref<98xf32, #tpu.memory_space<smem>>
    %212 = vector.broadcast %211 : f32 to vector<2x256xf32>
    %213 = arith.mulf %210, %212 : vector<2x256xf32>
    %214 = arith.addf %205, %213 : vector<2x256xf32>
    %c254_i32_49 = arith.constant 254 : i32
    %215 = tpu.dynamic_rotate %174 by %c254_i32_49 dim 1 : vector<2x256xf32>, i32 -> vector<2x256xf32>
    %cst_50 = arith.constant 0.000000e+00 : f32
    %216 = vector.shape_cast %40 : vector<1x256xi1> to vector<1x256xi1>
    %217 = vector.broadcast %216 : vector<1x256xi1> to vector<2x256xi1>
    %218 = vector.broadcast %cst_50 : f32 to vector<2x256xf32>
    %219 = arith.select %217, %215, %218 : vector<2x256xi1>, vector<2x256xf32>
    %c19 = arith.constant 19 : index
    %220 = memref.load %arg1[%c19] : memref<98xf32, #tpu.memory_space<smem>>
    %221 = vector.broadcast %220 : f32 to vector<2x256xf32>
    %222 = arith.mulf %219, %221 : vector<2x256xf32>
    %223 = arith.addf %214, %222 : vector<2x256xf32>
    %c253_i32_51 = arith.constant 253 : i32
    %224 = tpu.dynamic_rotate %174 by %c253_i32_51 dim 1 : vector<2x256xf32>, i32 -> vector<2x256xf32>
    %cst_52 = arith.constant 0.000000e+00 : f32
    %225 = vector.shape_cast %42 : vector<1x256xi1> to vector<1x256xi1>
    %226 = vector.broadcast %225 : vector<1x256xi1> to vector<2x256xi1>
    %227 = vector.broadcast %cst_52 : f32 to vector<2x256xf32>
    %228 = arith.select %226, %224, %227 : vector<2x256xi1>, vector<2x256xf32>
    %c20 = arith.constant 20 : index
    %229 = memref.load %arg1[%c20] : memref<98xf32, #tpu.memory_space<smem>>
    %230 = vector.broadcast %229 : f32 to vector<2x256xf32>
    %231 = arith.mulf %228, %230 : vector<2x256xf32>
    %232 = arith.addf %223, %231 : vector<2x256xf32>
    %c3_i32_53 = arith.constant 3 : i32
    %233 = tpu.dynamic_rotate %15 by %c3_i32_53 dim 1 : vector<2x256xf32>, i32 -> vector<2x256xf32>
    %cst_54 = arith.constant 0.000000e+00 : f32
    %234 = vector.shape_cast %32 : vector<1x256xi1> to vector<1x256xi1>
    %235 = vector.broadcast %234 : vector<1x256xi1> to vector<2x256xi1>
    %236 = vector.broadcast %cst_54 : f32 to vector<2x256xf32>
    %237 = arith.select %235, %233, %236 : vector<2x256xi1>, vector<2x256xf32>
    %c21 = arith.constant 21 : index
    %238 = memref.load %arg1[%c21] : memref<98xf32, #tpu.memory_space<smem>>
    %239 = vector.broadcast %238 : f32 to vector<2x256xf32>
    %240 = arith.mulf %237, %239 : vector<2x256xf32>
    %241 = arith.addf %232, %240 : vector<2x256xf32>
    %c2_i32_55 = arith.constant 2 : i32
    %242 = tpu.dynamic_rotate %15 by %c2_i32_55 dim 1 : vector<2x256xf32>, i32 -> vector<2x256xf32>
    %cst_56 = arith.constant 0.000000e+00 : f32
    %243 = vector.shape_cast %34 : vector<1x256xi1> to vector<1x256xi1>
    %244 = vector.broadcast %243 : vector<1x256xi1> to vector<2x256xi1>
    %245 = vector.broadcast %cst_56 : f32 to vector<2x256xf32>
    %246 = arith.select %244, %242, %245 : vector<2x256xi1>, vector<2x256xf32>
    %c22 = arith.constant 22 : index
    %247 = memref.load %arg1[%c22] : memref<98xf32, #tpu.memory_space<smem>>
    %248 = vector.broadcast %247 : f32 to vector<2x256xf32>
    %249 = arith.mulf %246, %248 : vector<2x256xf32>
    %250 = arith.addf %241, %249 : vector<2x256xf32>
    %c1_i32_57 = arith.constant 1 : i32
    %251 = tpu.dynamic_rotate %15 by %c1_i32_57 dim 1 : vector<2x256xf32>, i32 -> vector<2x256xf32>
    %cst_58 = arith.constant 0.000000e+00 : f32
    %252 = vector.shape_cast %36 : vector<1x256xi1> to vector<1x256xi1>
    %253 = vector.broadcast %252 : vector<1x256xi1> to vector<2x256xi1>
    %254 = vector.broadcast %cst_58 : f32 to vector<2x256xf32>
    %255 = arith.select %253, %251, %254 : vector<2x256xi1>, vector<2x256xf32>
    %c23 = arith.constant 23 : index
    %256 = memref.load %arg1[%c23] : memref<98xf32, #tpu.memory_space<smem>>
    %257 = vector.broadcast %256 : f32 to vector<2x256xf32>
    %258 = arith.mulf %255, %257 : vector<2x256xf32>
    %259 = arith.addf %250, %258 : vector<2x256xf32>
    %c24 = arith.constant 24 : index
    %260 = memref.load %arg1[%c24] : memref<98xf32, #tpu.memory_space<smem>>
    %261 = vector.broadcast %260 : f32 to vector<2x256xf32>
    %262 = arith.mulf %15, %261 : vector<2x256xf32>
    %263 = arith.addf %259, %262 : vector<2x256xf32>
    %c255_i32_59 = arith.constant 255 : i32
    %264 = tpu.dynamic_rotate %15 by %c255_i32_59 dim 1 : vector<2x256xf32>, i32 -> vector<2x256xf32>
    %cst_60 = arith.constant 0.000000e+00 : f32
    %265 = vector.shape_cast %38 : vector<1x256xi1> to vector<1x256xi1>
    %266 = vector.broadcast %265 : vector<1x256xi1> to vector<2x256xi1>
    %267 = vector.broadcast %cst_60 : f32 to vector<2x256xf32>
    %268 = arith.select %266, %264, %267 : vector<2x256xi1>, vector<2x256xf32>
    %c25 = arith.constant 25 : index
    %269 = memref.load %arg1[%c25] : memref<98xf32, #tpu.memory_space<smem>>
    %270 = vector.broadcast %269 : f32 to vector<2x256xf32>
    %271 = arith.mulf %268, %270 : vector<2x256xf32>
    %272 = arith.addf %263, %271 : vector<2x256xf32>
    %c254_i32_61 = arith.constant 254 : i32
    %273 = tpu.dynamic_rotate %15 by %c254_i32_61 dim 1 : vector<2x256xf32>, i32 -> vector<2x256xf32>
    %cst_62 = arith.constant 0.000000e+00 : f32
    %274 = vector.shape_cast %40 : vector<1x256xi1> to vector<1x256xi1>
    %275 = vector.broadcast %274 : vector<1x256xi1> to vector<2x256xi1>
    %276 = vector.broadcast %cst_62 : f32 to vector<2x256xf32>
    %277 = arith.select %275, %273, %276 : vector<2x256xi1>, vector<2x256xf32>
    %c26 = arith.constant 26 : index
    %278 = memref.load %arg1[%c26] : memref<98xf32, #tpu.memory_space<smem>>
    %279 = vector.broadcast %278 : f32 to vector<2x256xf32>
    %280 = arith.mulf %277, %279 : vector<2x256xf32>
    %281 = arith.addf %272, %280 : vector<2x256xf32>
    %c253_i32_63 = arith.constant 253 : i32
    %282 = tpu.dynamic_rotate %15 by %c253_i32_63 dim 1 : vector<2x256xf32>, i32 -> vector<2x256xf32>
    %cst_64 = arith.constant 0.000000e+00 : f32
    %283 = vector.shape_cast %42 : vector<1x256xi1> to vector<1x256xi1>
    %284 = vector.broadcast %283 : vector<1x256xi1> to vector<2x256xi1>
    %285 = vector.broadcast %cst_64 : f32 to vector<2x256xf32>
    %286 = arith.select %284, %282, %285 : vector<2x256xi1>, vector<2x256xf32>
    %c27 = arith.constant 27 : index
    %287 = memref.load %arg1[%c27] : memref<98xf32, #tpu.memory_space<smem>>
    %288 = vector.broadcast %287 : f32 to vector<2x256xf32>
    %289 = arith.mulf %286, %288 : vector<2x256xf32>
    %290 = arith.addf %281, %289 : vector<2x256xf32>
    %c240_i32_65 = arith.constant 240 : i32
    %291 = tpu.dynamic_rotate %15 by %c240_i32_65 dim 1 : vector<2x256xf32>, i32 -> vector<2x256xf32>
    %cst_66 = arith.constant 0.000000e+00 : f32
    %292 = vector.shape_cast %26 : vector<1x256xi1> to vector<1x256xi1>
    %293 = vector.broadcast %292 : vector<1x256xi1> to vector<2x256xi1>
    %294 = vector.broadcast %cst_66 : f32 to vector<2x256xf32>
    %295 = arith.select %293, %291, %294 : vector<2x256xi1>, vector<2x256xf32>
    %c3_i32_67 = arith.constant 3 : i32
    %296 = tpu.dynamic_rotate %295 by %c3_i32_67 dim 1 : vector<2x256xf32>, i32 -> vector<2x256xf32>
    %cst_68 = arith.constant 0.000000e+00 : f32
    %297 = vector.shape_cast %32 : vector<1x256xi1> to vector<1x256xi1>
    %298 = vector.broadcast %297 : vector<1x256xi1> to vector<2x256xi1>
    %299 = vector.broadcast %cst_68 : f32 to vector<2x256xf32>
    %300 = arith.select %298, %296, %299 : vector<2x256xi1>, vector<2x256xf32>
    %c28 = arith.constant 28 : index
    %301 = memref.load %arg1[%c28] : memref<98xf32, #tpu.memory_space<smem>>
    %302 = vector.broadcast %301 : f32 to vector<2x256xf32>
    %303 = arith.mulf %300, %302 : vector<2x256xf32>
    %304 = arith.addf %290, %303 : vector<2x256xf32>
    %c2_i32_69 = arith.constant 2 : i32
    %305 = tpu.dynamic_rotate %295 by %c2_i32_69 dim 1 : vector<2x256xf32>, i32 -> vector<2x256xf32>
    %cst_70 = arith.constant 0.000000e+00 : f32
    %306 = vector.shape_cast %34 : vector<1x256xi1> to vector<1x256xi1>
    %307 = vector.broadcast %306 : vector<1x256xi1> to vector<2x256xi1>
    %308 = vector.broadcast %cst_70 : f32 to vector<2x256xf32>
    %309 = arith.select %307, %305, %308 : vector<2x256xi1>, vector<2x256xf32>
    %c29 = arith.constant 29 : index
    %310 = memref.load %arg1[%c29] : memref<98xf32, #tpu.memory_space<smem>>
    %311 = vector.broadcast %310 : f32 to vector<2x256xf32>
    %312 = arith.mulf %309, %311 : vector<2x256xf32>
    %313 = arith.addf %304, %312 : vector<2x256xf32>
    %c1_i32_71 = arith.constant 1 : i32
    %314 = tpu.dynamic_rotate %295 by %c1_i32_71 dim 1 : vector<2x256xf32>, i32 -> vector<2x256xf32>
    %cst_72 = arith.constant 0.000000e+00 : f32
    %315 = vector.shape_cast %36 : vector<1x256xi1> to vector<1x256xi1>
    %316 = vector.broadcast %315 : vector<1x256xi1> to vector<2x256xi1>
    %317 = vector.broadcast %cst_72 : f32 to vector<2x256xf32>
    %318 = arith.select %316, %314, %317 : vector<2x256xi1>, vector<2x256xf32>
    %c30 = arith.constant 30 : index
    %319 = memref.load %arg1[%c30] : memref<98xf32, #tpu.memory_space<smem>>
    %320 = vector.broadcast %319 : f32 to vector<2x256xf32>
    %321 = arith.mulf %318, %320 : vector<2x256xf32>
    %322 = arith.addf %313, %321 : vector<2x256xf32>
    %c31 = arith.constant 31 : index
    %323 = memref.load %arg1[%c31] : memref<98xf32, #tpu.memory_space<smem>>
    %324 = vector.broadcast %323 : f32 to vector<2x256xf32>
    %325 = arith.mulf %295, %324 : vector<2x256xf32>
    %326 = arith.addf %322, %325 : vector<2x256xf32>
    %c255_i32_73 = arith.constant 255 : i32
    %327 = tpu.dynamic_rotate %295 by %c255_i32_73 dim 1 : vector<2x256xf32>, i32 -> vector<2x256xf32>
    %cst_74 = arith.constant 0.000000e+00 : f32
    %328 = vector.shape_cast %38 : vector<1x256xi1> to vector<1x256xi1>
    %329 = vector.broadcast %328 : vector<1x256xi1> to vector<2x256xi1>
    %330 = vector.broadcast %cst_74 : f32 to vector<2x256xf32>
    %331 = arith.select %329, %327, %330 : vector<2x256xi1>, vector<2x256xf32>
    %c32 = arith.constant 32 : index
    %332 = memref.load %arg1[%c32] : memref<98xf32, #tpu.memory_space<smem>>
    %333 = vector.broadcast %332 : f32 to vector<2x256xf32>
    %334 = arith.mulf %331, %333 : vector<2x256xf32>
    %335 = arith.addf %326, %334 : vector<2x256xf32>
    %c254_i32_75 = arith.constant 254 : i32
    %336 = tpu.dynamic_rotate %295 by %c254_i32_75 dim 1 : vector<2x256xf32>, i32 -> vector<2x256xf32>
    %cst_76 = arith.constant 0.000000e+00 : f32
    %337 = vector.shape_cast %40 : vector<1x256xi1> to vector<1x256xi1>
    %338 = vector.broadcast %337 : vector<1x256xi1> to vector<2x256xi1>
    %339 = vector.broadcast %cst_76 : f32 to vector<2x256xf32>
    %340 = arith.select %338, %336, %339 : vector<2x256xi1>, vector<2x256xf32>
    %c33 = arith.constant 33 : index
    %341 = memref.load %arg1[%c33] : memref<98xf32, #tpu.memory_space<smem>>
    %342 = vector.broadcast %341 : f32 to vector<2x256xf32>
    %343 = arith.mulf %340, %342 : vector<2x256xf32>
    %344 = arith.addf %335, %343 : vector<2x256xf32>
    %c253_i32_77 = arith.constant 253 : i32
    %345 = tpu.dynamic_rotate %295 by %c253_i32_77 dim 1 : vector<2x256xf32>, i32 -> vector<2x256xf32>
    %cst_78 = arith.constant 0.000000e+00 : f32
    %346 = vector.shape_cast %42 : vector<1x256xi1> to vector<1x256xi1>
    %347 = vector.broadcast %346 : vector<1x256xi1> to vector<2x256xi1>
    %348 = vector.broadcast %cst_78 : f32 to vector<2x256xf32>
    %349 = arith.select %347, %345, %348 : vector<2x256xi1>, vector<2x256xf32>
    %c34 = arith.constant 34 : index
    %350 = memref.load %arg1[%c34] : memref<98xf32, #tpu.memory_space<smem>>
    %351 = vector.broadcast %350 : f32 to vector<2x256xf32>
    %352 = arith.mulf %349, %351 : vector<2x256xf32>
    %353 = arith.addf %344, %352 : vector<2x256xf32>
    %c224_i32_79 = arith.constant 224 : i32
    %354 = tpu.dynamic_rotate %15 by %c224_i32_79 dim 1 : vector<2x256xf32>, i32 -> vector<2x256xf32>
    %cst_80 = arith.constant 0.000000e+00 : f32
    %355 = vector.shape_cast %28 : vector<1x256xi1> to vector<1x256xi1>
    %356 = vector.broadcast %355 : vector<1x256xi1> to vector<2x256xi1>
    %357 = vector.broadcast %cst_80 : f32 to vector<2x256xf32>
    %358 = arith.select %356, %354, %357 : vector<2x256xi1>, vector<2x256xf32>
    %c3_i32_81 = arith.constant 3 : i32
    %359 = tpu.dynamic_rotate %358 by %c3_i32_81 dim 1 : vector<2x256xf32>, i32 -> vector<2x256xf32>
    %cst_82 = arith.constant 0.000000e+00 : f32
    %360 = vector.shape_cast %32 : vector<1x256xi1> to vector<1x256xi1>
    %361 = vector.broadcast %360 : vector<1x256xi1> to vector<2x256xi1>
    %362 = vector.broadcast %cst_82 : f32 to vector<2x256xf32>
    %363 = arith.select %361, %359, %362 : vector<2x256xi1>, vector<2x256xf32>
    %c35 = arith.constant 35 : index
    %364 = memref.load %arg1[%c35] : memref<98xf32, #tpu.memory_space<smem>>
    %365 = vector.broadcast %364 : f32 to vector<2x256xf32>
    %366 = arith.mulf %363, %365 : vector<2x256xf32>
    %367 = arith.addf %353, %366 : vector<2x256xf32>
    %c2_i32_83 = arith.constant 2 : i32
    %368 = tpu.dynamic_rotate %358 by %c2_i32_83 dim 1 : vector<2x256xf32>, i32 -> vector<2x256xf32>
    %cst_84 = arith.constant 0.000000e+00 : f32
    %369 = vector.shape_cast %34 : vector<1x256xi1> to vector<1x256xi1>
    %370 = vector.broadcast %369 : vector<1x256xi1> to vector<2x256xi1>
    %371 = vector.broadcast %cst_84 : f32 to vector<2x256xf32>
    %372 = arith.select %370, %368, %371 : vector<2x256xi1>, vector<2x256xf32>
    %c36 = arith.constant 36 : index
    %373 = memref.load %arg1[%c36] : memref<98xf32, #tpu.memory_space<smem>>
    %374 = vector.broadcast %373 : f32 to vector<2x256xf32>
    %375 = arith.mulf %372, %374 : vector<2x256xf32>
    %376 = arith.addf %367, %375 : vector<2x256xf32>
    %c1_i32_85 = arith.constant 1 : i32
    %377 = tpu.dynamic_rotate %358 by %c1_i32_85 dim 1 : vector<2x256xf32>, i32 -> vector<2x256xf32>
    %cst_86 = arith.constant 0.000000e+00 : f32
    %378 = vector.shape_cast %36 : vector<1x256xi1> to vector<1x256xi1>
    %379 = vector.broadcast %378 : vector<1x256xi1> to vector<2x256xi1>
    %380 = vector.broadcast %cst_86 : f32 to vector<2x256xf32>
    %381 = arith.select %379, %377, %380 : vector<2x256xi1>, vector<2x256xf32>
    %c37 = arith.constant 37 : index
    %382 = memref.load %arg1[%c37] : memref<98xf32, #tpu.memory_space<smem>>
    %383 = vector.broadcast %382 : f32 to vector<2x256xf32>
    %384 = arith.mulf %381, %383 : vector<2x256xf32>
    %385 = arith.addf %376, %384 : vector<2x256xf32>
    %c38 = arith.constant 38 : index
    %386 = memref.load %arg1[%c38] : memref<98xf32, #tpu.memory_space<smem>>
    %387 = vector.broadcast %386 : f32 to vector<2x256xf32>
    %388 = arith.mulf %358, %387 : vector<2x256xf32>
    %389 = arith.addf %385, %388 : vector<2x256xf32>
    %c255_i32_87 = arith.constant 255 : i32
    %390 = tpu.dynamic_rotate %358 by %c255_i32_87 dim 1 : vector<2x256xf32>, i32 -> vector<2x256xf32>
    %cst_88 = arith.constant 0.000000e+00 : f32
    %391 = vector.shape_cast %38 : vector<1x256xi1> to vector<1x256xi1>
    %392 = vector.broadcast %391 : vector<1x256xi1> to vector<2x256xi1>
    %393 = vector.broadcast %cst_88 : f32 to vector<2x256xf32>
    %394 = arith.select %392, %390, %393 : vector<2x256xi1>, vector<2x256xf32>
    %c39 = arith.constant 39 : index
    %395 = memref.load %arg1[%c39] : memref<98xf32, #tpu.memory_space<smem>>
    %396 = vector.broadcast %395 : f32 to vector<2x256xf32>
    %397 = arith.mulf %394, %396 : vector<2x256xf32>
    %398 = arith.addf %389, %397 : vector<2x256xf32>
    %c254_i32_89 = arith.constant 254 : i32
    %399 = tpu.dynamic_rotate %358 by %c254_i32_89 dim 1 : vector<2x256xf32>, i32 -> vector<2x256xf32>
    %cst_90 = arith.constant 0.000000e+00 : f32
    %400 = vector.shape_cast %40 : vector<1x256xi1> to vector<1x256xi1>
    %401 = vector.broadcast %400 : vector<1x256xi1> to vector<2x256xi1>
    %402 = vector.broadcast %cst_90 : f32 to vector<2x256xf32>
    %403 = arith.select %401, %399, %402 : vector<2x256xi1>, vector<2x256xf32>
    %c40 = arith.constant 40 : index
    %404 = memref.load %arg1[%c40] : memref<98xf32, #tpu.memory_space<smem>>
    %405 = vector.broadcast %404 : f32 to vector<2x256xf32>
    %406 = arith.mulf %403, %405 : vector<2x256xf32>
    %407 = arith.addf %398, %406 : vector<2x256xf32>
    %c253_i32_91 = arith.constant 253 : i32
    %408 = tpu.dynamic_rotate %358 by %c253_i32_91 dim 1 : vector<2x256xf32>, i32 -> vector<2x256xf32>
    %cst_92 = arith.constant 0.000000e+00 : f32
    %409 = vector.shape_cast %42 : vector<1x256xi1> to vector<1x256xi1>
    %410 = vector.broadcast %409 : vector<1x256xi1> to vector<2x256xi1>
    %411 = vector.broadcast %cst_92 : f32 to vector<2x256xf32>
    %412 = arith.select %410, %408, %411 : vector<2x256xi1>, vector<2x256xf32>
    %c41 = arith.constant 41 : index
    %413 = memref.load %arg1[%c41] : memref<98xf32, #tpu.memory_space<smem>>
    %414 = vector.broadcast %413 : f32 to vector<2x256xf32>
    %415 = arith.mulf %412, %414 : vector<2x256xf32>
    %416 = arith.addf %407, %415 : vector<2x256xf32>
    %c208_i32_93 = arith.constant 208 : i32
    %417 = tpu.dynamic_rotate %15 by %c208_i32_93 dim 1 : vector<2x256xf32>, i32 -> vector<2x256xf32>
    %cst_94 = arith.constant 0.000000e+00 : f32
    %418 = vector.shape_cast %30 : vector<1x256xi1> to vector<1x256xi1>
    %419 = vector.broadcast %418 : vector<1x256xi1> to vector<2x256xi1>
    %420 = vector.broadcast %cst_94 : f32 to vector<2x256xf32>
    %421 = arith.select %419, %417, %420 : vector<2x256xi1>, vector<2x256xf32>
    %c3_i32_95 = arith.constant 3 : i32
    %422 = tpu.dynamic_rotate %421 by %c3_i32_95 dim 1 : vector<2x256xf32>, i32 -> vector<2x256xf32>
    %cst_96 = arith.constant 0.000000e+00 : f32
    %423 = vector.shape_cast %32 : vector<1x256xi1> to vector<1x256xi1>
    %424 = vector.broadcast %423 : vector<1x256xi1> to vector<2x256xi1>
    %425 = vector.broadcast %cst_96 : f32 to vector<2x256xf32>
    %426 = arith.select %424, %422, %425 : vector<2x256xi1>, vector<2x256xf32>
    %c42 = arith.constant 42 : index
    %427 = memref.load %arg1[%c42] : memref<98xf32, #tpu.memory_space<smem>>
    %428 = vector.broadcast %427 : f32 to vector<2x256xf32>
    %429 = arith.mulf %426, %428 : vector<2x256xf32>
    %430 = arith.addf %416, %429 : vector<2x256xf32>
    %c2_i32_97 = arith.constant 2 : i32
    %431 = tpu.dynamic_rotate %421 by %c2_i32_97 dim 1 : vector<2x256xf32>, i32 -> vector<2x256xf32>
    %cst_98 = arith.constant 0.000000e+00 : f32
    %432 = vector.shape_cast %34 : vector<1x256xi1> to vector<1x256xi1>
    %433 = vector.broadcast %432 : vector<1x256xi1> to vector<2x256xi1>
    %434 = vector.broadcast %cst_98 : f32 to vector<2x256xf32>
    %435 = arith.select %433, %431, %434 : vector<2x256xi1>, vector<2x256xf32>
    %c43 = arith.constant 43 : index
    %436 = memref.load %arg1[%c43] : memref<98xf32, #tpu.memory_space<smem>>
    %437 = vector.broadcast %436 : f32 to vector<2x256xf32>
    %438 = arith.mulf %435, %437 : vector<2x256xf32>
    %439 = arith.addf %430, %438 : vector<2x256xf32>
    %c1_i32_99 = arith.constant 1 : i32
    %440 = tpu.dynamic_rotate %421 by %c1_i32_99 dim 1 : vector<2x256xf32>, i32 -> vector<2x256xf32>
    %cst_100 = arith.constant 0.000000e+00 : f32
    %441 = vector.shape_cast %36 : vector<1x256xi1> to vector<1x256xi1>
    %442 = vector.broadcast %441 : vector<1x256xi1> to vector<2x256xi1>
    %443 = vector.broadcast %cst_100 : f32 to vector<2x256xf32>
    %444 = arith.select %442, %440, %443 : vector<2x256xi1>, vector<2x256xf32>
    %c44 = arith.constant 44 : index
    %445 = memref.load %arg1[%c44] : memref<98xf32, #tpu.memory_space<smem>>
    %446 = vector.broadcast %445 : f32 to vector<2x256xf32>
    %447 = arith.mulf %444, %446 : vector<2x256xf32>
    %448 = arith.addf %439, %447 : vector<2x256xf32>
    %c45 = arith.constant 45 : index
    %449 = memref.load %arg1[%c45] : memref<98xf32, #tpu.memory_space<smem>>
    %450 = vector.broadcast %449 : f32 to vector<2x256xf32>
    %451 = arith.mulf %421, %450 : vector<2x256xf32>
    %452 = arith.addf %448, %451 : vector<2x256xf32>
    %c255_i32_101 = arith.constant 255 : i32
    %453 = tpu.dynamic_rotate %421 by %c255_i32_101 dim 1 : vector<2x256xf32>, i32 -> vector<2x256xf32>
    %cst_102 = arith.constant 0.000000e+00 : f32
    %454 = vector.shape_cast %38 : vector<1x256xi1> to vector<1x256xi1>
    %455 = vector.broadcast %454 : vector<1x256xi1> to vector<2x256xi1>
    %456 = vector.broadcast %cst_102 : f32 to vector<2x256xf32>
    %457 = arith.select %455, %453, %456 : vector<2x256xi1>, vector<2x256xf32>
    %c46 = arith.constant 46 : index
    %458 = memref.load %arg1[%c46] : memref<98xf32, #tpu.memory_space<smem>>
    %459 = vector.broadcast %458 : f32 to vector<2x256xf32>
    %460 = arith.mulf %457, %459 : vector<2x256xf32>
    %461 = arith.addf %452, %460 : vector<2x256xf32>
    %c254_i32_103 = arith.constant 254 : i32
    %462 = tpu.dynamic_rotate %421 by %c254_i32_103 dim 1 : vector<2x256xf32>, i32 -> vector<2x256xf32>
    %cst_104 = arith.constant 0.000000e+00 : f32
    %463 = vector.shape_cast %40 : vector<1x256xi1> to vector<1x256xi1>
    %464 = vector.broadcast %463 : vector<1x256xi1> to vector<2x256xi1>
    %465 = vector.broadcast %cst_104 : f32 to vector<2x256xf32>
    %466 = arith.select %464, %462, %465 : vector<2x256xi1>, vector<2x256xf32>
    %c47 = arith.constant 47 : index
    %467 = memref.load %arg1[%c47] : memref<98xf32, #tpu.memory_space<smem>>
    %468 = vector.broadcast %467 : f32 to vector<2x256xf32>
    %469 = arith.mulf %466, %468 : vector<2x256xf32>
    %470 = arith.addf %461, %469 : vector<2x256xf32>
    %c253_i32_105 = arith.constant 253 : i32
    %471 = tpu.dynamic_rotate %421 by %c253_i32_105 dim 1 : vector<2x256xf32>, i32 -> vector<2x256xf32>
    %cst_106 = arith.constant 0.000000e+00 : f32
    %472 = vector.shape_cast %42 : vector<1x256xi1> to vector<1x256xi1>
    %473 = vector.broadcast %472 : vector<1x256xi1> to vector<2x256xi1>
    %474 = vector.broadcast %cst_106 : f32 to vector<2x256xf32>
    %475 = arith.select %473, %471, %474 : vector<2x256xi1>, vector<2x256xf32>
    %c48 = arith.constant 48 : index
    %476 = memref.load %arg1[%c48] : memref<98xf32, #tpu.memory_space<smem>>
    %477 = vector.broadcast %476 : f32 to vector<2x256xf32>
    %478 = arith.mulf %475, %477 : vector<2x256xf32>
    %479 = arith.addf %470, %478 : vector<2x256xf32>
    %c48_i32_107 = arith.constant 48 : i32
    %480 = tpu.dynamic_rotate %13 by %c48_i32_107 dim 1 : vector<2x256xf32>, i32 -> vector<2x256xf32>
    %cst_108 = arith.constant 0.000000e+00 : f32
    %481 = vector.shape_cast %20 : vector<1x256xi1> to vector<1x256xi1>
    %482 = vector.broadcast %481 : vector<1x256xi1> to vector<2x256xi1>
    %483 = vector.broadcast %cst_108 : f32 to vector<2x256xf32>
    %484 = arith.select %482, %480, %483 : vector<2x256xi1>, vector<2x256xf32>
    %c3_i32_109 = arith.constant 3 : i32
    %485 = tpu.dynamic_rotate %484 by %c3_i32_109 dim 1 : vector<2x256xf32>, i32 -> vector<2x256xf32>
    %cst_110 = arith.constant 0.000000e+00 : f32
    %486 = vector.shape_cast %32 : vector<1x256xi1> to vector<1x256xi1>
    %487 = vector.broadcast %486 : vector<1x256xi1> to vector<2x256xi1>
    %488 = vector.broadcast %cst_110 : f32 to vector<2x256xf32>
    %489 = arith.select %487, %485, %488 : vector<2x256xi1>, vector<2x256xf32>
    %c49 = arith.constant 49 : index
    %490 = memref.load %arg1[%c49] : memref<98xf32, #tpu.memory_space<smem>>
    %491 = vector.broadcast %490 : f32 to vector<2x256xf32>
    %492 = arith.mulf %489, %491 : vector<2x256xf32>
    %493 = arith.addf %479, %492 : vector<2x256xf32>
    %c2_i32_111 = arith.constant 2 : i32
    %494 = tpu.dynamic_rotate %484 by %c2_i32_111 dim 1 : vector<2x256xf32>, i32 -> vector<2x256xf32>
    %cst_112 = arith.constant 0.000000e+00 : f32
    %495 = vector.shape_cast %34 : vector<1x256xi1> to vector<1x256xi1>
    %496 = vector.broadcast %495 : vector<1x256xi1> to vector<2x256xi1>
    %497 = vector.broadcast %cst_112 : f32 to vector<2x256xf32>
    %498 = arith.select %496, %494, %497 : vector<2x256xi1>, vector<2x256xf32>
    %c50 = arith.constant 50 : index
    %499 = memref.load %arg1[%c50] : memref<98xf32, #tpu.memory_space<smem>>
    %500 = vector.broadcast %499 : f32 to vector<2x256xf32>
    %501 = arith.mulf %498, %500 : vector<2x256xf32>
    %502 = arith.addf %493, %501 : vector<2x256xf32>
    %c1_i32_113 = arith.constant 1 : i32
    %503 = tpu.dynamic_rotate %484 by %c1_i32_113 dim 1 : vector<2x256xf32>, i32 -> vector<2x256xf32>
    %cst_114 = arith.constant 0.000000e+00 : f32
    %504 = vector.shape_cast %36 : vector<1x256xi1> to vector<1x256xi1>
    %505 = vector.broadcast %504 : vector<1x256xi1> to vector<2x256xi1>
    %506 = vector.broadcast %cst_114 : f32 to vector<2x256xf32>
    %507 = arith.select %505, %503, %506 : vector<2x256xi1>, vector<2x256xf32>
    %c51 = arith.constant 51 : index
    %508 = memref.load %arg1[%c51] : memref<98xf32, #tpu.memory_space<smem>>
    %509 = vector.broadcast %508 : f32 to vector<2x256xf32>
    %510 = arith.mulf %507, %509 : vector<2x256xf32>
    %511 = arith.addf %502, %510 : vector<2x256xf32>
    %c52 = arith.constant 52 : index
    %512 = memref.load %arg1[%c52] : memref<98xf32, #tpu.memory_space<smem>>
    %513 = vector.broadcast %512 : f32 to vector<2x256xf32>
    %514 = arith.mulf %484, %513 : vector<2x256xf32>
    %515 = arith.addf %511, %514 : vector<2x256xf32>
    %c255_i32_115 = arith.constant 255 : i32
    %516 = tpu.dynamic_rotate %484 by %c255_i32_115 dim 1 : vector<2x256xf32>, i32 -> vector<2x256xf32>
    %cst_116 = arith.constant 0.000000e+00 : f32
    %517 = vector.shape_cast %38 : vector<1x256xi1> to vector<1x256xi1>
    %518 = vector.broadcast %517 : vector<1x256xi1> to vector<2x256xi1>
    %519 = vector.broadcast %cst_116 : f32 to vector<2x256xf32>
    %520 = arith.select %518, %516, %519 : vector<2x256xi1>, vector<2x256xf32>
    %c53 = arith.constant 53 : index
    %521 = memref.load %arg1[%c53] : memref<98xf32, #tpu.memory_space<smem>>
    %522 = vector.broadcast %521 : f32 to vector<2x256xf32>
    %523 = arith.mulf %520, %522 : vector<2x256xf32>
    %524 = arith.addf %515, %523 : vector<2x256xf32>
    %c254_i32_117 = arith.constant 254 : i32
    %525 = tpu.dynamic_rotate %484 by %c254_i32_117 dim 1 : vector<2x256xf32>, i32 -> vector<2x256xf32>
    %cst_118 = arith.constant 0.000000e+00 : f32
    %526 = vector.shape_cast %40 : vector<1x256xi1> to vector<1x256xi1>
    %527 = vector.broadcast %526 : vector<1x256xi1> to vector<2x256xi1>
    %528 = vector.broadcast %cst_118 : f32 to vector<2x256xf32>
    %529 = arith.select %527, %525, %528 : vector<2x256xi1>, vector<2x256xf32>
    %c54 = arith.constant 54 : index
    %530 = memref.load %arg1[%c54] : memref<98xf32, #tpu.memory_space<smem>>
    %531 = vector.broadcast %530 : f32 to vector<2x256xf32>
    %532 = arith.mulf %529, %531 : vector<2x256xf32>
    %533 = arith.addf %524, %532 : vector<2x256xf32>
    %c253_i32_119 = arith.constant 253 : i32
    %534 = tpu.dynamic_rotate %484 by %c253_i32_119 dim 1 : vector<2x256xf32>, i32 -> vector<2x256xf32>
    %cst_120 = arith.constant 0.000000e+00 : f32
    %535 = vector.shape_cast %42 : vector<1x256xi1> to vector<1x256xi1>
    %536 = vector.broadcast %535 : vector<1x256xi1> to vector<2x256xi1>
    %537 = vector.broadcast %cst_120 : f32 to vector<2x256xf32>
    %538 = arith.select %536, %534, %537 : vector<2x256xi1>, vector<2x256xf32>
    %c55 = arith.constant 55 : index
    %539 = memref.load %arg1[%c55] : memref<98xf32, #tpu.memory_space<smem>>
    %540 = vector.broadcast %539 : f32 to vector<2x256xf32>
    %541 = arith.mulf %538, %540 : vector<2x256xf32>
    %542 = arith.addf %533, %541 : vector<2x256xf32>
    %c32_i32_121 = arith.constant 32 : i32
    %543 = tpu.dynamic_rotate %13 by %c32_i32_121 dim 1 : vector<2x256xf32>, i32 -> vector<2x256xf32>
    %cst_122 = arith.constant 0.000000e+00 : f32
    %544 = vector.shape_cast %22 : vector<1x256xi1> to vector<1x256xi1>
    %545 = vector.broadcast %544 : vector<1x256xi1> to vector<2x256xi1>
    %546 = vector.broadcast %cst_122 : f32 to vector<2x256xf32>
    %547 = arith.select %545, %543, %546 : vector<2x256xi1>, vector<2x256xf32>
    %c3_i32_123 = arith.constant 3 : i32
    %548 = tpu.dynamic_rotate %547 by %c3_i32_123 dim 1 : vector<2x256xf32>, i32 -> vector<2x256xf32>
    %cst_124 = arith.constant 0.000000e+00 : f32
    %549 = vector.shape_cast %32 : vector<1x256xi1> to vector<1x256xi1>
    %550 = vector.broadcast %549 : vector<1x256xi1> to vector<2x256xi1>
    %551 = vector.broadcast %cst_124 : f32 to vector<2x256xf32>
    %552 = arith.select %550, %548, %551 : vector<2x256xi1>, vector<2x256xf32>
    %c56 = arith.constant 56 : index
    %553 = memref.load %arg1[%c56] : memref<98xf32, #tpu.memory_space<smem>>
    %554 = vector.broadcast %553 : f32 to vector<2x256xf32>
    %555 = arith.mulf %552, %554 : vector<2x256xf32>
    %556 = arith.addf %542, %555 : vector<2x256xf32>
    %c2_i32_125 = arith.constant 2 : i32
    %557 = tpu.dynamic_rotate %547 by %c2_i32_125 dim 1 : vector<2x256xf32>, i32 -> vector<2x256xf32>
    %cst_126 = arith.constant 0.000000e+00 : f32
    %558 = vector.shape_cast %34 : vector<1x256xi1> to vector<1x256xi1>
    %559 = vector.broadcast %558 : vector<1x256xi1> to vector<2x256xi1>
    %560 = vector.broadcast %cst_126 : f32 to vector<2x256xf32>
    %561 = arith.select %559, %557, %560 : vector<2x256xi1>, vector<2x256xf32>
    %c57 = arith.constant 57 : index
    %562 = memref.load %arg1[%c57] : memref<98xf32, #tpu.memory_space<smem>>
    %563 = vector.broadcast %562 : f32 to vector<2x256xf32>
    %564 = arith.mulf %561, %563 : vector<2x256xf32>
    %565 = arith.addf %556, %564 : vector<2x256xf32>
    %c1_i32_127 = arith.constant 1 : i32
    %566 = tpu.dynamic_rotate %547 by %c1_i32_127 dim 1 : vector<2x256xf32>, i32 -> vector<2x256xf32>
    %cst_128 = arith.constant 0.000000e+00 : f32
    %567 = vector.shape_cast %36 : vector<1x256xi1> to vector<1x256xi1>
    %568 = vector.broadcast %567 : vector<1x256xi1> to vector<2x256xi1>
    %569 = vector.broadcast %cst_128 : f32 to vector<2x256xf32>
    %570 = arith.select %568, %566, %569 : vector<2x256xi1>, vector<2x256xf32>
    %c58 = arith.constant 58 : index
    %571 = memref.load %arg1[%c58] : memref<98xf32, #tpu.memory_space<smem>>
    %572 = vector.broadcast %571 : f32 to vector<2x256xf32>
    %573 = arith.mulf %570, %572 : vector<2x256xf32>
    %574 = arith.addf %565, %573 : vector<2x256xf32>
    %c59 = arith.constant 59 : index
    %575 = memref.load %arg1[%c59] : memref<98xf32, #tpu.memory_space<smem>>
    %576 = vector.broadcast %575 : f32 to vector<2x256xf32>
    %577 = arith.mulf %547, %576 : vector<2x256xf32>
    %578 = arith.addf %574, %577 : vector<2x256xf32>
    %c255_i32_129 = arith.constant 255 : i32
    %579 = tpu.dynamic_rotate %547 by %c255_i32_129 dim 1 : vector<2x256xf32>, i32 -> vector<2x256xf32>
    %cst_130 = arith.constant 0.000000e+00 : f32
    %580 = vector.shape_cast %38 : vector<1x256xi1> to vector<1x256xi1>
    %581 = vector.broadcast %580 : vector<1x256xi1> to vector<2x256xi1>
    %582 = vector.broadcast %cst_130 : f32 to vector<2x256xf32>
    %583 = arith.select %581, %579, %582 : vector<2x256xi1>, vector<2x256xf32>
    %c60 = arith.constant 60 : index
    %584 = memref.load %arg1[%c60] : memref<98xf32, #tpu.memory_space<smem>>
    %585 = vector.broadcast %584 : f32 to vector<2x256xf32>
    %586 = arith.mulf %583, %585 : vector<2x256xf32>
    %587 = arith.addf %578, %586 : vector<2x256xf32>
    %c254_i32_131 = arith.constant 254 : i32
    %588 = tpu.dynamic_rotate %547 by %c254_i32_131 dim 1 : vector<2x256xf32>, i32 -> vector<2x256xf32>
    %cst_132 = arith.constant 0.000000e+00 : f32
    %589 = vector.shape_cast %40 : vector<1x256xi1> to vector<1x256xi1>
    %590 = vector.broadcast %589 : vector<1x256xi1> to vector<2x256xi1>
    %591 = vector.broadcast %cst_132 : f32 to vector<2x256xf32>
    %592 = arith.select %590, %588, %591 : vector<2x256xi1>, vector<2x256xf32>
    %c61 = arith.constant 61 : index
    %593 = memref.load %arg1[%c61] : memref<98xf32, #tpu.memory_space<smem>>
    %594 = vector.broadcast %593 : f32 to vector<2x256xf32>
    %595 = arith.mulf %592, %594 : vector<2x256xf32>
    %596 = arith.addf %587, %595 : vector<2x256xf32>
    %c253_i32_133 = arith.constant 253 : i32
    %597 = tpu.dynamic_rotate %547 by %c253_i32_133 dim 1 : vector<2x256xf32>, i32 -> vector<2x256xf32>
    %cst_134 = arith.constant 0.000000e+00 : f32
    %598 = vector.shape_cast %42 : vector<1x256xi1> to vector<1x256xi1>
    %599 = vector.broadcast %598 : vector<1x256xi1> to vector<2x256xi1>
    %600 = vector.broadcast %cst_134 : f32 to vector<2x256xf32>
    %601 = arith.select %599, %597, %600 : vector<2x256xi1>, vector<2x256xf32>
    %c62 = arith.constant 62 : index
    %602 = memref.load %arg1[%c62] : memref<98xf32, #tpu.memory_space<smem>>
    %603 = vector.broadcast %602 : f32 to vector<2x256xf32>
    %604 = arith.mulf %601, %603 : vector<2x256xf32>
    %605 = arith.addf %596, %604 : vector<2x256xf32>
    %c16_i32_135 = arith.constant 16 : i32
    %606 = tpu.dynamic_rotate %13 by %c16_i32_135 dim 1 : vector<2x256xf32>, i32 -> vector<2x256xf32>
    %cst_136 = arith.constant 0.000000e+00 : f32
    %607 = vector.shape_cast %24 : vector<1x256xi1> to vector<1x256xi1>
    %608 = vector.broadcast %607 : vector<1x256xi1> to vector<2x256xi1>
    %609 = vector.broadcast %cst_136 : f32 to vector<2x256xf32>
    %610 = arith.select %608, %606, %609 : vector<2x256xi1>, vector<2x256xf32>
    %c3_i32_137 = arith.constant 3 : i32
    %611 = tpu.dynamic_rotate %610 by %c3_i32_137 dim 1 : vector<2x256xf32>, i32 -> vector<2x256xf32>
    %cst_138 = arith.constant 0.000000e+00 : f32
    %612 = vector.shape_cast %32 : vector<1x256xi1> to vector<1x256xi1>
    %613 = vector.broadcast %612 : vector<1x256xi1> to vector<2x256xi1>
    %614 = vector.broadcast %cst_138 : f32 to vector<2x256xf32>
    %615 = arith.select %613, %611, %614 : vector<2x256xi1>, vector<2x256xf32>
    %c63 = arith.constant 63 : index
    %616 = memref.load %arg1[%c63] : memref<98xf32, #tpu.memory_space<smem>>
    %617 = vector.broadcast %616 : f32 to vector<2x256xf32>
    %618 = arith.mulf %615, %617 : vector<2x256xf32>
    %619 = arith.addf %605, %618 : vector<2x256xf32>
    %c2_i32_139 = arith.constant 2 : i32
    %620 = tpu.dynamic_rotate %610 by %c2_i32_139 dim 1 : vector<2x256xf32>, i32 -> vector<2x256xf32>
    %cst_140 = arith.constant 0.000000e+00 : f32
    %621 = vector.shape_cast %34 : vector<1x256xi1> to vector<1x256xi1>
    %622 = vector.broadcast %621 : vector<1x256xi1> to vector<2x256xi1>
    %623 = vector.broadcast %cst_140 : f32 to vector<2x256xf32>
    %624 = arith.select %622, %620, %623 : vector<2x256xi1>, vector<2x256xf32>
    %c64 = arith.constant 64 : index
    %625 = memref.load %arg1[%c64] : memref<98xf32, #tpu.memory_space<smem>>
    %626 = vector.broadcast %625 : f32 to vector<2x256xf32>
    %627 = arith.mulf %624, %626 : vector<2x256xf32>
    %628 = arith.addf %619, %627 : vector<2x256xf32>
    %c1_i32_141 = arith.constant 1 : i32
    %629 = tpu.dynamic_rotate %610 by %c1_i32_141 dim 1 : vector<2x256xf32>, i32 -> vector<2x256xf32>
    %cst_142 = arith.constant 0.000000e+00 : f32
    %630 = vector.shape_cast %36 : vector<1x256xi1> to vector<1x256xi1>
    %631 = vector.broadcast %630 : vector<1x256xi1> to vector<2x256xi1>
    %632 = vector.broadcast %cst_142 : f32 to vector<2x256xf32>
    %633 = arith.select %631, %629, %632 : vector<2x256xi1>, vector<2x256xf32>
    %c65 = arith.constant 65 : index
    %634 = memref.load %arg1[%c65] : memref<98xf32, #tpu.memory_space<smem>>
    %635 = vector.broadcast %634 : f32 to vector<2x256xf32>
    %636 = arith.mulf %633, %635 : vector<2x256xf32>
    %637 = arith.addf %628, %636 : vector<2x256xf32>
    %c66 = arith.constant 66 : index
    %638 = memref.load %arg1[%c66] : memref<98xf32, #tpu.memory_space<smem>>
    %639 = vector.broadcast %638 : f32 to vector<2x256xf32>
    %640 = arith.mulf %610, %639 : vector<2x256xf32>
    %641 = arith.addf %637, %640 : vector<2x256xf32>
    %c255_i32_143 = arith.constant 255 : i32
    %642 = tpu.dynamic_rotate %610 by %c255_i32_143 dim 1 : vector<2x256xf32>, i32 -> vector<2x256xf32>
    %cst_144 = arith.constant 0.000000e+00 : f32
    %643 = vector.shape_cast %38 : vector<1x256xi1> to vector<1x256xi1>
    %644 = vector.broadcast %643 : vector<1x256xi1> to vector<2x256xi1>
    %645 = vector.broadcast %cst_144 : f32 to vector<2x256xf32>
    %646 = arith.select %644, %642, %645 : vector<2x256xi1>, vector<2x256xf32>
    %c67 = arith.constant 67 : index
    %647 = memref.load %arg1[%c67] : memref<98xf32, #tpu.memory_space<smem>>
    %648 = vector.broadcast %647 : f32 to vector<2x256xf32>
    %649 = arith.mulf %646, %648 : vector<2x256xf32>
    %650 = arith.addf %641, %649 : vector<2x256xf32>
    %c254_i32_145 = arith.constant 254 : i32
    %651 = tpu.dynamic_rotate %610 by %c254_i32_145 dim 1 : vector<2x256xf32>, i32 -> vector<2x256xf32>
    %cst_146 = arith.constant 0.000000e+00 : f32
    %652 = vector.shape_cast %40 : vector<1x256xi1> to vector<1x256xi1>
    %653 = vector.broadcast %652 : vector<1x256xi1> to vector<2x256xi1>
    %654 = vector.broadcast %cst_146 : f32 to vector<2x256xf32>
    %655 = arith.select %653, %651, %654 : vector<2x256xi1>, vector<2x256xf32>
    %c68 = arith.constant 68 : index
    %656 = memref.load %arg1[%c68] : memref<98xf32, #tpu.memory_space<smem>>
    %657 = vector.broadcast %656 : f32 to vector<2x256xf32>
    %658 = arith.mulf %655, %657 : vector<2x256xf32>
    %659 = arith.addf %650, %658 : vector<2x256xf32>
    %c253_i32_147 = arith.constant 253 : i32
    %660 = tpu.dynamic_rotate %610 by %c253_i32_147 dim 1 : vector<2x256xf32>, i32 -> vector<2x256xf32>
    %cst_148 = arith.constant 0.000000e+00 : f32
    %661 = vector.shape_cast %42 : vector<1x256xi1> to vector<1x256xi1>
    %662 = vector.broadcast %661 : vector<1x256xi1> to vector<2x256xi1>
    %663 = vector.broadcast %cst_148 : f32 to vector<2x256xf32>
    %664 = arith.select %662, %660, %663 : vector<2x256xi1>, vector<2x256xf32>
    %c69 = arith.constant 69 : index
    %665 = memref.load %arg1[%c69] : memref<98xf32, #tpu.memory_space<smem>>
    %666 = vector.broadcast %665 : f32 to vector<2x256xf32>
    %667 = arith.mulf %664, %666 : vector<2x256xf32>
    %668 = arith.addf %659, %667 : vector<2x256xf32>
    %c3_i32_149 = arith.constant 3 : i32
    %669 = tpu.dynamic_rotate %13 by %c3_i32_149 dim 1 : vector<2x256xf32>, i32 -> vector<2x256xf32>
    %cst_150 = arith.constant 0.000000e+00 : f32
    %670 = vector.shape_cast %32 : vector<1x256xi1> to vector<1x256xi1>
    %671 = vector.broadcast %670 : vector<1x256xi1> to vector<2x256xi1>
    %672 = vector.broadcast %cst_150 : f32 to vector<2x256xf32>
    %673 = arith.select %671, %669, %672 : vector<2x256xi1>, vector<2x256xf32>
    %c70 = arith.constant 70 : index
    %674 = memref.load %arg1[%c70] : memref<98xf32, #tpu.memory_space<smem>>
    %675 = vector.broadcast %674 : f32 to vector<2x256xf32>
    %676 = arith.mulf %673, %675 : vector<2x256xf32>
    %677 = arith.addf %668, %676 : vector<2x256xf32>
    %c2_i32_151 = arith.constant 2 : i32
    %678 = tpu.dynamic_rotate %13 by %c2_i32_151 dim 1 : vector<2x256xf32>, i32 -> vector<2x256xf32>
    %cst_152 = arith.constant 0.000000e+00 : f32
    %679 = vector.shape_cast %34 : vector<1x256xi1> to vector<1x256xi1>
    %680 = vector.broadcast %679 : vector<1x256xi1> to vector<2x256xi1>
    %681 = vector.broadcast %cst_152 : f32 to vector<2x256xf32>
    %682 = arith.select %680, %678, %681 : vector<2x256xi1>, vector<2x256xf32>
    %c71 = arith.constant 71 : index
    %683 = memref.load %arg1[%c71] : memref<98xf32, #tpu.memory_space<smem>>
    %684 = vector.broadcast %683 : f32 to vector<2x256xf32>
    %685 = arith.mulf %682, %684 : vector<2x256xf32>
    %686 = arith.addf %677, %685 : vector<2x256xf32>
    %c1_i32_153 = arith.constant 1 : i32
    %687 = tpu.dynamic_rotate %13 by %c1_i32_153 dim 1 : vector<2x256xf32>, i32 -> vector<2x256xf32>
    %cst_154 = arith.constant 0.000000e+00 : f32
    %688 = vector.shape_cast %36 : vector<1x256xi1> to vector<1x256xi1>
    %689 = vector.broadcast %688 : vector<1x256xi1> to vector<2x256xi1>
    %690 = vector.broadcast %cst_154 : f32 to vector<2x256xf32>
    %691 = arith.select %689, %687, %690 : vector<2x256xi1>, vector<2x256xf32>
    %c72 = arith.constant 72 : index
    %692 = memref.load %arg1[%c72] : memref<98xf32, #tpu.memory_space<smem>>
    %693 = vector.broadcast %692 : f32 to vector<2x256xf32>
    %694 = arith.mulf %691, %693 : vector<2x256xf32>
    %695 = arith.addf %686, %694 : vector<2x256xf32>
    %c73 = arith.constant 73 : index
    %696 = memref.load %arg1[%c73] : memref<98xf32, #tpu.memory_space<smem>>
    %697 = vector.broadcast %696 : f32 to vector<2x256xf32>
    %698 = arith.mulf %13, %697 : vector<2x256xf32>
    %699 = arith.addf %695, %698 : vector<2x256xf32>
    %c255_i32_155 = arith.constant 255 : i32
    %700 = tpu.dynamic_rotate %13 by %c255_i32_155 dim 1 : vector<2x256xf32>, i32 -> vector<2x256xf32>
    %cst_156 = arith.constant 0.000000e+00 : f32
    %701 = vector.shape_cast %38 : vector<1x256xi1> to vector<1x256xi1>
    %702 = vector.broadcast %701 : vector<1x256xi1> to vector<2x256xi1>
    %703 = vector.broadcast %cst_156 : f32 to vector<2x256xf32>
    %704 = arith.select %702, %700, %703 : vector<2x256xi1>, vector<2x256xf32>
    %c74 = arith.constant 74 : index
    %705 = memref.load %arg1[%c74] : memref<98xf32, #tpu.memory_space<smem>>
    %706 = vector.broadcast %705 : f32 to vector<2x256xf32>
    %707 = arith.mulf %704, %706 : vector<2x256xf32>
    %708 = arith.addf %699, %707 : vector<2x256xf32>
    %c254_i32_157 = arith.constant 254 : i32
    %709 = tpu.dynamic_rotate %13 by %c254_i32_157 dim 1 : vector<2x256xf32>, i32 -> vector<2x256xf32>
    %cst_158 = arith.constant 0.000000e+00 : f32
    %710 = vector.shape_cast %40 : vector<1x256xi1> to vector<1x256xi1>
    %711 = vector.broadcast %710 : vector<1x256xi1> to vector<2x256xi1>
    %712 = vector.broadcast %cst_158 : f32 to vector<2x256xf32>
    %713 = arith.select %711, %709, %712 : vector<2x256xi1>, vector<2x256xf32>
    %c75 = arith.constant 75 : index
    %714 = memref.load %arg1[%c75] : memref<98xf32, #tpu.memory_space<smem>>
    %715 = vector.broadcast %714 : f32 to vector<2x256xf32>
    %716 = arith.mulf %713, %715 : vector<2x256xf32>
    %717 = arith.addf %708, %716 : vector<2x256xf32>
    %c253_i32_159 = arith.constant 253 : i32
    %718 = tpu.dynamic_rotate %13 by %c253_i32_159 dim 1 : vector<2x256xf32>, i32 -> vector<2x256xf32>
    %cst_160 = arith.constant 0.000000e+00 : f32
    %719 = vector.shape_cast %42 : vector<1x256xi1> to vector<1x256xi1>
    %720 = vector.broadcast %719 : vector<1x256xi1> to vector<2x256xi1>
    %721 = vector.broadcast %cst_160 : f32 to vector<2x256xf32>
    %722 = arith.select %720, %718, %721 : vector<2x256xi1>, vector<2x256xf32>
    %c76 = arith.constant 76 : index
    %723 = memref.load %arg1[%c76] : memref<98xf32, #tpu.memory_space<smem>>
    %724 = vector.broadcast %723 : f32 to vector<2x256xf32>
    %725 = arith.mulf %722, %724 : vector<2x256xf32>
    %726 = arith.addf %717, %725 : vector<2x256xf32>
    %c240_i32_161 = arith.constant 240 : i32
    %727 = tpu.dynamic_rotate %13 by %c240_i32_161 dim 1 : vector<2x256xf32>, i32 -> vector<2x256xf32>
    %cst_162 = arith.constant 0.000000e+00 : f32
    %728 = vector.shape_cast %26 : vector<1x256xi1> to vector<1x256xi1>
    %729 = vector.broadcast %728 : vector<1x256xi1> to vector<2x256xi1>
    %730 = vector.broadcast %cst_162 : f32 to vector<2x256xf32>
    %731 = arith.select %729, %727, %730 : vector<2x256xi1>, vector<2x256xf32>
    %c3_i32_163 = arith.constant 3 : i32
    %732 = tpu.dynamic_rotate %731 by %c3_i32_163 dim 1 : vector<2x256xf32>, i32 -> vector<2x256xf32>
    %cst_164 = arith.constant 0.000000e+00 : f32
    %733 = vector.shape_cast %32 : vector<1x256xi1> to vector<1x256xi1>
    %734 = vector.broadcast %733 : vector<1x256xi1> to vector<2x256xi1>
    %735 = vector.broadcast %cst_164 : f32 to vector<2x256xf32>
    %736 = arith.select %734, %732, %735 : vector<2x256xi1>, vector<2x256xf32>
    %c77 = arith.constant 77 : index
    %737 = memref.load %arg1[%c77] : memref<98xf32, #tpu.memory_space<smem>>
    %738 = vector.broadcast %737 : f32 to vector<2x256xf32>
    %739 = arith.mulf %736, %738 : vector<2x256xf32>
    %740 = arith.addf %726, %739 : vector<2x256xf32>
    %c2_i32_165 = arith.constant 2 : i32
    %741 = tpu.dynamic_rotate %731 by %c2_i32_165 dim 1 : vector<2x256xf32>, i32 -> vector<2x256xf32>
    %cst_166 = arith.constant 0.000000e+00 : f32
    %742 = vector.shape_cast %34 : vector<1x256xi1> to vector<1x256xi1>
    %743 = vector.broadcast %742 : vector<1x256xi1> to vector<2x256xi1>
    %744 = vector.broadcast %cst_166 : f32 to vector<2x256xf32>
    %745 = arith.select %743, %741, %744 : vector<2x256xi1>, vector<2x256xf32>
    %c78 = arith.constant 78 : index
    %746 = memref.load %arg1[%c78] : memref<98xf32, #tpu.memory_space<smem>>
    %747 = vector.broadcast %746 : f32 to vector<2x256xf32>
    %748 = arith.mulf %745, %747 : vector<2x256xf32>
    %749 = arith.addf %740, %748 : vector<2x256xf32>
    %c1_i32_167 = arith.constant 1 : i32
    %750 = tpu.dynamic_rotate %731 by %c1_i32_167 dim 1 : vector<2x256xf32>, i32 -> vector<2x256xf32>
    %cst_168 = arith.constant 0.000000e+00 : f32
    %751 = vector.shape_cast %36 : vector<1x256xi1> to vector<1x256xi1>
    %752 = vector.broadcast %751 : vector<1x256xi1> to vector<2x256xi1>
    %753 = vector.broadcast %cst_168 : f32 to vector<2x256xf32>
    %754 = arith.select %752, %750, %753 : vector<2x256xi1>, vector<2x256xf32>
    %c79 = arith.constant 79 : index
    %755 = memref.load %arg1[%c79] : memref<98xf32, #tpu.memory_space<smem>>
    %756 = vector.broadcast %755 : f32 to vector<2x256xf32>
    %757 = arith.mulf %754, %756 : vector<2x256xf32>
    %758 = arith.addf %749, %757 : vector<2x256xf32>
    %c80 = arith.constant 80 : index
    %759 = memref.load %arg1[%c80] : memref<98xf32, #tpu.memory_space<smem>>
    %760 = vector.broadcast %759 : f32 to vector<2x256xf32>
    %761 = arith.mulf %731, %760 : vector<2x256xf32>
    %762 = arith.addf %758, %761 : vector<2x256xf32>
    %c255_i32_169 = arith.constant 255 : i32
    %763 = tpu.dynamic_rotate %731 by %c255_i32_169 dim 1 : vector<2x256xf32>, i32 -> vector<2x256xf32>
    %cst_170 = arith.constant 0.000000e+00 : f32
    %764 = vector.shape_cast %38 : vector<1x256xi1> to vector<1x256xi1>
    %765 = vector.broadcast %764 : vector<1x256xi1> to vector<2x256xi1>
    %766 = vector.broadcast %cst_170 : f32 to vector<2x256xf32>
    %767 = arith.select %765, %763, %766 : vector<2x256xi1>, vector<2x256xf32>
    %c81 = arith.constant 81 : index
    %768 = memref.load %arg1[%c81] : memref<98xf32, #tpu.memory_space<smem>>
    %769 = vector.broadcast %768 : f32 to vector<2x256xf32>
    %770 = arith.mulf %767, %769 : vector<2x256xf32>
    %771 = arith.addf %762, %770 : vector<2x256xf32>
    %c254_i32_171 = arith.constant 254 : i32
    %772 = tpu.dynamic_rotate %731 by %c254_i32_171 dim 1 : vector<2x256xf32>, i32 -> vector<2x256xf32>
    %cst_172 = arith.constant 0.000000e+00 : f32
    %773 = vector.shape_cast %40 : vector<1x256xi1> to vector<1x256xi1>
    %774 = vector.broadcast %773 : vector<1x256xi1> to vector<2x256xi1>
    %775 = vector.broadcast %cst_172 : f32 to vector<2x256xf32>
    %776 = arith.select %774, %772, %775 : vector<2x256xi1>, vector<2x256xf32>
    %c82 = arith.constant 82 : index
    %777 = memref.load %arg1[%c82] : memref<98xf32, #tpu.memory_space<smem>>
    %778 = vector.broadcast %777 : f32 to vector<2x256xf32>
    %779 = arith.mulf %776, %778 : vector<2x256xf32>
    %780 = arith.addf %771, %779 : vector<2x256xf32>
    %c253_i32_173 = arith.constant 253 : i32
    %781 = tpu.dynamic_rotate %731 by %c253_i32_173 dim 1 : vector<2x256xf32>, i32 -> vector<2x256xf32>
    %cst_174 = arith.constant 0.000000e+00 : f32
    %782 = vector.shape_cast %42 : vector<1x256xi1> to vector<1x256xi1>
    %783 = vector.broadcast %782 : vector<1x256xi1> to vector<2x256xi1>
    %784 = vector.broadcast %cst_174 : f32 to vector<2x256xf32>
    %785 = arith.select %783, %781, %784 : vector<2x256xi1>, vector<2x256xf32>
    %c83 = arith.constant 83 : index
    %786 = memref.load %arg1[%c83] : memref<98xf32, #tpu.memory_space<smem>>
    %787 = vector.broadcast %786 : f32 to vector<2x256xf32>
    %788 = arith.mulf %785, %787 : vector<2x256xf32>
    %789 = arith.addf %780, %788 : vector<2x256xf32>
    %c224_i32_175 = arith.constant 224 : i32
    %790 = tpu.dynamic_rotate %13 by %c224_i32_175 dim 1 : vector<2x256xf32>, i32 -> vector<2x256xf32>
    %cst_176 = arith.constant 0.000000e+00 : f32
    %791 = vector.shape_cast %28 : vector<1x256xi1> to vector<1x256xi1>
    %792 = vector.broadcast %791 : vector<1x256xi1> to vector<2x256xi1>
    %793 = vector.broadcast %cst_176 : f32 to vector<2x256xf32>
    %794 = arith.select %792, %790, %793 : vector<2x256xi1>, vector<2x256xf32>
    %c3_i32_177 = arith.constant 3 : i32
    %795 = tpu.dynamic_rotate %794 by %c3_i32_177 dim 1 : vector<2x256xf32>, i32 -> vector<2x256xf32>
    %cst_178 = arith.constant 0.000000e+00 : f32
    %796 = vector.shape_cast %32 : vector<1x256xi1> to vector<1x256xi1>
    %797 = vector.broadcast %796 : vector<1x256xi1> to vector<2x256xi1>
    %798 = vector.broadcast %cst_178 : f32 to vector<2x256xf32>
    %799 = arith.select %797, %795, %798 : vector<2x256xi1>, vector<2x256xf32>
    %c84 = arith.constant 84 : index
    %800 = memref.load %arg1[%c84] : memref<98xf32, #tpu.memory_space<smem>>
    %801 = vector.broadcast %800 : f32 to vector<2x256xf32>
    %802 = arith.mulf %799, %801 : vector<2x256xf32>
    %803 = arith.addf %789, %802 : vector<2x256xf32>
    %c2_i32_179 = arith.constant 2 : i32
    %804 = tpu.dynamic_rotate %794 by %c2_i32_179 dim 1 : vector<2x256xf32>, i32 -> vector<2x256xf32>
    %cst_180 = arith.constant 0.000000e+00 : f32
    %805 = vector.shape_cast %34 : vector<1x256xi1> to vector<1x256xi1>
    %806 = vector.broadcast %805 : vector<1x256xi1> to vector<2x256xi1>
    %807 = vector.broadcast %cst_180 : f32 to vector<2x256xf32>
    %808 = arith.select %806, %804, %807 : vector<2x256xi1>, vector<2x256xf32>
    %c85 = arith.constant 85 : index
    %809 = memref.load %arg1[%c85] : memref<98xf32, #tpu.memory_space<smem>>
    %810 = vector.broadcast %809 : f32 to vector<2x256xf32>
    %811 = arith.mulf %808, %810 : vector<2x256xf32>
    %812 = arith.addf %803, %811 : vector<2x256xf32>
    %c1_i32_181 = arith.constant 1 : i32
    %813 = tpu.dynamic_rotate %794 by %c1_i32_181 dim 1 : vector<2x256xf32>, i32 -> vector<2x256xf32>
    %cst_182 = arith.constant 0.000000e+00 : f32
    %814 = vector.shape_cast %36 : vector<1x256xi1> to vector<1x256xi1>
    %815 = vector.broadcast %814 : vector<1x256xi1> to vector<2x256xi1>
    %816 = vector.broadcast %cst_182 : f32 to vector<2x256xf32>
    %817 = arith.select %815, %813, %816 : vector<2x256xi1>, vector<2x256xf32>
    %c86 = arith.constant 86 : index
    %818 = memref.load %arg1[%c86] : memref<98xf32, #tpu.memory_space<smem>>
    %819 = vector.broadcast %818 : f32 to vector<2x256xf32>
    %820 = arith.mulf %817, %819 : vector<2x256xf32>
    %821 = arith.addf %812, %820 : vector<2x256xf32>
    %c87 = arith.constant 87 : index
    %822 = memref.load %arg1[%c87] : memref<98xf32, #tpu.memory_space<smem>>
    %823 = vector.broadcast %822 : f32 to vector<2x256xf32>
    %824 = arith.mulf %794, %823 : vector<2x256xf32>
    %825 = arith.addf %821, %824 : vector<2x256xf32>
    %c255_i32_183 = arith.constant 255 : i32
    %826 = tpu.dynamic_rotate %794 by %c255_i32_183 dim 1 : vector<2x256xf32>, i32 -> vector<2x256xf32>
    %cst_184 = arith.constant 0.000000e+00 : f32
    %827 = vector.shape_cast %38 : vector<1x256xi1> to vector<1x256xi1>
    %828 = vector.broadcast %827 : vector<1x256xi1> to vector<2x256xi1>
    %829 = vector.broadcast %cst_184 : f32 to vector<2x256xf32>
    %830 = arith.select %828, %826, %829 : vector<2x256xi1>, vector<2x256xf32>
    %c88 = arith.constant 88 : index
    %831 = memref.load %arg1[%c88] : memref<98xf32, #tpu.memory_space<smem>>
    %832 = vector.broadcast %831 : f32 to vector<2x256xf32>
    %833 = arith.mulf %830, %832 : vector<2x256xf32>
    %834 = arith.addf %825, %833 : vector<2x256xf32>
    %c254_i32_185 = arith.constant 254 : i32
    %835 = tpu.dynamic_rotate %794 by %c254_i32_185 dim 1 : vector<2x256xf32>, i32 -> vector<2x256xf32>
    %cst_186 = arith.constant 0.000000e+00 : f32
    %836 = vector.shape_cast %40 : vector<1x256xi1> to vector<1x256xi1>
    %837 = vector.broadcast %836 : vector<1x256xi1> to vector<2x256xi1>
    %838 = vector.broadcast %cst_186 : f32 to vector<2x256xf32>
    %839 = arith.select %837, %835, %838 : vector<2x256xi1>, vector<2x256xf32>
    %c89 = arith.constant 89 : index
    %840 = memref.load %arg1[%c89] : memref<98xf32, #tpu.memory_space<smem>>
    %841 = vector.broadcast %840 : f32 to vector<2x256xf32>
    %842 = arith.mulf %839, %841 : vector<2x256xf32>
    %843 = arith.addf %834, %842 : vector<2x256xf32>
    %c253_i32_187 = arith.constant 253 : i32
    %844 = tpu.dynamic_rotate %794 by %c253_i32_187 dim 1 : vector<2x256xf32>, i32 -> vector<2x256xf32>
    %cst_188 = arith.constant 0.000000e+00 : f32
    %845 = vector.shape_cast %42 : vector<1x256xi1> to vector<1x256xi1>
    %846 = vector.broadcast %845 : vector<1x256xi1> to vector<2x256xi1>
    %847 = vector.broadcast %cst_188 : f32 to vector<2x256xf32>
    %848 = arith.select %846, %844, %847 : vector<2x256xi1>, vector<2x256xf32>
    %c90 = arith.constant 90 : index
    %849 = memref.load %arg1[%c90] : memref<98xf32, #tpu.memory_space<smem>>
    %850 = vector.broadcast %849 : f32 to vector<2x256xf32>
    %851 = arith.mulf %848, %850 : vector<2x256xf32>
    %852 = arith.addf %843, %851 : vector<2x256xf32>
    %c208_i32_189 = arith.constant 208 : i32
    %853 = tpu.dynamic_rotate %13 by %c208_i32_189 dim 1 : vector<2x256xf32>, i32 -> vector<2x256xf32>
    %cst_190 = arith.constant 0.000000e+00 : f32
    %854 = vector.shape_cast %30 : vector<1x256xi1> to vector<1x256xi1>
    %855 = vector.broadcast %854 : vector<1x256xi1> to vector<2x256xi1>
    %856 = vector.broadcast %cst_190 : f32 to vector<2x256xf32>
    %857 = arith.select %855, %853, %856 : vector<2x256xi1>, vector<2x256xf32>
    %c3_i32_191 = arith.constant 3 : i32
    %858 = tpu.dynamic_rotate %857 by %c3_i32_191 dim 1 : vector<2x256xf32>, i32 -> vector<2x256xf32>
    %cst_192 = arith.constant 0.000000e+00 : f32
    %859 = vector.shape_cast %32 : vector<1x256xi1> to vector<1x256xi1>
    %860 = vector.broadcast %859 : vector<1x256xi1> to vector<2x256xi1>
    %861 = vector.broadcast %cst_192 : f32 to vector<2x256xf32>
    %862 = arith.select %860, %858, %861 : vector<2x256xi1>, vector<2x256xf32>
    %c91 = arith.constant 91 : index
    %863 = memref.load %arg1[%c91] : memref<98xf32, #tpu.memory_space<smem>>
    %864 = vector.broadcast %863 : f32 to vector<2x256xf32>
    %865 = arith.mulf %862, %864 : vector<2x256xf32>
    %866 = arith.addf %852, %865 : vector<2x256xf32>
    %c2_i32_193 = arith.constant 2 : i32
    %867 = tpu.dynamic_rotate %857 by %c2_i32_193 dim 1 : vector<2x256xf32>, i32 -> vector<2x256xf32>
    %cst_194 = arith.constant 0.000000e+00 : f32
    %868 = vector.shape_cast %34 : vector<1x256xi1> to vector<1x256xi1>
    %869 = vector.broadcast %868 : vector<1x256xi1> to vector<2x256xi1>
    %870 = vector.broadcast %cst_194 : f32 to vector<2x256xf32>
    %871 = arith.select %869, %867, %870 : vector<2x256xi1>, vector<2x256xf32>
    %c92 = arith.constant 92 : index
    %872 = memref.load %arg1[%c92] : memref<98xf32, #tpu.memory_space<smem>>
    %873 = vector.broadcast %872 : f32 to vector<2x256xf32>
    %874 = arith.mulf %871, %873 : vector<2x256xf32>
    %875 = arith.addf %866, %874 : vector<2x256xf32>
    %c1_i32_195 = arith.constant 1 : i32
    %876 = tpu.dynamic_rotate %857 by %c1_i32_195 dim 1 : vector<2x256xf32>, i32 -> vector<2x256xf32>
    %cst_196 = arith.constant 0.000000e+00 : f32
    %877 = vector.shape_cast %36 : vector<1x256xi1> to vector<1x256xi1>
    %878 = vector.broadcast %877 : vector<1x256xi1> to vector<2x256xi1>
    %879 = vector.broadcast %cst_196 : f32 to vector<2x256xf32>
    %880 = arith.select %878, %876, %879 : vector<2x256xi1>, vector<2x256xf32>
    %c93 = arith.constant 93 : index
    %881 = memref.load %arg1[%c93] : memref<98xf32, #tpu.memory_space<smem>>
    %882 = vector.broadcast %881 : f32 to vector<2x256xf32>
    %883 = arith.mulf %880, %882 : vector<2x256xf32>
    %884 = arith.addf %875, %883 : vector<2x256xf32>
    %c94 = arith.constant 94 : index
    %885 = memref.load %arg1[%c94] : memref<98xf32, #tpu.memory_space<smem>>
    %886 = vector.broadcast %885 : f32 to vector<2x256xf32>
    %887 = arith.mulf %857, %886 : vector<2x256xf32>
    %888 = arith.addf %884, %887 : vector<2x256xf32>
    %c255_i32_197 = arith.constant 255 : i32
    %889 = tpu.dynamic_rotate %857 by %c255_i32_197 dim 1 : vector<2x256xf32>, i32 -> vector<2x256xf32>
    %cst_198 = arith.constant 0.000000e+00 : f32
    %890 = vector.shape_cast %38 : vector<1x256xi1> to vector<1x256xi1>
    %891 = vector.broadcast %890 : vector<1x256xi1> to vector<2x256xi1>
    %892 = vector.broadcast %cst_198 : f32 to vector<2x256xf32>
    %893 = arith.select %891, %889, %892 : vector<2x256xi1>, vector<2x256xf32>
    %c95 = arith.constant 95 : index
    %894 = memref.load %arg1[%c95] : memref<98xf32, #tpu.memory_space<smem>>
    %895 = vector.broadcast %894 : f32 to vector<2x256xf32>
    %896 = arith.mulf %893, %895 : vector<2x256xf32>
    %897 = arith.addf %888, %896 : vector<2x256xf32>
    %c254_i32_199 = arith.constant 254 : i32
    %898 = tpu.dynamic_rotate %857 by %c254_i32_199 dim 1 : vector<2x256xf32>, i32 -> vector<2x256xf32>
    %cst_200 = arith.constant 0.000000e+00 : f32
    %899 = vector.shape_cast %40 : vector<1x256xi1> to vector<1x256xi1>
    %900 = vector.broadcast %899 : vector<1x256xi1> to vector<2x256xi1>
    %901 = vector.broadcast %cst_200 : f32 to vector<2x256xf32>
    %902 = arith.select %900, %898, %901 : vector<2x256xi1>, vector<2x256xf32>
    %c96 = arith.constant 96 : index
    %903 = memref.load %arg1[%c96] : memref<98xf32, #tpu.memory_space<smem>>
    %904 = vector.broadcast %903 : f32 to vector<2x256xf32>
    %905 = arith.mulf %902, %904 : vector<2x256xf32>
    %906 = arith.addf %897, %905 : vector<2x256xf32>
    %c253_i32_201 = arith.constant 253 : i32
    %907 = tpu.dynamic_rotate %857 by %c253_i32_201 dim 1 : vector<2x256xf32>, i32 -> vector<2x256xf32>
    %cst_202 = arith.constant 0.000000e+00 : f32
    %908 = vector.shape_cast %42 : vector<1x256xi1> to vector<1x256xi1>
    %909 = vector.broadcast %908 : vector<1x256xi1> to vector<2x256xi1>
    %910 = vector.broadcast %cst_202 : f32 to vector<2x256xf32>
    %911 = arith.select %909, %907, %910 : vector<2x256xi1>, vector<2x256xf32>
    %c97 = arith.constant 97 : index
    %912 = memref.load %arg1[%c97] : memref<98xf32, #tpu.memory_space<smem>>
    %913 = vector.broadcast %912 : f32 to vector<2x256xf32>
    %914 = arith.mulf %911, %913 : vector<2x256xf32>
    %915 = arith.addf %906, %914 : vector<2x256xf32>
    %916 = arith.negf %915 : vector<2x256xf32>
    %917 = math.exp %916 : vector<2x256xf32>
    %cst_203 = arith.constant 1.000000e+00 : f32
    %918 = vector.broadcast %cst_203 : f32 to vector<2x256xf32>
    %919 = arith.addf %918, %917 : vector<2x256xf32>
    %920 = arith.divf %918, %919 : vector<2x256xf32>
    %c0_204 = arith.constant 0 : index
    %c0_205 = arith.constant 0 : index
    %c0_206 = arith.constant 0 : index
    %921 = vector.load %arg3[%c0_204, %c0_205, %c0_206] : memref<2x1x256xf32, #tpu.memory_space<vmem>>, vector<2x1x256xf32>
    %922 = vector.shape_cast %921 : vector<2x1x256xf32> to vector<2x256xf32>
    %923 = vector.shape_cast %920 : vector<2x256xf32> to vector<2x1x256xf32>
    tpu.vector_store %arg3[%c0_204, %c0_205, %c0_206], %923 {strides = array<i32>} : memref<2x1x256xf32, #tpu.memory_space<vmem>>, vector<2x1x256xf32>,
    return
  }
  func.func @transform_0(%arg0: i32) -> i32 {
    %c0_i32 = arith.constant 0 : i32
    %c0_i32_0 = arith.constant 0 : i32
    return %c0_i32 : i32
  }
  func.func @transform_1(%arg0: i32) -> (i32, i32, i32) {
    %c0_i32 = arith.constant 0 : i32
    %c0_i32_0 = arith.constant 0 : i32
    %c0_i32_1 = arith.constant 0 : i32
    return %arg0, %c0_i32, %c0_i32_0 : i32, i32, i32
  }
  func.func @transform_2(%arg0: i32) -> (i32, i32, i32) {
    %c0_i32 = arith.constant 0 : i32
    %c0_i32_0 = arith.constant 0 : i32
    %c0_i32_1 = arith.constant 0 : i32
    return %arg0, %c0_i32, %c0_i32_0 : i32, i32, i32
  }
}

</mosaic_0001>

<bundles_post_ra>
// kernel: tpu_custom_call.1
= control target key start
LH: loop header
LB: loop body
LE: loop exit
PB: predicated region body
PF: predicated region fallthrough
CT: control target
= control target key end

     0   :  { %7 = vsyncpa [#allocation5], 0  ;;  %s3615_s0 = inlined_call_operand.hbm [shape: f32[98], index: 0, kind: input, shape index: {}]   ;;  %s3616_s1 = inlined_call_operand.hbm [shape: f32[2,4,256], index: 1, kind: input, shape index: {}]   ;;  %s3617_s2 = inlined_call_operand.hbm [shape: f32[2,1,256], index: 2, kind: output, shape index: {}]  }
   0x1   :  { %8 = vsyncpa [#allocation3], 0 }
   0x2   :  { %9 = vsyncpa [#allocation4], 0  ;;  %s15_s11 = sshll.u32 %s3615_s0, 4  ;;  %s23_s14 = sshll.u32 %s3616_s1, 4  ;;  %s16_s11 = int_to_ptr.hbm [resolvable:$true] %s15_s11  ;;  %s24_s14 = int_to_ptr.hbm [resolvable:$true] %s23_s14 }
   0x3   :  { %s1977_s15 = smov [#allocation2]   ;;  %s1978_s16 = smov [#allocation6]  }
   0x4   :  { %18 = dma.hbm_to_smem %s16_s11, 16, %s1977_s15, [#allocation5]  }
   0x5   :  { %s25_s17 = sshll.u32 %s1978_s16, 4  ;;  %s1979_s18 = smov 128   ;;  %s26_s17 = int_to_ptr.vmem [resolvable:$true] %s25_s17 }
   0x6   :  { %s1980_s19 = smov 8  }
   0x7   :  { %31 = dma.hbm_to_vmem [thread:$0]  %s24_s14, 256, %s26_s17, [#allocation3], %s1979_s18, %s1979_s18, %s1980_s19  }
   0x8   :  { %1971 = dma.done.wait [#allocation5], 16  }
   0x9   :  { %1972 = vsyncadd [#allocation5], 4294967280 }
   0xa   :  { %1973 = dma.done.wait [#allocation3], 256  }
   0xb   :  { %1974 = vsyncadd [#allocation3], 4294967040 }
   0xc   :  { %40 = sfence }
   0xd   :  { %v41_v0 = vld [vmem:[#allocation6] ss:$4 sm:$0x3]  ;;  %v43_v1 = vld [vmem:[#allocation6 + $0x8] ss:$4 sm:$0x3]  ;;  %v70_v42 = vlaneseq }
   0xe   :  { %v45_v2 = vld [vmem:[#allocation6 + $0x1] ss:$4 sm:$0x3]  ;;  %v47_v3 = vld [vmem:[#allocation6 + $0x9] ss:$4 sm:$0x3] }
   0xf   :  { %v48_v4 = vadd.f32 %v45_v2, %v41_v0  ;;  %v49_v5 = vadd.f32 %v47_v3, %v43_v1  ;;  %v53_v6 = vld [vmem:[#allocation6 + $0x2] ss:$4 sm:$0x3]  ;;  %v55_v7 = vld [vmem:[#allocation6 + $0xa] ss:$4 sm:$0x3] }
  0x10   :  { %v61_v8 = vld [vmem:[#allocation6 + $0x3] ss:$4 sm:$0x3]  ;;  %v63_v9 = vld [vmem:[#allocation6 + $0xb] ss:$4 sm:$0x3] }
  0x11   :  { %v56_v10 = vadd.f32 %v53_v6, %v48_v4  ;;  %v57_v11 = vadd.f32 %v55_v7, %v49_v5  ;;  %s1981_s0 = smov 48   ;;  %s1982_s1 = smov 32   ;;  %v2069_v44 = vand.u32 127, %v70_v42 }
  0x12   :  { %s1983_s20 = smov 16   ;;  %s1984_s21 = smov 3  }
  0x13   :  { %v64_v12 = vadd.f32 %v61_v8, %v56_v10  ;;  %v65_v13 = vadd.f32 %v63_v9, %v57_v11  ;;  %s1802_s22 = sld [smem:[#allocation2 + $0x18]]  ;;  %s1985_s23 = smov 2   ;;  %vm3625_vm0 = vcmp.lt.s32.totalorder %v2069_v44, 48  ;;  %vm3624_vm1 = vcmp.ge.s32.totalorder %v2069_v44, 48 }
  0x14   :  { %s1986_s24 = smov 1   ;;  %s1987_s25 = smov 127   ;;  %vm3623_vm2 = vcmp.lt.s32.totalorder %v2069_v44, 32  ;;  %vm3622_vm3 = vcmp.ge.s32.totalorder %v2069_v44, 32  ;;  %vm3621_vm4 = vcmp.lt.s32.totalorder %v2069_v44, 16  ;;  %vm3620_vm5 = vcmp.ge.s32.totalorder %v2069_v44, 16 }
  0x15   :  { %v2015_v14 = vmul.f32 0.25, %v64_v12  ;;  %v2017_v15 = vmul.f32 0.25, %v65_v13  ;;  %s1988_s26 = smov 126   ;;  %s1989_s27 = smov 125   ;;  %vm3619_vm6 = vcmp.lt.s32.totalorder %v2069_v44, 112  ;;  %vm125_vm8 = vcmp.lt.s32.totalorder %v2069_v44, 3 }
  0x16   :  { %s1990_s28 = smov 112   ;;  %s1991_s29 = smov 96   ;;  %vm3630_vm9 = vcmp.lt.s32.totalorder %v2069_v44, 2  ;;  %vm3631_vm14 = vcmp.lt.s32.totalorder %v2069_v44, 1 }
  0x17   :  { %101 = vst [vmem:[#allocation1] ss:$9 sm:$0xff] %v2015_v14  ;;  %s1992_s30 = smov 80   ;;  %s2263_s3 = sld [smem:[#allocation2]] }
  0x18   :  { %103 = vst [vmem:[#allocation1 + $0x1] ss:$9 sm:$0xff] %v2017_v15  ;;  %s2269_s4 = sld [smem:[#allocation2 + $0x1]] }
  0x19   :  { %v525_v26 = vstv %s1802_s22  ;;  %s2283_s5 = sld [smem:[#allocation2 + $0x2]] }
  0x1a   :  { %v526_v27 = vmul.f32 %v525_v26, %v2015_v14  ;;  %v527_v28 = vmul.f32 %v525_v26, %v2017_v15  ;;  %s2298_s6 = sld [smem:[#allocation2 + $0x3]] }
  0x1b   :  { %s2316_s7 = sld [smem:[#allocation2 + $0x4]] }
  0x1c   :  { %s2323_s8 = sld [smem:[#allocation2 + $0x5]] }
  0x1d   :  { %s2340_s9 = sld [smem:[#allocation2 + $0x6]] }
  0x1e   :  { %s2342_s10 = sld [smem:[#allocation2 + $0xa]] }
  0x1f   :  { %v104_v16 = vld [vmem:[#allocation1] sm:$0xff]  ;;  %v105_v17 = vld [vmem:[#allocation1 + $0x9] sm:$0xff]  ;;  %s2357_s11 = sld [smem:[#allocation2 + $0x9]] }
  0x20   :  { %108 = vrot.lane.b32.xlu0 %v104_v16, %s1981_s0  ;;  %241 = vst [vmem:[#allocation1] ss:$9 sm:$0xff] %v2015_v14  ;;  %v2224_v16 = vadd.s32 128, %v2069_v44  ;;  %s2361_s12 = sld [smem:[#allocation2 + $0x8]] }
  0x21   :  { %243 = vst [vmem:[#allocation1 + $0x1] ss:$9 sm:$0xff] %v2017_v15  ;;  %s2369_s13 = sld [smem:[#allocation2 + $0x7]] }
  0x22   :  { %vm3618_vm7 = vcmp.lt.s32.totalorder %v2224_v16, 240  ;;  %s2398_s14 = sld [smem:[#allocation2 + $0xc]] }
  0x23   :  { %s2408_s15 = sld [smem:[#allocation2 + $0xb]] }
  0x24   :  { %s2436_s16 = sld [smem:[#allocation2 + $0xd]] }
  0x25   :  { %s2443_s17 = sld [smem:[#allocation2 + $0xf]] }
  0x26   :  { %s2454_s18 = sld [smem:[#allocation2 + $0xe]] }
  0x27   :  { %s1795_s19 = sld [smem:[#allocation2 + $0x11]] }
  0x28   :  { %110 = vrot.lane.b32.xlu0 %v105_v17, %s1981_s0  ;;  %v245_v18 = vld [vmem:[#allocation1 + $0x9] sm:$0xff]  ;;  %v244_v19 = vld [vmem:[#allocation1] sm:$0xff]  ;;  %s2493_s22 = sld [smem:[#allocation2 + $0x15]] }
  0x29   :  { %248 = vrot.lane.b32.xlu2 %v244_v19, %s1982_s1  ;;  %351 = vst [vmem:[#allocation1] ss:$9 sm:$0xff] %v2015_v14 }
  0x2a   :  { %353 = vst [vmem:[#allocation1 + $0x1] ss:$9 sm:$0xff] %v2017_v15 }
  0x30   :  { %250 = vrot.lane.b32.xlu0 %v245_v18, %s1982_s1 }
  0x31   :  { %v354_v20 = vld [vmem:[#allocation1] sm:$0xff]  ;;  %v355_v21 = vld [vmem:[#allocation1 + $0x9] sm:$0xff] }
  0x32   :  { %358 = vrot.lane.b32.xlu1 %v354_v20, %s1983_s20  ;;  %461 = vst [vmem:[#allocation1] ss:$9 sm:$0xff] %v2015_v14  ;;  %360 = vrot.lane.b32.xlu2 %v355_v21, %s1983_s20 }
  0x33   :  { %463 = vst [vmem:[#allocation1 + $0x1] ss:$9 sm:$0xff] %v2017_v15 }
  0x3a   :  { %v465_v22 = vld [vmem:[#allocation1 + $0x9] sm:$0xff]  ;;  %v464_v23 = vld [vmem:[#allocation1] sm:$0xff] }
  0x3b   :  { %470 = vrot.lane.b32.xlu1 %v465_v22, %s1984_s21  ;;  %468 = vrot.lane.b32.xlu0 %v464_v23, %s1984_s21  ;;  %482 = vst [vmem:[#allocation1] ss:$9 sm:$0xff] %v2015_v14 }
  0x3c   :  { %484 = vst [vmem:[#allocation1 + $0x1] ss:$9 sm:$0xff] %v2017_v15 }
  0x43   :  { %v486_v24 = vld [vmem:[#allocation1 + $0x9] sm:$0xff]  ;;  %v485_v25 = vld [vmem:[#allocation1] sm:$0xff] }
  0x44   :  { %491 = vrot.lane.b32.xlu0 %v486_v24, %s1985_s23  ;;  %503 = vst [vmem:[#allocation1] ss:$9 sm:$0xff] %v2015_v14  ;;  %489 = vrot.lane.b32.xlu2 %v485_v25, %s1985_s23 }
  0x45   :  { %505 = vst [vmem:[#allocation1 + $0x1] ss:$9 sm:$0xff] %v2017_v15 }
  0x4c   :  { %v506_v29 = vld [vmem:[#allocation1] sm:$0xff]  ;;  %v507_v30 = vld [vmem:[#allocation1 + $0x9] sm:$0xff] }
  0x4d   :  { %510 = vrot.lane.b32.xlu1 %v506_v29, %s1986_s24  ;;  %530 = vst [vmem:[#allocation1] ss:$9 sm:$0xff] %v526_v27  ;;  %512 = vrot.lane.b32.xlu2 %v507_v30, %s1986_s24 }
  0x4e   :  { %532 = vst [vmem:[#allocation1 + $0x1] ss:$9 sm:$0xff] %v527_v28 }
  0x55   :  { %v2045_v31 = vld [vmem:[#allocation1] sm:$0xff]  ;;  %v2047_v32 = vld [vmem:[#allocation1 + $0x9] sm:$0xff] }
  0x56   :  { %539 = vst [vmem:[#allocation1] ss:$9 sm:$0xff] %v2015_v14 }
  0x57   :  { %541 = vst [vmem:[#allocation1 + $0x1] ss:$9 sm:$0xff] %v2017_v15 }
  0x5e   :  { %v543_v33 = vld [vmem:[#allocation1 + $0x9] sm:$0xff]  ;;  %v542_v34 = vld [vmem:[#allocation1] sm:$0xff] }
  0x5f   :  { %548 = vrot.lane.b32.xlu1 %v543_v33, %s1987_s25  ;;  %546 = vrot.lane.b32.xlu0 %v542_v34, %s1987_s25  ;;  %560 = vst [vmem:[#allocation1] ss:$9 sm:$0xff] %v2015_v14  ;;  %v2272_v34 = vand.u32 15, %v2069_v44 }
  0x60   :  { %562 = vst [vmem:[#allocation1 + $0x1] ss:$9 sm:$0xff] %v2017_v15 }
  0x61   :  { %vm87_vm10 = vcmp.ge.s32.totalorder %v2272_v34, 3  ;;  %vm89_vm12 = vcmp.ge.s32.totalorder %v2272_v34, 2  ;;  %vm91_vm15 = vcmp.ge.s32.totalorder %v2272_v34, 1 }
  0x67   :  { %v564_v35 = vld [vmem:[#allocation1 + $0x9] sm:$0xff]  ;;  %v563_v36 = vld [vmem:[#allocation1] sm:$0xff] }
  0x68   :  { %569 = vrot.lane.b32.xlu0 %v564_v35, %s1988_s26  ;;  %581 = vst [vmem:[#allocation1] ss:$9 sm:$0xff] %v2015_v14  ;;  %567 = vrot.lane.b32.xlu2 %v563_v36, %s1988_s26  ;;  %v2275_v35 = vand.u32 15, %v2224_v16 }
  0x69   :  { %583 = vst [vmem:[#allocation1 + $0x1] ss:$9 sm:$0xff] %v2017_v15 }
  0x6a   :  { %vm88_vm11 = vcmp.ge.s32.totalorder %v2275_v35, 3  ;;  %vm90_vm13 = vcmp.ge.s32.totalorder %v2275_v35, 2 }
  0x70   :  { %v584_v37 = vld [vmem:[#allocation1] sm:$0xff]  ;;  %v585_v38 = vld [vmem:[#allocation1 + $0x9] sm:$0xff] }
  0x71   :  { %588 = vrot.lane.b32.xlu1 %v584_v37, %s1989_s27  ;;  %602 = vst [vmem:[#allocation1] ss:$9 sm:$0xff] %v2015_v14  ;;  %590 = vrot.lane.b32.xlu2 %v585_v38, %s1989_s27 }
  0x72   :  { %604 = vst [vmem:[#allocation1 + $0x1] ss:$9 sm:$0xff] %v2017_v15 }
  0x79   :  { %v606_v39 = vld [vmem:[#allocation1 + $0x9] sm:$0xff]  ;;  %v605_v40 = vld [vmem:[#allocation1] sm:$0xff] }
  0x7a   :  { %611 = vrot.lane.b32.xlu1 %v606_v39, %s1990_s28  ;;  %609 = vrot.lane.b32.xlu0 %v605_v40, %s1990_s28  ;;  %712 = vst [vmem:[#allocation1] ss:$9 sm:$0xff] %v2015_v14  ;;  %v135_v40 = vstv %s2263_s3  ;;  %s2497_s3 = sld [smem:[#allocation2 + $0x10]] }
  0x7b   :  { %714 = vst [vmem:[#allocation1 + $0x1] ss:$9 sm:$0xff] %v2017_v15 }
  0x82   :  { %v715_v41 = vld [vmem:[#allocation1] sm:$0xff]  ;;  %v716_v61 = vld [vmem:[#allocation1 + $0x9] sm:$0xff] }
  0x83   :  { %719 = vrot.lane.b32.xlu2 %v715_v41, %s1991_s29  ;;  %v249_v50 = vpop.permute.xlu2 %248  ;;  %822 = vst [vmem:[#allocation1] ss:$9 sm:$0xff] %v2015_v14 }
  0x84   :  { %824 = vst [vmem:[#allocation1 + $0x1] ss:$9 sm:$0xff] %v2017_v15 }
  0x8b   :  { %v826_v13 = vld [vmem:[#allocation1 + $0x9] sm:$0xff]  ;;  %v825_v15 = vld [vmem:[#allocation1] sm:$0xff] }
  0x8c   :  { %v361_v52 = vpop.permute.xlu2 %360 }
  0x92   :  { %v109_v43 = vpop.permute.xlu0 %108 }
  0x9a   :  { %v111_v45 = vpop.permute.xlu0 %110 }
  0x9b   :  { %v2074_v46 = vsel %vm3625_vm0, %v109_v43, %v111_v45  ;;  %v114_v47 = vsel %vm3625_vm0, %v111_v45, %v109_v43  ;;  %vm3628_vm0 = vcmp.lt.s32.totalorder %v2069_v44, 125 }
  0x9c   :  { %123 = vrot.lane.b32.xlu1 %v2074_v46, %s1984_s21  ;;  %186 = vrot.lane.b32.xlu0 %v2074_v46, %s1987_s25  ;;  %v2087_v48 = vsel %vm3624_vm1, %v114_v47, 0.0  ;;  %vm3629_vm1 = vcmp.lt.s32.totalorder %v2275_v35, 14 }
  0x9d   :  { %142 = vrot.lane.b32.xlu2 %v2074_v46, %s1985_s23 }
  0x9e   :  { %v2131_v56 = vpop.permute.xlu2 %489 }
  0xa2   :  { %v251_v49 = vpop.permute.xlu0 %250 }
  0xa3   :  { %v2104_v51 = vsel %vm3623_vm2, %v249_v50, %v251_v49  ;;  %v254_v53 = vsel %vm3623_vm2, %v251_v49, %v249_v50  ;;  %v154_v50 = vstv %s2269_s4  ;;  %vm95_vm2 = vcmp.lt.s32.totalorder %v2272_v34, 14  ;;  %s2499_s4 = sld [smem:[#allocation2 + $0x16]] }
  0xa4   :  { %161 = vrot.lane.b32.xlu1 %v2074_v46, %s1986_s24  ;;  %159 = vrot.lane.b32.xlu0 %v2087_v48, %s1986_s24  ;;  %v2123_v54 = vsel %vm3622_vm3, %v254_v53, 0.0  ;;  %v359_v55 = vpop.permute.xlu1 %358  ;;  %vm3626_vm3 = vcmp.lt.s32.totalorder %v2275_v35, 15 }
  0xa5   :  { %205 = vrot.lane.b32.xlu2 %v2074_v46, %s1988_s26  ;;  %v2148_v60 = vsel %vm3621_vm4, %v359_v55, %v361_v52  ;;  %v364_v1 = vsel %vm3621_vm4, %v361_v52, %v359_v55  ;;  %vm3627_vm4 = vcmp.lt.s32.totalorder %v2272_v34, 15 }
  0xa6   :  { %v2179_v4 = vsel %vm3620_vm5, %v364_v1, 0.0  ;;  %vm207_vm5 = vcmp.lt.s32.totalorder %v2069_v44, 126 }
  0xa7   :  { %v2144_v59 = vpop.permute.xlu2 %512 }
  0xac   :  { %224 = vrot.lane.b32.xlu1 %v2074_v46, %s1989_s27  ;;  %222 = vrot.lane.b32.xlu0 %v2087_v48, %s1989_s27 }
  0xad   :  { %140 = vrot.lane.b32.xlu2 %v2087_v48, %s1985_s23  ;;  %v2140_v57 = vpop.permute.xlu1 %470  ;;  %v2142_v58 = vpop.permute.xlu0 %468 }
  0xb4   :  { %121 = vrot.lane.b32.xlu1 %v2087_v48, %s1984_s21  ;;  %291 = vrot.lane.b32.xlu0 %v2104_v51, %s1986_s24 }
  0xb5   :  { %184 = vrot.lane.b32.xlu2 %v2087_v48, %s1987_s25 }
  0xb6   :  { %v2158_v62 = vpop.permute.xlu0 %491 }
  0xbc   :  { %203 = vrot.lane.b32.xlu1 %v2087_v48, %s1988_s26  ;;  %339 = vrot.lane.b32.xlu0 %v2104_v51, %s1989_s27 }
  0xbd   :  { %263 = vrot.lane.b32.xlu2 %v2104_v51, %s1984_s21 }
  0xbf   :  { %v2160_v63 = vpop.permute.xlu1 %510 }
  0xc2   :  { %v2162_v0 = vpop.permute.xlu2 %567 }
  0xc4   :  { %277 = vrot.lane.b32.xlu1 %v2104_v51, %s1985_s23  ;;  %275 = vrot.lane.b32.xlu0 %v2123_v54, %s1985_s23 }
  0xc5   :  { %311 = vrot.lane.b32.xlu2 %v2104_v51, %s1987_s25 }
  0xcb   :  { %v2181_v5 = vpop.permute.xlu2 %590 }
  0xcc   :  { %325 = vrot.lane.b32.xlu1 %v2104_v51, %s1988_s26  ;;  %323 = vrot.lane.b32.xlu0 %v2123_v54, %s1988_s26 }
  0xcd   :  { %289 = vrot.lane.b32.xlu2 %v2123_v54, %s1986_s24 }
  0xd1   :  { %v2173_v2 = vpop.permute.xlu1 %548  ;;  %v2175_v3 = vpop.permute.xlu0 %546 }
  0xd4   :  { %261 = vrot.lane.b32.xlu1 %v2123_v54, %s1984_s21  ;;  %387 = vrot.lane.b32.xlu0 %v2148_v60, %s1985_s23 }
  0xd5   :  { %337 = vrot.lane.b32.xlu2 %v2123_v54, %s1989_s27 }
  0xda   :  { %v2193_v6 = vpop.permute.xlu0 %569 }
  0xdc   :  { %309 = vrot.lane.b32.xlu1 %v2123_v54, %s1987_s25  ;;  %435 = vrot.lane.b32.xlu0 %v2148_v60, %s1988_s26 }
  0xdd   :  { %401 = vrot.lane.b32.xlu2 %v2148_v60, %s1986_s24  ;;  %v2199_v8 = vpop.permute.xlu2 %719 }
  0xe3   :  { %v2195_v7 = vpop.permute.xlu1 %588 }
  0xe4   :  { %373 = vrot.lane.b32.xlu1 %v2148_v60, %s1984_s21  ;;  %371 = vrot.lane.b32.xlu0 %v2179_v4, %s1984_s21 }
  0xe5   :  { %449 = vrot.lane.b32.xlu2 %v2148_v60, %s1989_s27 }
  0xec   :  { %421 = vrot.lane.b32.xlu1 %v2148_v60, %s1987_s25  ;;  %419 = vrot.lane.b32.xlu0 %v2179_v4, %s1987_s25  ;;  %v612_v9 = vpop.permute.xlu1 %611  ;;  %v610_v10 = vpop.permute.xlu0 %609 }
  0xed   :  { %385 = vrot.lane.b32.xlu2 %v2179_v4, %s1985_s23  ;;  %v2209_v12 = vsel %vm3619_vm6, %v610_v10, %v612_v9  ;;  %v615_v18 = vsel %vm3619_vm6, %v612_v9, %v610_v10  ;;  %vm188_vm6 = vcmp.lt.s32.totalorder %v2069_v44, 127 }
  0xee   :  { %v2231_v19 = vsel %vm3618_vm7, %v615_v18, 0.0  ;;  %vm3633_vm7 = vcmp.ge.s32.totalorder %v2275_v35, 1 }
  0xf4   :  { %399 = vrot.lane.b32.xlu1 %v2179_v4, %s1986_s24  ;;  %721 = vrot.lane.b32.xlu0 %v716_v61, %s1991_s29 }
  0xf5   :  { %433 = vrot.lane.b32.xlu2 %v2179_v4, %s1988_s26 }
  0xf7   :  { %v143_v11 = vpop.permute.xlu2 %142 }
  0xfc   :  { %447 = vrot.lane.b32.xlu1 %v2179_v4, %s1989_s27  ;;  %650 = vrot.lane.b32.xlu0 %v2209_v12, %s1986_s24 }
  0xfd   :  { %831 = vrot.lane.b32.xlu2 %v826_v13, %s1992_s30  ;;  %v173_v13 = vstv %s2283_s5  ;;  %s2505_s5 = sld [smem:[#allocation2 + $0x13]] }
  0xff   :  { %v2216_v14 = vpop.permute.xlu2 %205 }
 0x104   :  { %698 = vrot.lane.b32.xlu0 %v2209_v12, %s1989_s27  ;;  %829 = vrot.lane.b32.xlu1 %v825_v15, %s1992_s30 }
 0x105   :  { %622 = vrot.lane.b32.xlu2 %v2209_v12, %s1984_s21 }
 0x107   :  { %v141_v17 = vpop.permute.xlu2 %140 }
 0x108   :  { %v145_v38 = vsel %vm3630_vm9, %v141_v17, %v143_v11  ;;  %v146_v39 = vsel %vm3630_vm9, %v143_v11, %v141_v17 }
 0x109   :  { %v151_v52 = vsel %vm89_vm12, %v146_v39, 0.0  ;;  %v152_v53 = vsel %vm90_vm13, %v145_v38, 0.0 }
 0x10a   :  { %v155_v10 = vmul.f32 %v154_v50, %v151_v52  ;;  %v156_v11 = vmul.f32 %v154_v50, %v152_v53 }
 0x10c   :  { %624 = vrot.lane.b32.xlu0 %v2231_v19, %s1984_s21  ;;  %636 = vrot.lane.b32.xlu1 %v2209_v12, %s1985_s23 }
 0x10d   :  { %670 = vrot.lane.b32.xlu2 %v2209_v12, %s1987_s25 }
 0x10e   :  { %v124_v20 = vpop.permute.xlu1 %123  ;;  %v2239_v21 = vpop.permute.xlu0 %186 }
 0x10f   :  { %v2241_v22 = vpop.permute.xlu2 %184 }
 0x110   :  { %v189_v39 = vsel %vm188_vm6, %v2241_v22, %v2239_v21 }
 0x114   :  { %672 = vrot.lane.b32.xlu0 %v2231_v19, %s1987_s25  ;;  %684 = vrot.lane.b32.xlu1 %v2209_v12, %s1988_s26 }
 0x115   :  { %638 = vrot.lane.b32.xlu2 %v2231_v19, %s1985_s23 }
 0x116   :  { %v162_v23 = vpop.permute.xlu1 %161  ;;  %v160_v24 = vpop.permute.xlu0 %159 }
 0x117   :  { %v2249_v25 = vpop.permute.xlu2 %263  ;;  %v164_v55 = vsel %vm3631_vm14, %v160_v24, %v162_v23  ;;  %v165_v61 = vsel %vm3631_vm14, %v162_v23, %v160_v24 }
 0x118   :  { %v170_v15 = vsel %vm91_vm15, %v165_v61, 0.0  ;;  %v171_v17 = vsel %vm3633_vm7, %v164_v55, 0.0 }
 0x11c   :  { %652 = vrot.lane.b32.xlu1 %v2231_v19, %s1986_s24 }
 0x11d   :  { %686 = vrot.lane.b32.xlu2 %v2231_v19, %s1988_s26 }
 0x11e   :  { %v2255_v26 = vpop.permute.xlu1 %224  ;;  %v2257_v27 = vpop.permute.xlu0 %222 }
 0x11f   :  { %v2259_v28 = vpop.permute.xlu2 %311 }
 0x124   :  { %700 = vrot.lane.b32.xlu1 %v2231_v19, %s1989_s27 }
 0x126   :  { %v122_v29 = vpop.permute.xlu1 %121  ;;  %v2265_v30 = vpop.permute.xlu0 %291 }
 0x127   :  { %v2267_v33 = vpop.permute.xlu2 %289  ;;  %v126_v36 = vsel %vm125_vm8, %v122_v29, %v124_v20  ;;  %v127_v37 = vsel %vm125_vm8, %v124_v20, %v122_v29  ;;  %v179_v29 = vstv %s2298_s6  ;;  %s2507_s6 = sld [smem:[#allocation2 + $0x12]] }
 0x128   :  { %v132_v41 = vsel %vm87_vm10, %v127_v37, 0.0  ;;  %v133_v43 = vsel %vm88_vm11, %v126_v36, 0.0  ;;  %v174_v36 = vmul.f32 %v173_v13, %v170_v15  ;;  %v175_v37 = vmul.f32 %v173_v13, %v171_v17 }
 0x129   :  { %v136_v1 = vmul.f32 %v135_v40, %v132_v41  ;;  %v137_v9 = vmul.f32 %v135_v40, %v133_v43  ;;  %v190_v40 = vsel %vm188_vm6, %v2239_v21, %v2241_v22  ;;  %v180_v50 = vmul.f32 %v179_v29, %v2087_v48 }
 0x12a   :  { %v181_v52 = vmul.f32 %v179_v29, %v2074_v46  ;;  %v198_v46 = vstv %s2316_s7  ;;  %v195_v22 = vsel %vm3627_vm4, %v189_v39, 0.0  ;;  %v196_v53 = vsel %vm3626_vm3, %v190_v40, 0.0  ;;  %s2517_s7 = sld [smem:[#allocation2 + $0x17]] }
 0x12b   :  { %v157_v18 = vadd.f32 %v155_v10, %v136_v1  ;;  %v158_v20 = vadd.f32 %v156_v11, %v137_v9  ;;  %v199_v11 = vmul.f32 %v198_v46, %v195_v22  ;;  %v200_v13 = vmul.f32 %v198_v46, %v196_v53 }
 0x12c   :  { %v227_v15 = vsel %vm3628_vm0, %v2257_v27, %v2255_v26  ;;  %vm97_vm3 = vcmp.lt.s32.totalorder %v2272_v34, 13  ;;  %vm98_vm4 = vcmp.lt.s32.totalorder %v2275_v35, 13  ;;  %v236_v39 = vstv %s2340_s9  ;;  %s2592_s9 = sld [smem:[#allocation2 + $0x19]] }
 0x12d   :  { %v176_v41 = vadd.f32 %v174_v36, %v157_v18  ;;  %v177_v43 = vadd.f32 %v175_v37, %v158_v20  ;;  %v228_v18 = vsel %vm3628_vm0, %v2255_v26, %v2257_v27  ;;  %v233_v40 = vsel %vm97_vm3, %v227_v15, 0.0 }
 0x12e   :  { %v204_v45 = vpop.permute.xlu1 %203  ;;  %v2296_v47 = vpop.permute.xlu0 %339  ;;  %v294_v26 = vsel %vm3631_vm14, %v2265_v30, %v2267_v33  ;;  %v304_v27 = vstv %s2342_s10  ;;  %v284_v22 = vstv %s2361_s12  ;;  %s2594_s10 = sld [smem:[#allocation2 + $0x1a]] }
 0x12f   :  { %v2302_v49 = vpop.permute.xlu2 %337  ;;  %v208_v21 = vsel %vm207_vm5, %v204_v45, %v2216_v14  ;;  %v209_v48 = vsel %vm207_vm5, %v2216_v14, %v204_v45  ;;  %v182_v55 = vadd.f32 %v180_v50, %v176_v41  ;;  %v183_v61 = vadd.f32 %v181_v52, %v177_v43  ;;  %s2644_s12 = sld [smem:[#allocation2 + $0x1c]] }
 0x130   :  { %v217_v14 = vstv %s2323_s8  ;;  %v214_v45 = vsel %vm95_vm2, %v208_v21, 0.0  ;;  %v215_v1 = vsel %vm3629_vm1, %v209_v48, 0.0  ;;  %v234_v41 = vsel %vm98_vm4, %v228_v18, 0.0  ;;  %s2530_s8 = sld [smem:[#allocation2 + $0x14]] }
 0x131   :  { %v201_v20 = vadd.f32 %v199_v11, %v182_v55  ;;  %v202_v29 = vadd.f32 %v200_v13, %v183_v61  ;;  %v218_v36 = vmul.f32 %v217_v14, %v214_v45  ;;  %v219_v37 = vmul.f32 %v217_v14, %v215_v1 }
 0x132   :  { %v298_v43 = vstv %s2357_s11  ;;  %v237_v21 = vmul.f32 %v236_v39, %v233_v40  ;;  %v238_v53 = vmul.f32 %v236_v39, %v234_v41  ;;  %v293_v55 = vsel %vm3631_vm14, %v2267_v33, %v2265_v30  ;;  %s2607_s11 = sld [smem:[#allocation2 + $0x1b]] }
 0x133   :  { %v220_v48 = vadd.f32 %v218_v36, %v201_v20  ;;  %v221_v46 = vadd.f32 %v219_v37, %v202_v29  ;;  %v295_v61 = vsel %vm91_vm15, %v294_v26, 0.0  ;;  %v270_v14 = vstv %s2369_s13  ;;  %s2662_s13 = sld [smem:[#allocation2 + $0x1d]] }
 0x135   :  { %v239_v29 = vadd.f32 %v237_v21, %v220_v48  ;;  %v240_v36 = vadd.f32 %v238_v53, %v221_v46  ;;  %v306_v21 = vmul.f32 %v304_v27, %v2104_v51  ;;  %v299_v48 = vmul.f32 %v298_v43, %v295_v61 }
 0x136   :  { %v278_v23 = vpop.permute.xlu1 %277  ;;  %v276_v24 = vpop.permute.xlu0 %275  ;;  %v332_v46 = vstv %s2398_s14  ;;  %s2722_s14 = sld [smem:[#allocation2 + $0x1f]] }
 0x137   :  { %v2326_v38 = vpop.permute.xlu2 %401  ;;  %v279_v50 = vsel %vm3630_vm9, %v276_v24, %v278_v23  ;;  %v280_v52 = vsel %vm3630_vm9, %v278_v23, %v276_v24 }
 0x138   :  { %v281_v23 = vsel %vm89_vm12, %v280_v52, 0.0  ;;  %v282_v24 = vsel %vm90_vm13, %v279_v50, 0.0 }
 0x139   :  { %v285_v40 = vmul.f32 %v284_v22, %v281_v23  ;;  %v286_v41 = vmul.f32 %v284_v22, %v282_v24  ;;  %v341_v22 = vsel %vm3628_vm0, %v2302_v49, %v2296_v47 }
 0x13e   :  { %v326_v9 = vpop.permute.xlu1 %325  ;;  %v324_v10 = vpop.permute.xlu0 %323 }
 0x13f   :  { %v2375_v17 = vpop.permute.xlu2 %449  ;;  %v327_v26 = vsel %vm207_vm5, %v324_v10, %v326_v9  ;;  %v328_v50 = vsel %vm207_vm5, %v326_v9, %v324_v10  ;;  %v318_v10 = vstv %s2408_s15  ;;  %s1808_s15 = sld [smem:[#allocation2 + $0x1e]] }
 0x140   :  { %v329_v51 = vsel %vm95_vm2, %v327_v26, 0.0  ;;  %v330_v9 = vsel %vm3629_vm1, %v328_v50, 0.0  ;;  %vm3638_vm1 = vcmp.lt.s32.totalorder %v2275_v35, 15  ;;  %v343_v26 = vsel %vm97_vm3, %v341_v22, 0.0 }
 0x146   :  { %v262_v45 = vpop.permute.xlu1 %261  ;;  %v388_v1 = vpop.permute.xlu0 %387 }
 0x147   :  { %v265_v11 = vsel %vm125_vm8, %v262_v45, %v2249_v25  ;;  %v266_v30 = vsel %vm125_vm8, %v2249_v25, %v262_v45  ;;  %v386_v33 = vpop.permute.xlu2 %385  ;;  %v296_v25 = vsel %vm3633_vm7, %v293_v55, 0.0 }
 0x148   :  { %v267_v13 = vsel %vm87_vm10, %v266_v30, 0.0  ;;  %v268_v15 = vsel %vm88_vm11, %v265_v11, 0.0  ;;  %v389_v18 = vsel %vm3630_vm9, %v386_v33, %v388_v1  ;;  %v390_v20 = vsel %vm3630_vm9, %v388_v1, %v386_v33 }
 0x149   :  { %v271_v37 = vmul.f32 %v270_v14, %v267_v13  ;;  %v272_v39 = vmul.f32 %v270_v14, %v268_v15  ;;  %v305_v1 = vmul.f32 %v304_v27, %v2123_v54  ;;  %v300_v53 = vmul.f32 %v298_v43, %v296_v25 }
 0x14a   :  { %v342_v54 = vsel %vm3628_vm0, %v2296_v47, %v2302_v49  ;;  %vm3637_vm0 = vcmp.lt.s32.totalorder %v2272_v34, 15  ;;  %v391_v22 = vsel %vm89_vm12, %v390_v20, 0.0 }
 0x14b   :  { %v273_v52 = vadd.f32 %v271_v37, %v239_v29  ;;  %v274_v45 = vadd.f32 %v272_v39, %v240_v36  ;;  %v333_v37 = vmul.f32 %v332_v46, %v329_v51  ;;  %v334_v39 = vmul.f32 %v332_v46, %v330_v9 }
 0x14c   :  { %v344_v50 = vsel %vm98_vm4, %v342_v54, 0.0  ;;  %v392_v54 = vsel %vm90_vm13, %v389_v18, 0.0 }
 0x14d   :  { %v287_v55 = vadd.f32 %v285_v40, %v273_v52  ;;  %v288_v14 = vadd.f32 %v286_v41, %v274_v45  ;;  %v346_v41 = vstv %s2436_s16  ;;  %s2743_s16 = sld [smem:[#allocation2 + $0x20]] }
 0x14e   :  { %v310_v27 = vpop.permute.xlu1 %309  ;;  %v436_v43 = vpop.permute.xlu0 %435 }
 0x14f   :  { %v301_v61 = vadd.f32 %v299_v48, %v287_v55  ;;  %v302_v23 = vadd.f32 %v300_v53, %v288_v14  ;;  %v313_v24 = vsel %vm188_vm6, %v310_v27, %v2259_v28  ;;  %v314_v47 = vsel %vm188_vm6, %v2259_v28, %v310_v27  ;;  %v434_v49 = vpop.permute.xlu2 %433 }
 0x150   :  { %v315_v11 = vsel %vm3637_vm0, %v313_v24, 0.0  ;;  %v316_v30 = vsel %vm3638_vm1, %v314_v47, 0.0  ;;  %v2468_v33 = vsel %vm207_vm5, %v434_v49, %v436_v43  ;;  %v2472_v13 = vsel %vm207_vm5, %v436_v43, %v434_v49 }
 0x151   :  { %v307_v15 = vadd.f32 %v305_v1, %v301_v61  ;;  %v308_v29 = vadd.f32 %v306_v21, %v302_v23  ;;  %v319_v28 = vmul.f32 %v318_v10, %v315_v11  ;;  %v320_v36 = vmul.f32 %v318_v10, %v316_v30 }
 0x152   :  { %v394_v48 = vstv %s2443_s17  ;;  %v380_v55 = vstv %s2454_s18  ;;  %v347_v21 = vmul.f32 %v346_v41, %v343_v26  ;;  %v348_v14 = vmul.f32 %v346_v41, %v344_v50  ;;  %s2747_s17 = sld [smem:[#allocation2 + $0x21]] }
 0x153   :  { %v321_v25 = vadd.f32 %v319_v28, %v307_v15  ;;  %v322_v40 = vadd.f32 %v320_v36, %v308_v29  ;;  %v395_v24 = vmul.f32 %v394_v48, %v391_v22  ;;  %v396_v47 = vmul.f32 %v394_v48, %v392_v54  ;;  %s2751_s18 = sld [smem:[#allocation2 + $0x22]] }
 0x154   :  { %vm3632_vm0 = vcmp.lt.s32.totalorder %v2069_v44, 96  ;;  %v477_v26 = vstv %s2493_s22  ;;  %v442_v22 = vstv %s2505_s5  ;;  %v428_v54 = vstv %s2507_s6  ;;  %s1815_s22 = sld [smem:[#allocation2 + $0x25]] }
 0x155   :  { %v335_v52 = vadd.f32 %v333_v37, %v321_v25  ;;  %v336_v45 = vadd.f32 %v334_v39, %v322_v40  ;;  %v414_v37 = vstv %s1795_s19  ;;  %v472_v39 = vsel %vm125_vm8, %v2142_v58, %v2140_v57  ;;  %s1813_s19 = sld [smem:[#allocation2 + $0x23]] }
 0x156   :  { %v374_v53 = vpop.permute.xlu1 %373  ;;  %v372_v1 = vpop.permute.xlu0 %371  ;;  %v473_v25 = vsel %vm125_vm8, %v2140_v57, %v2142_v58  ;;  %v415_v40 = vmul.f32 %v414_v37, %v2179_v4  ;;  %v416_v41 = vmul.f32 %v414_v37, %v2148_v60  ;;  %v498_v57 = vstv %s2499_s4  ;;  %s2825_s4 = sld [smem:[#allocation2 + $0x27]] }
 0x157   :  { %v375_v46 = vsel %vm125_vm8, %v372_v1, %v374_v53  ;;  %v376_v51 = vsel %vm125_vm8, %v374_v53, %v372_v1  ;;  %v349_v27 = vadd.f32 %v347_v21, %v335_v52  ;;  %v350_v43 = vadd.f32 %v348_v14, %v336_v45  ;;  %v2495_v18 = vpop.permute.xlu2 %831  ;;  %s2827_s5 = sld [smem:[#allocation2 + $0x29]] }
 0x158   :  { %v377_v9 = vsel %vm87_vm10, %v376_v51, 0.0  ;;  %v378_v10 = vsel %vm88_vm11, %v375_v46, 0.0  ;;  %v474_v50 = vsel %vm87_vm10, %v473_v25, 0.0  ;;  %v475_v52 = vsel %vm88_vm11, %v472_v39, 0.0  ;;  %s2833_s6 = sld [smem:[#allocation2 + $0x28]] }
 0x159   :  { %v381_v61 = vmul.f32 %v380_v55, %v377_v9  ;;  %v382_v23 = vmul.f32 %v380_v55, %v378_v10  ;;  %v408_v45 = vstv %s2497_s3  ;;  %v493_v55 = vsel %vm3630_vm9, %v2131_v56, %v2158_v62  ;;  %s1816_s3 = sld [smem:[#allocation2 + $0x26]] }
 0x15a   :  { %v494_v1 = vsel %vm3630_vm9, %v2158_v62, %v2131_v56  ;;  %v514_v56 = vsel %vm3631_vm14, %v2160_v63, %v2144_v59  ;;  %v515_v62 = vsel %vm3631_vm14, %v2144_v59, %v2160_v63  ;;  %vm3639_vm1 = vcmp.lt.s32.totalorder %v2272_v34, 15 }
 0x15b   :  { %v383_v49 = vadd.f32 %v381_v61, %v349_v27  ;;  %v384_v11 = vadd.f32 %v382_v23, %v350_v43  ;;  %vm3640_vm9 = vcmp.lt.s32.totalorder %v2275_v35, 15  ;;  %v439_v27 = vsel %vm95_vm2, %v2468_v33, 0.0 }
 0x15c   :  { %v495_v61 = vsel %vm89_vm12, %v494_v1, 0.0  ;;  %v496_v23 = vsel %vm90_vm13, %v493_v55, 0.0 }
 0x15d   :  { %v397_v20 = vadd.f32 %v395_v24, %v383_v49  ;;  %v398_v30 = vadd.f32 %v396_v47, %v384_v11  ;;  %v519_v24 = vstv %s2517_s7  ;;  %v516_v47 = vsel %vm91_vm15, %v515_v62, 0.0  ;;  %s2860_s7 = sld [smem:[#allocation2 + $0x2a]] }
 0x15e   :  { %v422_v15 = vpop.permute.xlu1 %421  ;;  %v420_v29 = vpop.permute.xlu0 %419  ;;  %v520_v1 = vmul.f32 %v519_v24, %v516_v47  ;;  %v551_v62 = vsel %vm188_vm6, %v2173_v2, %v2175_v3  ;;  %v597_v47 = vstv %s2607_s11  ;;  %s2887_s11 = sld [smem:[#allocation2 + $0x2e]] }
 0x15f   :  { %v423_v28 = vsel %vm188_vm6, %v420_v29, %v422_v15  ;;  %v424_v36 = vsel %vm188_vm6, %v422_v15, %v420_v29  ;;  %v2553_v21 = vpop.permute.xlu2 %622  ;;  %v456_v29 = vstv %s2530_s8  ;;  %s1821_s8 = sld [smem:[#allocation2 + $0x2b]] }
 0x160   :  { %v425_v9 = vsel %vm3639_vm1, %v423_v28, 0.0  ;;  %v426_v10 = vsel %vm3640_vm9, %v424_v36, 0.0  ;;  %vm3642_vm9 = vcmp.lt.s32.totalorder %v2069_v44, 125  ;;  %vm3636_vm1 = vcmp.lt.s32.totalorder %v2224_v16, 224 }
 0x161   :  { %v429_v33 = vmul.f32 %v428_v54, %v425_v9  ;;  %v430_v49 = vmul.f32 %v428_v54, %v426_v10  ;;  %v576_v9 = vstv %s2594_s10  ;;  %s1823_s10 = sld [smem:[#allocation2 + $0x2d]] }
 0x166   :  { %v400_v48 = vpop.permute.xlu1 %399  ;;  %v2528_v53 = vpop.permute.xlu0 %721 }
 0x167   :  { %v403_v58 = vsel %vm3631_vm14, %v400_v48, %v2326_v38  ;;  %v404_v60 = vsel %vm3631_vm14, %v2326_v38, %v400_v48  ;;  %v2543_v4 = vsel %vm3632_vm0, %v2199_v8, %v2528_v53  ;;  %vm3641_vm14 = vcmp.lt.s32.totalorder %v2275_v35, 14 }
 0x168   :  { %v405_v38 = vsel %vm91_vm15, %v404_v60, 0.0  ;;  %v406_v14 = vsel %vm3633_vm7, %v403_v58, 0.0  ;;  %746 = vrot.lane.b32.xlu0 %v2543_v4, %s1985_s23  ;;  %760 = vrot.lane.b32.xlu2 %v2543_v4, %s1986_s24  ;;  %v440_v59 = vsel %vm3641_vm14, %v2472_v13, 0.0  ;;  %vm3643_vm14 = vmmov %vm3642_vm9  ;;  %v725_v54 = vsel %vm3632_vm0, %v2528_v53, %v2199_v8 }
 0x169   :  { %v409_v46 = vmul.f32 %v408_v45, %v405_v38  ;;  %v410_v51 = vmul.f32 %v408_v45, %v406_v14  ;;  %732 = vrot.lane.b32.xlu1 %v2543_v4, %s1984_s21  ;;  %v444_v15 = vmul.f32 %v442_v22, %v440_v59  ;;  %v479_v45 = vmul.f32 %v477_v26, %v475_v52  ;;  %v2619_v14 = vpop.permute.xlu2 %670 }
 0x16a   :  { %v500_v52 = vmul.f32 %v498_v57, %v496_v23  ;;  %vm3646_vm0 = vcmp.lt.s32.totalorder %v2069_v44, 125 }
 0x16b   :  { %v411_v63 = vadd.f32 %v409_v46, %v397_v20  ;;  %v412_v43 = vadd.f32 %v410_v51, %v398_v30  ;;  %v517_v20 = vsel %vm3633_vm7, %v514_v56, 0.0  ;;  %v443_v30 = vmul.f32 %v442_v22, %v439_v27  ;;  %vm3647_vm7 = vmmov %vm3646_vm0 }
 0x16c   :  { %v521_v38 = vmul.f32 %v519_v24, %v517_v20  ;;  %v550_v56 = vsel %vm188_vm6, %v2175_v3, %v2173_v2  ;;  %v555_v22 = vstv %s2592_s9  ;;  %v572_v2 = vsel %vm207_vm5, %v2193_v6, %v2162_v0  ;;  %s1822_s9 = sld [smem:[#allocation2 + $0x2c]] }
 0x16d   :  { %v417_v13 = vadd.f32 %v415_v40, %v411_v63  ;;  %v418_v11 = vadd.f32 %v416_v41, %v412_v43  ;;  %v478_v41 = vmul.f32 %v477_v26, %v474_v50  ;;  %v499_v50 = vmul.f32 %v498_v57, %v495_v61 }
 0x16e   :  { %v448_v28 = vpop.permute.xlu1 %447  ;;  %v2599_v36 = vpop.permute.xlu0 %650  ;;  %v571_v57 = vsel %vm207_vm5, %v2162_v0, %v2193_v6  ;;  %v592_v8 = vsel %vm3646_vm0, %v2195_v7, %v2181_v5  ;;  %v593_v0 = vsel %vm3647_vm7, %v2181_v5, %v2195_v7  ;;  %v2668_v43 = vsel %vm3636_vm1, %v725_v54, 0.0 }
 0x16f   :  { %v431_v37 = vadd.f32 %v429_v33, %v417_v13  ;;  %v432_v39 = vadd.f32 %v430_v49, %v418_v11  ;;  %v451_v25 = vsel %vm3642_vm9, %v448_v28, %v2375_v17  ;;  %v452_v40 = vsel %vm3643_vm14, %v2375_v17, %v448_v28 }
 0x170   :  { %v453_v48 = vsel %vm97_vm3, %v451_v25, 0.0  ;;  %v454_v58 = vsel %vm98_vm4, %v452_v40, 0.0  ;;  %794 = vrot.lane.b32.xlu0 %v2543_v4, %s1988_s26  ;;  %808 = vrot.lane.b32.xlu2 %v2543_v4, %s1989_s27  ;;  %vm3644_vm9 = vcmp.lt.s32.totalorder %v2272_v34, 15  ;;  %vm3645_vm14 = vcmp.lt.s32.totalorder %v2275_v35, 15 }
 0x171   :  { %v445_v60 = vadd.f32 %v443_v30, %v431_v37  ;;  %v446_v55 = vadd.f32 %v444_v15, %v432_v39  ;;  %v457_v17 = vmul.f32 %v456_v29, %v453_v48  ;;  %v458_v26 = vmul.f32 %v456_v29, %v454_v58  ;;  %780 = vrot.lane.b32.xlu1 %v2543_v4, %s1987_s25  ;;  %v639_v39 = vpop.permute.xlu2 %638  ;;  %v1903_v25 = vld [vmem:[#allocation6] ss:$4 sm:$0x3]  ;;  %v1904_v40 = vld [vmem:[#allocation6 + $0x1] ss:$4 sm:$0x3] }
 0x172   :  { %v552_v27 = vsel %vm3644_vm9, %v550_v56, 0.0  ;;  %v553_v59 = vsel %vm3645_vm14, %v551_v62, 0.0  ;;  %v573_v63 = vsel %vm95_vm2, %v571_v57, 0.0  ;;  %vm3648_vm0 = vcmp.lt.s32.totalorder %v2275_v35, 14 }
 0x173   :  { %v459_v46 = vadd.f32 %v457_v17, %v445_v60  ;;  %v460_v51 = vadd.f32 %v458_v26, %v446_v55  ;;  %v574_v24 = vsel %vm3648_vm0, %v572_v2, 0.0  ;;  %v594_v5 = vsel %vm97_vm3, %v592_v8, 0.0  ;;  %v1906_v48 = vld [vmem:[#allocation6 + $0x9] ss:$4 sm:$0x3] }
 0x174   :  { %v595_v7 = vsel %vm98_vm4, %v593_v0, 0.0  ;;  %v556_v13 = vmul.f32 %v555_v22, %v552_v27  ;;  %v557_v11 = vmul.f32 %v555_v22, %v553_v59  ;;  %v577_v20 = vmul.f32 %v576_v9, %v573_v63  ;;  %v1909_v0 = vld [vmem:[#allocation6 + $0x3] ss:$4 sm:$0x3] }
 0x175   :  { %v480_v3 = vadd.f32 %v478_v41, %v459_v46  ;;  %v481_v10 = vadd.f32 %v479_v45, %v460_v51  ;;  %v578_v30 = vmul.f32 %v576_v9, %v574_v24  ;;  %vm3635_vm7 = vcmp.lt.s32.totalorder %v2069_v44, 80  ;;  %v1905_v45 = vld [vmem:[#allocation6 + $0x8] ss:$4 sm:$0x3] }
 0x176   :  { %v2658_v6 = vpop.permute.xlu0 %698  ;;  %v2660_v53 = vpop.permute.xlu1 %829  ;;  %v598_v28 = vmul.f32 %v597_v47, %v594_v5  ;;  %v599_v37 = vmul.f32 %v597_v47, %v595_v7  ;;  %v50_v41 = vmax.f32 %v1903_v25, %v1904_v40  ;;  %v51_v58 = vmax.f32 %v1905_v45, %v1906_v48 }
 0x177   :  { %v501_v61 = vadd.f32 %v499_v50, %v480_v3  ;;  %v502_v23 = vadd.f32 %v500_v52, %v481_v10  ;;  %vm3634_vm9 = vcmp.lt.s32.totalorder %v2224_v16, 208  ;;  %v631_v17 = vstv %s2644_s12  ;;  %v1907_v52 = vld [vmem:[#allocation6 + $0x2] ss:$4 sm:$0x3]  ;;  %s1825_s12 = sld [smem:[#allocation2 + $0x2f]] }
 0x178   :  { %762 = vrot.lane.b32.xlu0 %v2668_v43, %s1986_s24  ;;  %734 = vrot.lane.b32.xlu2 %v2668_v43, %s1984_s21  ;;  %v645_v26 = vstv %s2662_s13  ;;  %vm3649_vm14 = vcmp.lt.s32.totalorder %v2069_v44, 2  ;;  %s1826_s13 = sld [smem:[#allocation2 + $0x30]]  ;;  %vm3699_vm1 = vcmp.ge.s32.totalorder %v2275_v35, 1 }
 0x179   :  { %v522_v33 = vadd.f32 %v520_v1, %v501_v61  ;;  %v523_v49 = vadd.f32 %v521_v38, %v502_v23  ;;  %748 = vrot.lane.b32.xlu1 %v2668_v43, %s1985_s23  ;;  %v58_v1 = vmax.f32 %v50_v41, %v1907_v52  ;;  %v1908_v38 = vld [vmem:[#allocation6 + $0xa] ss:$4 sm:$0x3]  ;;  %vm3650_vm0 = vmmov %vm3649_vm14  ;;  %v1910_v61 = vld [vmem:[#allocation6 + $0xb] ss:$4 sm:$0x3] }
 0x17a   :  { %v59_v56 = vmax.f32 %v51_v58, %v1908_v38 }
 0x17b   :  { %v537_v15 = vadd.f32 %v2045_v31, %v522_v33  ;;  %v538_v29 = vadd.f32 %v2047_v32, %v523_v49  ;;  %v835_v31 = vsel %vm3635_vm7, %v2495_v18, %v2660_v53  ;;  %v2717_v63 = vmax.f32 %v58_v1, %v1909_v0 }
 0x17c   :  { %v2719_v23 = vmax.f32 %v59_v56, %v1910_v61  ;;  %v2728_v33 = vsel %vm3635_vm7, %v2660_v53, %v2495_v18 }
 0x17d   :  { %v558_v60 = vadd.f32 %v556_v13, %v537_v15  ;;  %v559_v55 = vadd.f32 %v557_v11, %v538_v29  ;;  %934 = vst [vmem:[#allocation1] ss:$9 sm:$0xff] %v2717_v63  ;;  %v687_v11 = vpop.permute.xlu2 %686 }
 0x17e   :  { %v625_v32 = vpop.permute.xlu0 %624  ;;  %v637_v50 = vpop.permute.xlu1 %636  ;;  %936 = vst [vmem:[#allocation1 + $0x1] ss:$9 sm:$0xff] %v2719_v23 }
 0x17f   :  { %v579_v62 = vadd.f32 %v577_v20, %v558_v60  ;;  %v580_v46 = vadd.f32 %v578_v30, %v559_v55  ;;  %v626_v51 = vsel %vm125_vm8, %v2553_v21, %v625_v32  ;;  %v627_v22 = vsel %vm125_vm8, %v625_v32, %v2553_v21 }
 0x180   :  { %v628_v57 = vsel %vm87_vm10, %v627_v22, 0.0  ;;  %v629_v54 = vsel %vm88_vm11, %v626_v51, 0.0  ;;  %v640_v9 = vsel %vm3649_vm14, %v637_v50, %v639_v39  ;;  %v641_v2 = vsel %vm3650_vm0, %v639_v39, %v637_v50  ;;  %810 = vrot.lane.b32.xlu0 %v2668_v43, %s1989_s27  ;;  %782 = vrot.lane.b32.xlu2 %v2668_v43, %s1987_s25 }
 0x181   :  { %v600_v3 = vadd.f32 %v598_v28, %v579_v62  ;;  %v601_v21 = vadd.f32 %v599_v37, %v580_v46  ;;  %v632_v10 = vmul.f32 %v631_v17, %v628_v57  ;;  %v633_v27 = vmul.f32 %v631_v17, %v629_v54  ;;  %796 = vrot.lane.b32.xlu1 %v2668_v43, %s1988_s26 }
 0x182   :  { %v642_v59 = vsel %vm89_vm12, %v641_v2, 0.0  ;;  %v643_v8 = vsel %vm90_vm13, %v640_v9, 0.0  ;;  %v2733_v20 = vsel %vm3634_vm9, %v835_v31, 0.0  ;;  %v665_v37 = vstv %s2722_s14  ;;  %s1827_s14 = sld [smem:[#allocation2 + $0x31]] }
 0x183   :  { %v634_v24 = vadd.f32 %v632_v10, %v600_v3  ;;  %v635_v47 = vadd.f32 %v633_v27, %v601_v21  ;;  %v646_v5 = vmul.f32 %v645_v26, %v642_v59  ;;  %v647_v7 = vmul.f32 %v645_v26, %v643_v8 }
 0x184   :  { %v659_v39 = vstv %s1808_s15  ;;  %vm3651_vm14 = vcmp.lt.s32.totalorder %v2069_v44, 1  ;;  %vm3653_vm9 = vcmp.ge.s32.totalorder %v2275_v35, 1  ;;  %v667_v55 = vmul.f32 %v665_v37, %v2231_v19  ;;  %s1828_s15 = sld [smem:[#allocation2 + $0x32]] }
 0x185   :  { %v648_v49 = vadd.f32 %v646_v5, %v634_v24  ;;  %v649_v13 = vadd.f32 %v647_v7, %v635_v47  ;;  %v938_v53 = vld [vmem:[#allocation1 + $0x9] sm:$0xff]  ;;  %v937_v28 = vld [vmem:[#allocation1] sm:$0xff]  ;;  %vm3652_vm0 = vmmov %vm3651_vm14  ;;  %v693_v50 = vstv %s2747_s17  ;;  %v707_v57 = vstv %s2751_s18  ;;  %s1830_s17 = sld [smem:[#allocation2 + $0x34]] }
 0x186   :  { %v685_v30 = vpop.permute.xlu1 %684  ;;  %v673_v18 = vpop.permute.xlu0 %672  ;;  %1039 = vst [vmem:[#allocation1] ss:$9 sm:$0xff] %v2717_v63  ;;  %s1831_s18 = sld [smem:[#allocation2 + $0x35]] }
 0x187   :  { %v688_v15 = vsel %vm207_vm5, %v685_v30, %v687_v11  ;;  %v689_v29 = vsel %vm207_vm5, %v687_v11, %v685_v30  ;;  %1041 = vst [vmem:[#allocation1 + $0x1] ss:$9 sm:$0xff] %v2719_v23  ;;  %v674_v40 = vsel %vm188_vm6, %v2619_v14, %v673_v18  ;;  %v675_v41 = vsel %vm188_vm6, %v673_v18, %v2619_v14 }
 0x188   :  { %856 = vrot.lane.b32.xlu2 %v2728_v33, %s1985_s23  ;;  %842 = vrot.lane.b32.xlu0 %v2728_v33, %s1984_s21  ;;  %v666_v14 = vmul.f32 %v665_v37, %v2209_v12  ;;  %v690_v52 = vsel %vm95_vm2, %v688_v15, 0.0 }
 0x189   :  { %844 = vrot.lane.b32.xlu1 %v2733_v20, %s1984_s21  ;;  %v694_v51 = vmul.f32 %v693_v50, %v690_v52 }
 0x18e   :  { %v653_v25 = vpop.permute.xlu1 %652 }
 0x18f   :  { %v654_v45 = vsel %vm3651_vm14, %v2599_v36, %v653_v25  ;;  %v655_v48 = vsel %vm3652_vm0, %v653_v25, %v2599_v36  ;;  %v679_v36 = vstv %s2743_s16  ;;  %vm3654_vm14 = vcmp.lt.s32.totalorder %v2272_v34, 15  ;;  %s1829_s16 = sld [smem:[#allocation2 + $0x33]] }
 0x190   :  { %v656_v58 = vsel %vm91_vm15, %v655_v48, 0.0  ;;  %v657_v60 = vsel %vm3653_vm9, %v654_v45, 0.0  ;;  %872 = vrot.lane.b32.xlu2 %v2733_v20, %s1986_s24  ;;  %858 = vrot.lane.b32.xlu0 %v2733_v20, %s1985_s23  ;;  %v676_v32 = vsel %vm3654_vm14, %v674_v40, 0.0  ;;  %vm3655_vm9 = vcmp.lt.s32.totalorder %v2275_v35, 15 }
 0x191   :  { %v660_v17 = vmul.f32 %v659_v39, %v656_v58  ;;  %v661_v31 = vmul.f32 %v659_v39, %v657_v60  ;;  %870 = vrot.lane.b32.xlu1 %v2728_v33, %s1986_s24  ;;  %v677_v26 = vsel %vm3655_vm9, %v675_v41, 0.0  ;;  %vm3656_vm0 = vcmp.lt.s32.totalorder %v2275_v35, 14 }
 0x192   :  { %v691_v12 = vsel %vm3656_vm0, %v689_v29, 0.0  ;;  %v680_v38 = vmul.f32 %v679_v36, %v676_v32  ;;  %v681_v56 = vmul.f32 %v679_v36, %v677_v26  ;;  %vm3657_vm14 = vcmp.lt.s32.totalorder %v2069_v44, 125 }
 0x193   :  { %v662_v19 = vadd.f32 %v660_v17, %v648_v49  ;;  %v663_v1 = vadd.f32 %v661_v31, %v649_v13  ;;  %v695_v22 = vmul.f32 %v693_v50, %v691_v12  ;;  %vm3658_vm9 = vmmov %vm3657_vm14  ;;  %v741_v13 = vstv %s1813_s19  ;;  %s2966_s19 = sld [smem:[#allocation2 + $0x36]] }
 0x194   :  { %vm3659_vm0 = vcmp.lt.s32.totalorder %v2069_v44, 1  ;;  %v769_v31 = vstv %s1815_s22  ;;  %s1851_s22 = sld [smem:[#allocation2 + $0x49]] }
 0x195   :  { %v668_v62 = vadd.f32 %v666_v14, %v662_v19  ;;  %v669_v46 = vadd.f32 %v667_v55, %v663_v1 }
 0x196   :  { %v701_v54 = vpop.permute.xlu1 %700 }
 0x197   :  { %v682_v9 = vadd.f32 %v680_v38, %v668_v62  ;;  %v683_v2 = vadd.f32 %v681_v56, %v669_v46  ;;  %v702_v3 = vsel %vm3657_vm14, %v2658_v6, %v701_v54  ;;  %v703_v21 = vsel %vm3658_vm9, %v701_v54, %v2658_v6  ;;  %vm3660_vm14 = vmmov %vm3659_vm0 }
 0x198   :  { %v704_v10 = vsel %vm97_vm3, %v702_v3, 0.0  ;;  %v705_v27 = vsel %vm98_vm4, %v703_v21, 0.0  ;;  %904 = vrot.lane.b32.xlu2 %v2728_v33, %s1988_s26  ;;  %890 = vrot.lane.b32.xlu0 %v2728_v33, %s1987_s25  ;;  %vm3661_vm9 = vcmp.lt.s32.totalorder %v2069_v44, 2  ;;  %v775_v38 = vstv %s1816_s3  ;;  %s1834_s3 = sld [smem:[#allocation2 + $0x38]] }
 0x199   :  { %v696_v59 = vadd.f32 %v694_v51, %v682_v9  ;;  %v697_v8 = vadd.f32 %v695_v22, %v683_v2  ;;  %v708_v0 = vmul.f32 %v707_v57, %v704_v10  ;;  %v709_v61 = vmul.f32 %v707_v57, %v705_v27  ;;  %892 = vrot.lane.b32.xlu1 %v2733_v20, %s1987_s25  ;;  %vm3662_vm7 = vmmov %vm3661_vm9 }
 0x19a   :  { %v789_v22 = vstv %s2825_s4  ;;  %v776_v9 = vmul.f32 %v775_v38, %v2543_v4  ;;  %v777_v2 = vmul.f32 %v775_v38, %v2668_v43  ;;  %v817_v27 = vstv %s2827_s5  ;;  %s3073_s4 = sld [smem:[#allocation2 + $0x3a]] }
 0x19b   :  { %v710_v6 = vadd.f32 %v708_v0, %v696_v59  ;;  %v711_v24 = vadd.f32 %v709_v61, %v697_v8  ;;  %v803_v0 = vstv %s2833_s6  ;;  %v879_v38 = vstv %s1822_s9  ;;  %s1837_s5 = sld [smem:[#allocation2 + $0x3b]] }
 0x19c   :  { %s3086_s6 = sld [smem:[#allocation2 + $0x3c]] }
 0x19d   :  { %s1844_s9 = sld [smem:[#allocation2 + $0x42]] }
 0x1a0   :  { %920 = vrot.lane.b32.xlu2 %v2733_v20, %s1989_s27  ;;  %906 = vrot.lane.b32.xlu0 %v2733_v20, %s1988_s26 }
 0x1a1   :  { %918 = vrot.lane.b32.xlu1 %v2728_v33, %s1989_s27 }
 0x1a8   :  { %941 = vrot.lane.b32.xlu0 %v937_v28, %s1981_s0 }
 0x1a9   :  { %943 = vrot.lane.b32.xlu1 %v938_v53, %s1981_s0  ;;  %s1814_s0 = sld [smem:[#allocation2 + $0x24]] }
 0x1af   :  { %v755_v55 = vstv %s1814_s0  ;;  %s1833_s0 = sld [smem:[#allocation2 + $0x37]] }
 0x1c2   :  { %v761_v47 = vpop.permute.xlu2 %760 }
 0x1ca   :  { %v809_v5 = vpop.permute.xlu2 %808 }
 0x1d2   :  { %v735_v7 = vpop.permute.xlu2 %734 }
 0x1da   :  { %v747_v49 = vpop.permute.xlu0 %746  ;;  %v783_v40 = vpop.permute.xlu2 %782 }
 0x1db   :  { %v733_v11 = vpop.permute.xlu1 %732 }
 0x1dc   :  { %v736_v30 = vsel %vm125_vm8, %v733_v11, %v735_v7  ;;  %v737_v15 = vsel %vm125_vm8, %v735_v7, %v733_v11 }
 0x1dd   :  { %v738_v29 = vsel %vm87_vm10, %v737_v15, 0.0  ;;  %v739_v18 = vsel %vm88_vm11, %v736_v30, 0.0 }
 0x1de   :  { %v742_v53 = vmul.f32 %v741_v13, %v738_v29  ;;  %v743_v28 = vmul.f32 %v741_v13, %v739_v18 }
 0x1e0   :  { %v744_v37 = vadd.f32 %v742_v53, %v710_v6  ;;  %v745_v39 = vadd.f32 %v743_v28, %v711_v24 }
 0x1e2   :  { %v795_v25 = vpop.permute.xlu0 %794  ;;  %v857_v7 = vpop.permute.xlu2 %856 }
 0x1e3   :  { %v781_v41 = vpop.permute.xlu1 %780 }
 0x1e4   :  { %v784_v45 = vsel %vm188_vm6, %v781_v41, %v783_v40  ;;  %v785_v48 = vsel %vm188_vm6, %v783_v40, %v781_v41 }
 0x1ea   :  { %v763_v58 = vpop.permute.xlu0 %762 }
 0x1eb   :  { %v764_v60 = vsel %vm3659_vm0, %v761_v47, %v763_v58  ;;  %v765_v14 = vsel %vm3660_vm14, %v763_v58, %v761_v47  ;;  %v749_v17 = vpop.permute.xlu1 %748  ;;  %vm3663_vm0 = vcmp.ge.s32.totalorder %v2275_v35, 1  ;;  %vm3665_vm14 = vcmp.lt.s32.totalorder %v2275_v35, 15 }
 0x1ec   :  { %v750_v36 = vsel %vm3661_vm9, %v747_v49, %v749_v17  ;;  %v751_v32 = vsel %vm3662_vm7, %v749_v17, %v747_v49  ;;  %v766_v26 = vsel %vm91_vm15, %v765_v14, 0.0  ;;  %v767_v50 = vsel %vm3663_vm0, %v764_v60, 0.0 }
 0x1ed   :  { %v752_v52 = vsel %vm89_vm12, %v751_v32, 0.0  ;;  %v753_v12 = vsel %vm90_vm13, %v750_v36, 0.0  ;;  %v770_v56 = vmul.f32 %v769_v31, %v766_v26  ;;  %v771_v62 = vmul.f32 %v769_v31, %v767_v50  ;;  %v873_v32 = vpop.permute.xlu2 %872 }
 0x1ee   :  { %v756_v19 = vmul.f32 %v755_v55, %v752_v52  ;;  %v757_v1 = vmul.f32 %v755_v55, %v753_v12  ;;  %vm3664_vm7 = vcmp.lt.s32.totalorder %v2272_v34, 15  ;;  %v787_v54 = vsel %vm3665_vm14, %v785_v48, 0.0 }
 0x1ef   :  { %v786_v57 = vsel %vm3664_vm7, %v784_v45, 0.0  ;;  %vm3666_vm9 = vcmp.lt.s32.totalorder %v2069_v44, 125  ;;  %v791_v24 = vmul.f32 %v789_v22, %v787_v54  ;;  %vm3668_vm7 = vcmp.lt.s32.totalorder %v2275_v35, 14 }
 0x1f0   :  { %v758_v46 = vadd.f32 %v756_v19, %v744_v37  ;;  %v759_v51 = vadd.f32 %v757_v1, %v745_v39  ;;  %vm3667_vm0 = vmmov %vm3666_vm9  ;;  %v790_v6 = vmul.f32 %v789_v22, %v786_v57  ;;  %v851_v58 = vstv %s2860_s7  ;;  %s3106_s7 = sld [smem:[#allocation2 + $0x3e]] }
 0x1f1   :  { %v865_v52 = vstv %s1821_s8  ;;  %vm3669_vm14 = vcmp.lt.s32.totalorder %v2069_v44, 2  ;;  %s1839_s8 = sld [smem:[#allocation2 + $0x3d]] }
 0x1f2   :  { %v772_v3 = vadd.f32 %v770_v56, %v758_v46  ;;  %v773_v21 = vadd.f32 %v771_v62, %v759_v51  ;;  %v811_v10 = vpop.permute.xlu0 %810 }
 0x1f3   :  { %v812_v59 = vsel %vm3666_vm9, %v809_v5, %v811_v10  ;;  %v813_v8 = vsel %vm3667_vm0, %v811_v10, %v809_v5  ;;  %v797_v61 = vpop.permute.xlu1 %796  ;;  %vm3670_vm9 = vmmov %vm3669_vm14  ;;  %vm3671_vm0 = vcmp.lt.s32.totalorder %v2069_v44, 1 }
 0x1f4   :  { %v778_v47 = vadd.f32 %v776_v9, %v772_v3  ;;  %v779_v4 = vadd.f32 %v777_v2, %v773_v21  ;;  %v814_v43 = vsel %vm97_vm3, %v812_v59, 0.0  ;;  %v815_v49 = vsel %vm98_vm4, %v813_v8, 0.0 }
 0x1f5   :  { %v798_v13 = vsel %vm207_vm5, %v795_v25, %v797_v61  ;;  %v799_v5 = vsel %vm207_vm5, %v797_v61, %v795_v25  ;;  %v818_v28 = vmul.f32 %v817_v27, %v814_v43  ;;  %v819_v37 = vmul.f32 %v817_v27, %v815_v49  ;;  %v905_v61 = vpop.permute.xlu2 %904 }
 0x1f6   :  { %v792_v11 = vadd.f32 %v790_v6, %v778_v47  ;;  %v793_v30 = vadd.f32 %v791_v24, %v779_v4  ;;  %v800_v15 = vsel %vm95_vm2, %v798_v13, 0.0  ;;  %v801_v29 = vsel %vm3668_vm7, %v799_v5, 0.0  ;;  %vm3672_vm7 = vmmov %vm3671_vm0 }
 0x1f7   :  { %v804_v18 = vmul.f32 %v803_v0, %v800_v15  ;;  %v805_v53 = vmul.f32 %v803_v0, %v801_v29  ;;  %v885_v3 = vstv %s1823_s10  ;;  %v899_v43 = vstv %s2887_s11  ;;  %s3220_s10 = sld [smem:[#allocation2 + $0x43]] }
 0x1f8   :  { %v886_v8 = vmul.f32 %v885_v3, %v2728_v33  ;;  %v887_v0 = vmul.f32 %v885_v3, %v2733_v20  ;;  %v972_v3 = vstv %s1828_s15  ;;  %s1846_s11 = sld [smem:[#allocation2 + $0x44]] }
 0x1f9   :  { %v806_v39 = vadd.f32 %v804_v18, %v792_v11  ;;  %v807_v40 = vadd.f32 %v805_v53, %v793_v30  ;;  %v913_v18 = vstv %s1825_s12  ;;  %s1847_s12 = sld [smem:[#allocation2 + $0x45]] }
 0x1fa   :  { %v843_v41 = vpop.permute.xlu0 %842  ;;  %s1850_s15 = sld [smem:[#allocation2 + $0x48]] }
 0x1fb   :  { %v820_v45 = vadd.f32 %v818_v28, %v806_v39  ;;  %v821_v48 = vadd.f32 %v819_v37, %v807_v40  ;;  %v845_v25 = vpop.permute.xlu1 %844  ;;  %v927_v40 = vstv %s1826_s13  ;;  %s1848_s13 = sld [smem:[#allocation2 + $0x46]] }
 0x1fc   :  { %v846_v60 = vsel %vm125_vm8, %v843_v41, %v845_v25  ;;  %v847_v14 = vsel %vm125_vm8, %v845_v25, %v843_v41 }
 0x1fd   :  { %v848_v55 = vsel %vm87_vm10, %v847_v14, 0.0  ;;  %v849_v17 = vsel %vm88_vm11, %v846_v60, 0.0  ;;  %v921_v28 = vpop.permute.xlu2 %920 }
 0x1fe   :  { %v852_v31 = vmul.f32 %v851_v58, %v848_v55  ;;  %v853_v36 = vmul.f32 %v851_v58, %v849_v17 }
 0x200   :  { %v854_v26 = vadd.f32 %v852_v31, %v820_v45  ;;  %v855_v50 = vadd.f32 %v853_v36, %v821_v48 }
 0x202   :  { %v859_v12 = vpop.permute.xlu0 %858 }
 0x203   :  { %v860_v19 = vsel %vm3669_vm14, %v857_v7, %v859_v12  ;;  %v861_v1 = vsel %vm3670_vm9, %v859_v12, %v857_v7  ;;  %v871_v56 = vpop.permute.xlu1 %870  ;;  %vm3673_vm14 = vcmp.ge.s32.totalorder %v2275_v35, 1  ;;  %vm3674_vm9 = vcmp.lt.s32.totalorder %v2272_v34, 15 }
 0x204   :  { %v862_v62 = vsel %vm89_vm12, %v861_v1, 0.0  ;;  %v863_v46 = vsel %vm90_vm13, %v860_v19, 0.0  ;;  %v874_v51 = vsel %vm3671_vm0, %v871_v56, %v873_v32  ;;  %v875_v22 = vsel %vm3672_vm7, %v873_v32, %v871_v56 }
 0x205   :  { %v866_v57 = vmul.f32 %v865_v52, %v862_v62  ;;  %v867_v54 = vmul.f32 %v865_v52, %v863_v46  ;;  %v876_v9 = vsel %vm91_vm15, %v875_v22, 0.0  ;;  %v877_v2 = vsel %vm3673_vm14, %v874_v51, 0.0  ;;  %v1043_v62 = vld [vmem:[#allocation1 + $0x9] sm:$0xff]  ;;  %v1042_v46 = vld [vmem:[#allocation1] sm:$0xff] }
 0x206   :  { %v880_v27 = vmul.f32 %v879_v38, %v876_v9  ;;  %v881_v59 = vmul.f32 %v879_v38, %v877_v2  ;;  %vm3675_vm0 = vcmp.lt.s32.totalorder %v2275_v35, 15  ;;  %vm3676_vm7 = vcmp.lt.s32.totalorder %v2275_v35, 14  ;;  %1144 = vst [vmem:[#allocation1] ss:$9 sm:$0xff] %v2717_v63 }
 0x207   :  { %v868_v21 = vadd.f32 %v866_v57, %v854_v26  ;;  %v869_v10 = vadd.f32 %v867_v54, %v855_v50  ;;  %vm3677_vm14 = vcmp.lt.s32.totalorder %v2069_v44, 125  ;;  %1146 = vst [vmem:[#allocation1 + $0x1] ss:$9 sm:$0xff] %v2719_v23  ;;  %v958_v57 = vstv %s1827_s14  ;;  %s1849_s14 = sld [smem:[#allocation2 + $0x47]] }
 0x209   :  { %v882_v6 = vadd.f32 %v880_v27, %v868_v21  ;;  %v883_v24 = vadd.f32 %v881_v59, %v869_v10 }
 0x20a   :  { %v891_v47 = vpop.permute.xlu0 %890 }
 0x20b   :  { %v888_v4 = vadd.f32 %v886_v8, %v882_v6  ;;  %v889_v7 = vadd.f32 %v887_v0, %v883_v24  ;;  %v893_v49 = vpop.permute.xlu1 %892 }
 0x20c   :  { %v894_v13 = vsel %vm188_vm6, %v891_v47, %v893_v49  ;;  %v895_v5 = vsel %vm188_vm6, %v893_v49, %v891_v47 }
 0x20d   :  { %v896_v33 = vsel %vm3674_vm9, %v894_v13, 0.0  ;;  %v897_v20 = vsel %vm3675_vm0, %v895_v5, 0.0  ;;  %vm3678_vm9 = vmmov %vm3677_vm14  ;;  %vm3679_vm0 = vcmp.lt.s32.totalorder %v2069_v44, 48 }
 0x20e   :  { %v900_v11 = vmul.f32 %v899_v43, %v896_v33  ;;  %v901_v30 = vmul.f32 %v899_v43, %v897_v20  ;;  %v986_v20 = vstv %s1829_s16  ;;  %s3387_s16 = sld [smem:[#allocation2 + $0x4c]] }
 0x210   :  { %v902_v15 = vadd.f32 %v900_v11, %v888_v4  ;;  %v903_v29 = vadd.f32 %v901_v30, %v889_v7 }
 0x212   :  { %v907_v53 = vpop.permute.xlu0 %906 }
 0x213   :  { %v908_v37 = vsel %vm207_vm5, %v905_v61, %v907_v53  ;;  %v909_v39 = vsel %vm207_vm5, %v907_v53, %v905_v61  ;;  %v919_v41 = vpop.permute.xlu1 %918 }
 0x214   :  { %v910_v45 = vsel %vm95_vm2, %v908_v37, 0.0  ;;  %v911_v48 = vsel %vm3676_vm7, %v909_v39, 0.0  ;;  %v922_v58 = vsel %vm3677_vm14, %v919_v41, %v921_v28  ;;  %v923_v25 = vsel %vm3678_vm9, %v921_v28, %v919_v41  ;;  %vm3680_vm7 = vmmov %vm3679_vm0 }
 0x215   :  { %v914_v60 = vmul.f32 %v913_v18, %v910_v45  ;;  %v915_v14 = vmul.f32 %v913_v18, %v911_v48  ;;  %v924_v55 = vsel %vm97_vm3, %v922_v58, 0.0  ;;  %v925_v17 = vsel %vm98_vm4, %v923_v25, 0.0 }
 0x216   :  { %v928_v32 = vmul.f32 %v927_v40, %v924_v55  ;;  %v929_v26 = vmul.f32 %v927_v40, %v925_v17  ;;  %vm3681_vm14 = vcmp.ge.s32.totalorder %v2069_v44, 48  ;;  %vm3682_vm9 = vcmp.lt.s32.totalorder %v2069_v44, 2 }
 0x217   :  { %v916_v31 = vadd.f32 %v914_v60, %v902_v15  ;;  %v917_v36 = vadd.f32 %v915_v14, %v903_v29  ;;  %v992_v29 = vstv %s1830_s17  ;;  %v1006_v25 = vstv %s1831_s18  ;;  %s1858_s17 = sld [smem:[#allocation2 + $0x50]] }
 0x218   :  { %s1859_s18 = sld [smem:[#allocation2 + $0x51]] }
 0x219   :  { %v930_v50 = vadd.f32 %v928_v32, %v916_v31  ;;  %v931_v52 = vadd.f32 %v929_v26, %v917_v36  ;;  %v1020_v31 = vstv %s2966_s19  ;;  %s1860_s19 = sld [smem:[#allocation2 + $0x52]] }
 0x21a   :  { %v942_v12 = vpop.permute.xlu0 %941 }
 0x21b   :  { %v944_v19 = vpop.permute.xlu1 %943 }
 0x21c   :  { %v945_v1 = vsel %vm3679_vm0, %v942_v12, %v944_v19  ;;  %v946_v38 = vsel %vm3680_vm7, %v944_v19, %v942_v12  ;;  %vm3683_vm0 = vmmov %vm3682_vm9  ;;  %vm3684_vm7 = vcmp.lt.s32.totalorder %v2069_v44, 1 }
 0x21d   :  { %v947_v56 = vsel %vm3681_vm14, %v946_v38, 0.0  ;;  %951 = vrot.lane.b32.xlu0 %v945_v1, %s1984_s21  ;;  %vm3685_vm14 = vmmov %vm3684_vm7  ;;  %v994_v40 = vmul.f32 %v992_v29, %v945_v1 }
 0x21e   :  { %963 = vrot.lane.b32.xlu1 %v947_v56, %s1985_s23  ;;  %949 = vrot.lane.b32.xlu2 %v947_v56, %s1984_s21  ;;  %v993_v39 = vmul.f32 %v992_v29, %v947_v56 }
 0x225   :  { %977 = vrot.lane.b32.xlu0 %v947_v56, %s1986_s24 }
 0x226   :  { %979 = vrot.lane.b32.xlu1 %v945_v1, %s1986_s24  ;;  %965 = vrot.lane.b32.xlu2 %v945_v1, %s1985_s23 }
 0x22d   :  { %999 = vrot.lane.b32.xlu0 %v945_v1, %s1987_s25 }
 0x22e   :  { %1011 = vrot.lane.b32.xlu1 %v947_v56, %s1988_s26  ;;  %997 = vrot.lane.b32.xlu2 %v947_v56, %s1987_s25 }
 0x235   :  { %1025 = vrot.lane.b32.xlu0 %v947_v56, %s1989_s27 }
 0x236   :  { %1027 = vrot.lane.b32.xlu1 %v945_v1, %s1989_s27  ;;  %1013 = vrot.lane.b32.xlu2 %v945_v1, %s1988_s26 }
 0x23d   :  { %1048 = vrot.lane.b32.xlu0 %v1043_v62, %s1982_s1 }
 0x23e   :  { %1046 = vrot.lane.b32.xlu2 %v1042_v46, %s1982_s1 }
 0x278   :  { %v950_v51 = vpop.permute.xlu2 %949 }
 0x280   :  { %v966_v22 = vpop.permute.xlu2 %965 }
 0x288   :  { %v998_v49 = vpop.permute.xlu2 %997 }
 0x28f   :  { %v952_v54 = vpop.permute.xlu0 %951 }
 0x290   :  { %v953_v9 = vsel %vm125_vm8, %v950_v51, %v952_v54  ;;  %v954_v2 = vsel %vm125_vm8, %v952_v54, %v950_v51  ;;  %v964_v21 = vpop.permute.xlu1 %963  ;;  %v1014_v14 = vpop.permute.xlu2 %1013 }
 0x291   :  { %v955_v10 = vsel %vm87_vm10, %v954_v2, 0.0  ;;  %v956_v27 = vsel %vm88_vm11, %v953_v9, 0.0  ;;  %v967_v59 = vsel %vm3682_vm9, %v964_v21, %v966_v22  ;;  %v968_v8 = vsel %vm3683_vm0, %v966_v22, %v964_v21 }
 0x292   :  { %v959_v0 = vmul.f32 %v958_v57, %v955_v10  ;;  %v960_v61 = vmul.f32 %v958_v57, %v956_v27  ;;  %v969_v6 = vsel %vm89_vm12, %v968_v8, 0.0  ;;  %v970_v24 = vsel %vm90_vm13, %v967_v59, 0.0 }
 0x293   :  { %v973_v47 = vmul.f32 %v972_v3, %v969_v6  ;;  %v974_v4 = vmul.f32 %v972_v3, %v970_v24  ;;  %vm3686_vm9 = vcmp.ge.s32.totalorder %v2275_v35, 1  ;;  %vm3687_vm0 = vcmp.lt.s32.totalorder %v2272_v34, 15 }
 0x294   :  { %v961_v7 = vadd.f32 %v959_v0, %v930_v50  ;;  %v962_v43 = vadd.f32 %v960_v61, %v931_v52  ;;  %v1034_v9 = vstv %s1833_s0  ;;  %s3451_s0 = sld [smem:[#allocation2 + $0x53]] }
 0x296   :  { %v975_v13 = vadd.f32 %v973_v47, %v961_v7  ;;  %v976_v5 = vadd.f32 %v974_v4, %v962_v43  ;;  %v1147_v43 = vld [vmem:[#allocation1] sm:$0xff] }
 0x297   :  { %v978_v33 = vpop.permute.xlu0 %977 }
 0x298   :  { %v980_v11 = vpop.permute.xlu1 %979  ;;  %v1047_v6 = vpop.permute.xlu2 %1046 }
 0x299   :  { %v981_v30 = vsel %vm3684_vm7, %v978_v33, %v980_v11  ;;  %v982_v15 = vsel %vm3685_vm14, %v980_v11, %v978_v33  ;;  %vm3688_vm7 = vcmp.lt.s32.totalorder %v2275_v35, 15  ;;  %vm3689_vm14 = vcmp.lt.s32.totalorder %v2275_v35, 14 }
 0x29a   :  { %v983_v18 = vsel %vm91_vm15, %v982_v15, 0.0  ;;  %v984_v53 = vsel %vm3686_vm9, %v981_v30, 0.0  ;;  %vm3690_vm9 = vcmp.lt.s32.totalorder %v2069_v44, 125  ;;  %v1313_v11 = vstv %s1851_s22  ;;  %s3461_s22 = sld [smem:[#allocation2 + $0x54]] }
 0x29b   :  { %v987_v28 = vmul.f32 %v986_v20, %v983_v18  ;;  %v988_v37 = vmul.f32 %v986_v20, %v984_v53  ;;  %v1314_v30 = vmul.f32 %v1313_v11, %v2717_v63  ;;  %v1315_v15 = vmul.f32 %v1313_v11, %v2719_v23 }
 0x29d   :  { %v989_v41 = vadd.f32 %v987_v28, %v975_v13  ;;  %v990_v45 = vadd.f32 %v988_v37, %v976_v5 }
 0x29f   :  { %v995_v48 = vadd.f32 %v993_v39, %v989_v41  ;;  %v996_v58 = vadd.f32 %v994_v40, %v990_v45  ;;  %v1000_v60 = vpop.permute.xlu0 %999  ;;  %v1063_v45 = vstv %s1834_s3  ;;  %s3480_s3 = sld [smem:[#allocation2 + $0x55]] }
 0x2a0   :  { %v1001_v55 = vsel %vm188_vm6, %v998_v49, %v1000_v60  ;;  %v1002_v17 = vsel %vm188_vm6, %v1000_v60, %v998_v49  ;;  %v1012_v36 = vpop.permute.xlu1 %1011  ;;  %v1148_v49 = vld [vmem:[#allocation1 + $0x9] sm:$0xff] }
 0x2a1   :  { %v1003_v32 = vsel %vm3687_vm0, %v1001_v55, 0.0  ;;  %v1004_v26 = vsel %vm3688_vm7, %v1002_v17, 0.0  ;;  %v1015_v50 = vsel %vm207_vm5, %v1012_v36, %v1014_v14  ;;  %v1016_v52 = vsel %vm207_vm5, %v1014_v14, %v1012_v36  ;;  %vm3691_vm0 = vmmov %vm3690_vm9  ;;  %1249 = vst [vmem:[#allocation1] ss:$9 sm:$0xff] %v2717_v63 }
 0x2a2   :  { %v1007_v12 = vmul.f32 %v1006_v25, %v1003_v32  ;;  %v1008_v19 = vmul.f32 %v1006_v25, %v1004_v26  ;;  %v1017_v1 = vsel %vm95_vm2, %v1015_v50, 0.0  ;;  %v1018_v38 = vsel %vm3689_vm14, %v1016_v52, 0.0  ;;  %1251 = vst [vmem:[#allocation1 + $0x1] ss:$9 sm:$0xff] %v2719_v23 }
 0x2a3   :  { %v1021_v56 = vmul.f32 %v1020_v31, %v1017_v1  ;;  %v1022_v62 = vmul.f32 %v1020_v31, %v1018_v38  ;;  %vm3692_vm7 = vcmp.lt.s32.totalorder %v2069_v44, 32  ;;  %v1091_v26 = vstv %s3073_s4  ;;  %s3482_s4 = sld [smem:[#allocation2 + $0x56]] }
 0x2a4   :  { %v1009_v46 = vadd.f32 %v1007_v12, %v995_v48  ;;  %v1010_v51 = vadd.f32 %v1008_v19, %v996_v58  ;;  %vm3693_vm14 = vmmov %vm3692_vm7 }
 0x2a6   :  { %v1023_v22 = vadd.f32 %v1021_v56, %v1009_v46  ;;  %v1024_v57 = vadd.f32 %v1022_v62, %v1010_v51 }
 0x2a7   :  { %v1026_v54 = vpop.permute.xlu0 %1025 }
 0x2a8   :  { %v1028_v2 = vpop.permute.xlu1 %1027 }
 0x2a9   :  { %v1029_v3 = vsel %vm3690_vm9, %v1026_v54, %v1028_v2  ;;  %v1030_v21 = vsel %vm3691_vm0, %v1028_v2, %v1026_v54  ;;  %vm3694_vm9 = vcmp.ge.s32.totalorder %v2069_v44, 32  ;;  %v3029_v13 = vld [vmem:[#allocation1] sm:$0xff]  ;;  %v3031_v5 = vld [vmem:[#allocation1 + $0x9] sm:$0xff]  ;;  %vm3695_vm0 = vcmp.lt.s32.totalorder %v2069_v44, 1 }
 0x2aa   :  { %v1031_v10 = vsel %vm97_vm3, %v1029_v3, 0.0  ;;  %v1032_v27 = vsel %vm98_vm4, %v1030_v21, 0.0  ;;  %1270 = vst [vmem:[#allocation1] ss:$9 sm:$0xff] %v2717_v63  ;;  %v1097_v2 = vstv %s1837_s5  ;;  %s1866_s5 = sld [smem:[#allocation2 + $0x58]] }
 0x2ab   :  { %v1035_v59 = vmul.f32 %v1034_v9, %v1031_v10  ;;  %v1036_v8 = vmul.f32 %v1034_v9, %v1032_v27  ;;  %1272 = vst [vmem:[#allocation1 + $0x1] ss:$9 sm:$0xff] %v2719_v23 }
 0x2ad   :  { %v3001_v0 = vadd.f32 %v1035_v59, %v1023_v22  ;;  %v3003_v61 = vadd.f32 %v1036_v8, %v1024_v57 }
 0x2af   :  { %v1049_v24 = vpop.permute.xlu0 %1048 }
 0x2b0   :  { %v3007_v47 = vsel %vm3692_vm7, %v1047_v6, %v1049_v24  ;;  %v1051_v4 = vsel %vm3693_vm14, %v1049_v24, %v1047_v6  ;;  %vm3696_vm7 = vmmov %vm3695_vm0  ;;  %vm3697_vm14 = vcmp.lt.s32.totalorder %v2069_v44, 2  ;;  %v1111_v24 = vstv %s3086_s6  ;;  %s1867_s6 = sld [smem:[#allocation2 + $0x59]] }
 0x2b1   :  { %v3013_v7 = vsel %vm3694_vm9, %v1051_v4, 0.0  ;;  %1056 = vrot.lane.b32.xlu2 %v3007_v47, %s1984_s21  ;;  %vm3698_vm9 = vmmov %vm3697_vm14 }
 0x2b2   :  { %1068 = vrot.lane.b32.xlu0 %v3013_v7, %s1985_s23  ;;  %1054 = vrot.lane.b32.xlu1 %v3013_v7, %s1984_s21  ;;  %v3041_v33 = vld [vmem:[#allocation1] sm:$0xff]  ;;  %v3043_v20 = vld [vmem:[#allocation1 + $0x9] sm:$0xff] }
 0x2b3   :  { %1291 = vst [vmem:[#allocation1] ss:$9 sm:$0xff] %v2717_v63 }
 0x2b4   :  { %1293 = vst [vmem:[#allocation1 + $0x1] ss:$9 sm:$0xff] %v2719_v23 }
 0x2b9   :  { %1082 = vrot.lane.b32.xlu2 %v3013_v7, %s1986_s24 }
 0x2ba   :  { %1084 = vrot.lane.b32.xlu0 %v3007_v47, %s1986_s24  ;;  %1070 = vrot.lane.b32.xlu1 %v3007_v47, %s1985_s23 }
 0x2bb   :  { %v3055_v29 = vld [vmem:[#allocation1] sm:$0xff]  ;;  %v3057_v18 = vld [vmem:[#allocation1 + $0x9] sm:$0xff] }
 0x2bc   :  { %1318 = vst [vmem:[#allocation1] ss:$9 sm:$0xff] %v1314_v30 }
 0x2bd   :  { %1320 = vst [vmem:[#allocation1 + $0x1] ss:$9 sm:$0xff] %v1315_v15 }
 0x2c1   :  { %1104 = vrot.lane.b32.xlu2 %v3007_v47, %s1987_s25 }
 0x2c2   :  { %1116 = vrot.lane.b32.xlu0 %v3013_v7, %s1988_s26  ;;  %1102 = vrot.lane.b32.xlu1 %v3013_v7, %s1987_s25 }
 0x2c4   :  { %v3061_v53 = vld [vmem:[#allocation1] sm:$0xff]  ;;  %v3063_v28 = vld [vmem:[#allocation1 + $0x9] sm:$0xff] }
 0x2c5   :  { %1327 = vst [vmem:[#allocation1] ss:$9 sm:$0xff] %v2717_v63 }
 0x2c6   :  { %1329 = vst [vmem:[#allocation1 + $0x1] ss:$9 sm:$0xff] %v2719_v23 }
 0x2c9   :  { %1130 = vrot.lane.b32.xlu2 %v3013_v7, %s1989_s27 }
 0x2ca   :  { %1132 = vrot.lane.b32.xlu0 %v3007_v47, %s1989_s27  ;;  %1118 = vrot.lane.b32.xlu1 %v3007_v47, %s1988_s26 }
 0x2cd   :  { %v3067_v37 = vld [vmem:[#allocation1] sm:$0xff]  ;;  %v3069_v39 = vld [vmem:[#allocation1 + $0x9] sm:$0xff] }
 0x2ce   :  { %1348 = vst [vmem:[#allocation1] ss:$9 sm:$0xff] %v2717_v63 }
 0x2cf   :  { %1350 = vst [vmem:[#allocation1 + $0x1] ss:$9 sm:$0xff] %v2719_v23 }
 0x2d1   :  { %1153 = vrot.lane.b32.xlu2 %v1148_v49, %s1983_s20 }
 0x2d2   :  { %1151 = vrot.lane.b32.xlu1 %v1147_v43, %s1983_s20  ;;  %s1835_s20 = sld [smem:[#allocation2 + $0x39]] }
 0x2d6   :  { %v3117_v15 = vld [vmem:[#allocation1] sm:$0xff] }
 0x2d8   :  { %v1077_v52 = vstv %s1835_s20  ;;  %s1865_s20 = sld [smem:[#allocation2 + $0x57]] }
 0x30b   :  { %v1057_v40 = vpop.permute.xlu2 %1056 }
 0x313   :  { %v1083_v60 = vpop.permute.xlu2 %1082 }
 0x31b   :  { %v1105_v9 = vpop.permute.xlu2 %1104 }
 0x324   :  { %v1069_v41 = vpop.permute.xlu0 %1068  ;;  %v1055_v48 = vpop.permute.xlu1 %1054 }
 0x325   :  { %v1058_v58 = vsel %vm125_vm8, %v1055_v48, %v1057_v40  ;;  %v1059_v25 = vsel %vm125_vm8, %v1057_v40, %v1055_v48  ;;  %v3119_v40 = vld [vmem:[#allocation1 + $0x9] sm:$0xff] }
 0x326   :  { %v1060_v14 = vsel %vm87_vm10, %v1059_v25, 0.0  ;;  %v1061_v55 = vsel %vm88_vm11, %v1058_v58, 0.0  ;;  %1369 = vst [vmem:[#allocation1] ss:$9 sm:$0xff] %v2717_v63  ;;  %v1131_v25 = vpop.permute.xlu2 %1130 }
 0x327   :  { %v1064_v17 = vmul.f32 %v1063_v45, %v1060_v14  ;;  %v1065_v31 = vmul.f32 %v1063_v45, %v1061_v55  ;;  %1371 = vst [vmem:[#allocation1 + $0x1] ss:$9 sm:$0xff] %v2719_v23  ;;  %v1125_v55 = vstv %s1839_s8  ;;  %s3523_s8 = sld [smem:[#allocation2 + $0x5b]] }
 0x329   :  { %v1066_v36 = vadd.f32 %v1064_v17, %v3001_v0  ;;  %v1067_v32 = vadd.f32 %v1065_v31, %v3003_v61  ;;  %v1098_v0 = vmul.f32 %v1097_v2, %v3013_v7  ;;  %v1099_v61 = vmul.f32 %v1097_v2, %v3007_v47 }
 0x32c   :  { %v1085_v50 = vpop.permute.xlu0 %1084  ;;  %v1071_v12 = vpop.permute.xlu1 %1070 }
 0x32d   :  { %v1086_v19 = vsel %vm3695_vm0, %v1083_v60, %v1085_v50  ;;  %v1087_v1 = vsel %vm3696_vm7, %v1085_v50, %v1083_v60  ;;  %v1072_v38 = vsel %vm3697_vm14, %v1069_v41, %v1071_v12  ;;  %v1073_v56 = vsel %vm3698_vm9, %v1071_v12, %v1069_v41 }
 0x32e   :  { %v1088_v62 = vsel %vm91_vm15, %v1087_v1, 0.0  ;;  %v1089_v46 = vsel %vm3699_vm1, %v1086_v19, 0.0  ;;  %v1074_v51 = vsel %vm89_vm12, %v1073_v56, 0.0  ;;  %v1075_v22 = vsel %vm90_vm13, %v1072_v38, 0.0  ;;  %v1372_v56 = vld [vmem:[#allocation1] sm:$0xff] }
 0x32f   :  { %v1078_v57 = vmul.f32 %v1077_v52, %v1074_v51  ;;  %v1079_v54 = vmul.f32 %v1077_v52, %v1075_v22  ;;  %v1092_v3 = vmul.f32 %v1091_v26, %v1088_v62  ;;  %v1093_v21 = vmul.f32 %v1091_v26, %v1089_v46  ;;  %v1373_v62 = vld [vmem:[#allocation1 + $0x9] sm:$0xff] }
 0x330   :  { %vm3700_vm1 = vcmp.lt.s32.totalorder %v2272_v34, 15  ;;  %vm3701_vm0 = vcmp.lt.s32.totalorder %v2275_v35, 15  ;;  %v1139_v60 = vstv %s3106_s7  ;;  %vm3702_vm7 = vcmp.lt.s32.totalorder %v2069_v44, 125  ;;  %1390 = vst [vmem:[#allocation1] ss:$9 sm:$0xff] %v2717_v63  ;;  %s3513_s7 = sld [smem:[#allocation2 + $0x5a]] }
 0x331   :  { %v1080_v10 = vadd.f32 %v1078_v57, %v1066_v36  ;;  %v1081_v27 = vadd.f32 %v1079_v54, %v1067_v32  ;;  %vm3703_vm14 = vmmov %vm3702_vm7  ;;  %vm3704_vm9 = vcmp.lt.s32.totalorder %v2275_v35, 14  ;;  %1392 = vst [vmem:[#allocation1 + $0x1] ss:$9 sm:$0xff] %v2719_v23  ;;  %v1154_v54 = vpop.permute.xlu2 %1153 }
 0x333   :  { %v1094_v59 = vadd.f32 %v1092_v3, %v1080_v10  ;;  %v1095_v8 = vadd.f32 %v1093_v21, %v1081_v27 }
 0x334   :  { %v1117_v6 = vpop.permute.xlu0 %1116  ;;  %v1103_v4 = vpop.permute.xlu1 %1102 }
 0x335   :  { %v1100_v43 = vadd.f32 %v1098_v0, %v1094_v59  ;;  %v1101_v49 = vadd.f32 %v1099_v61, %v1095_v8  ;;  %v1106_v11 = vsel %vm188_vm6, %v1103_v4, %v1105_v9  ;;  %v1107_v30 = vsel %vm188_vm6, %v1105_v9, %v1103_v4 }
 0x336   :  { %v1108_v7 = vsel %vm3700_vm1, %v1106_v11, 0.0  ;;  %v1109_v47 = vsel %vm3701_vm0, %v1107_v30, 0.0  ;;  %vm3705_vm1 = vcmp.lt.s32.totalorder %v2069_v44, 16 }
 0x337   :  { %v1112_v41 = vmul.f32 %v1111_v24, %v1108_v7  ;;  %v1113_v45 = vmul.f32 %v1111_v24, %v1109_v47  ;;  %vm3706_vm0 = vmmov %vm3705_vm1 }
 0x338   :  { %v1393_v59 = vld [vmem:[#allocation1] sm:$0xff]  ;;  %v1394_v8 = vld [vmem:[#allocation1 + $0x9] sm:$0xff] }
 0x339   :  { %v1114_v48 = vadd.f32 %v1112_v41, %v1100_v43  ;;  %v1115_v58 = vadd.f32 %v1113_v45, %v1101_v49  ;;  %1495 = vst [vmem:[#allocation1] ss:$9 sm:$0xff] %v2717_v63 }
 0x33a   :  { %1497 = vst [vmem:[#allocation1 + $0x1] ss:$9 sm:$0xff] %v2719_v23 }
 0x33c   :  { %v1133_v14 = vpop.permute.xlu0 %1132  ;;  %v1119_v17 = vpop.permute.xlu1 %1118 }
 0x33d   :  { %v1134_v31 = vsel %vm3702_vm7, %v1131_v25, %v1133_v14  ;;  %v1135_v36 = vsel %vm3703_vm14, %v1133_v14, %v1131_v25  ;;  %v1120_v32 = vsel %vm207_vm5, %v1117_v6, %v1119_v17  ;;  %v1121_v26 = vsel %vm207_vm5, %v1119_v17, %v1117_v6 }
 0x33e   :  { %v1136_v50 = vsel %vm97_vm3, %v1134_v31, 0.0  ;;  %v1137_v52 = vsel %vm98_vm4, %v1135_v36, 0.0  ;;  %v1122_v12 = vsel %vm95_vm2, %v1120_v32, 0.0  ;;  %v1123_v19 = vsel %vm3704_vm9, %v1121_v26, 0.0 }
 0x33f   :  { %v1126_v1 = vmul.f32 %v1125_v55, %v1122_v12  ;;  %v1127_v38 = vmul.f32 %v1125_v55, %v1123_v19  ;;  %v1140_v46 = vmul.f32 %v1139_v60, %v1136_v50  ;;  %v1141_v51 = vmul.f32 %v1139_v60, %v1137_v52 }
 0x340   :  { %vm3707_vm7 = vcmp.ge.s32.totalorder %v2069_v44, 16  ;;  %vm3708_vm14 = vcmp.lt.s32.totalorder %v2069_v44, 1  ;;  %v1202_v31 = vstv %s1844_s9  ;;  %s1873_s9 = sld [smem:[#allocation2 + $0x5f]] }
 0x341   :  { %v1128_v22 = vadd.f32 %v1126_v1, %v1114_v48  ;;  %v1129_v57 = vadd.f32 %v1127_v38, %v1115_v58  ;;  %v1499_v0 = vld [vmem:[#allocation1 + $0x9] sm:$0xff]  ;;  %v1498_v61 = vld [vmem:[#allocation1] sm:$0xff]  ;;  %vm3709_vm9 = vmmov %vm3708_vm14 }
 0x342   :  { %1600 = vst [vmem:[#allocation1] ss:$9 sm:$0xff] %v2717_v63 }
 0x343   :  { %v1142_v9 = vadd.f32 %v1140_v46, %v1128_v22  ;;  %v1143_v2 = vadd.f32 %v1141_v51, %v1129_v57  ;;  %1602 = vst [vmem:[#allocation1 + $0x1] ss:$9 sm:$0xff] %v2719_v23 }
 0x344   :  { %v1152_v3 = vpop.permute.xlu1 %1151 }
 0x345   :  { %v3144_v21 = vsel %vm3705_vm1, %v1152_v3, %v1154_v54  ;;  %v1156_v10 = vsel %vm3706_vm0, %v1154_v54, %v1152_v3  ;;  %vm3710_vm1 = vcmp.lt.s32.totalorder %v2069_v44, 2 }
 0x346   :  { %v3150_v27 = vsel %vm3707_vm7, %v1156_v10, 0.0  ;;  %1161 = vrot.lane.b32.xlu1 %v3144_v21, %s1984_s21  ;;  %vm3711_vm0 = vmmov %vm3710_vm1  ;;  %vm3712_vm7 = vcmp.ge.s32.totalorder %v2275_v35, 1  ;;  %v1204_v38 = vmul.f32 %v1202_v31, %v3144_v21 }
 0x347   :  { %1173 = vrot.lane.b32.xlu2 %v3150_v27, %s1985_s23  ;;  %1159 = vrot.lane.b32.xlu0 %v3150_v27, %s1984_s21  ;;  %v1203_v1 = vmul.f32 %v1202_v31, %v3150_v27 }
 0x34a   :  { %v1603_v63 = vld [vmem:[#allocation1] sm:$0xff]  ;;  %v1604_v23 = vld [vmem:[#allocation1 + $0x9] sm:$0xff] }
 0x34e   :  { %1187 = vrot.lane.b32.xlu1 %v3150_v27, %s1986_s24 }
 0x34f   :  { %1189 = vrot.lane.b32.xlu2 %v3144_v21, %s1986_s24  ;;  %1175 = vrot.lane.b32.xlu0 %v3144_v21, %s1985_s23 }
 0x356   :  { %1209 = vrot.lane.b32.xlu1 %v3144_v21, %s1987_s25 }
 0x357   :  { %1221 = vrot.lane.b32.xlu2 %v3150_v27, %s1988_s26  ;;  %1207 = vrot.lane.b32.xlu0 %v3150_v27, %s1987_s25 }
 0x35e   :  { %1235 = vrot.lane.b32.xlu1 %v3150_v27, %s1989_s27 }
 0x35f   :  { %1237 = vrot.lane.b32.xlu2 %v3144_v21, %s1989_s27  ;;  %1223 = vrot.lane.b32.xlu0 %v3144_v21, %s1988_s26 }
 0x366   :  { %1397 = vrot.lane.b32.xlu1 %v1393_v59, %s1990_s28 }
 0x367   :  { %1256 = vrot.lane.b32.xlu0 %v3029_v13, %s1984_s21  ;;  %1399 = vrot.lane.b32.xlu2 %v1394_v8, %s1990_s28  ;;  %s1841_s28 = sld [smem:[#allocation2 + $0x3f]] }
 0x36e   :  { %1277 = vrot.lane.b32.xlu1 %v3041_v33, %s1985_s23  ;;  %v1168_v33 = vstv %s1841_s28  ;;  %s3542_s28 = sld [smem:[#allocation2 + $0x5c]] }
 0x36f   :  { %1258 = vrot.lane.b32.xlu0 %v3031_v5, %s1984_s21  ;;  %1279 = vrot.lane.b32.xlu2 %v3043_v20, %s1985_s23 }
 0x376   :  { %1504 = vrot.lane.b32.xlu1 %v1499_v0, %s1991_s29 }
 0x377   :  { %1502 = vrot.lane.b32.xlu0 %v1498_v61, %s1991_s29  ;;  %1298 = vrot.lane.b32.xlu2 %v3055_v29, %s1986_s24  ;;  %s1842_s29 = sld [smem:[#allocation2 + $0x40]]  ;;  %v1230_v61 = vstv %s1846_s11 }
 0x378   :  { %s1875_s11 = sld [smem:[#allocation2 + $0x61]] }
 0x37d   :  { %v1182_v47 = vstv %s1842_s29  ;;  %s3544_s29 = sld [smem:[#allocation2 + $0x5d]] }
 0x37e   :  { %1607 = vrot.lane.b32.xlu1 %v1603_v63, %s1992_s30 }
 0x37f   :  { %1300 = vrot.lane.b32.xlu0 %v3057_v18, %s1986_s24  ;;  %1609 = vrot.lane.b32.xlu2 %v1604_v23, %s1992_s30  ;;  %s1843_s30 = sld [smem:[#allocation2 + $0x41]]  ;;  %v1244_v23 = vstv %s1847_s12  ;;  %s1993_s12 = smov [#allocation7]  }
 0x386   :  { %1336 = vrot.lane.b32.xlu1 %v3069_v39, %s1987_s25 }
 0x387   :  { %1334 = vrot.lane.b32.xlu0 %v3067_v37, %s1987_s25  ;;  %1355 = vrot.lane.b32.xlu2 %v3117_v15, %s1988_s26 }
 0x38e   :  { %1376 = vrot.lane.b32.xlu1 %v1372_v56, %s1989_s27  ;;  %v1216_v56 = vstv %s3220_s10  ;;  %s1874_s10 = sld [smem:[#allocation2 + $0x60]] }
 0x38f   :  { %1357 = vrot.lane.b32.xlu0 %v3119_v40, %s1988_s26  ;;  %1378 = vrot.lane.b32.xlu2 %v1373_v62, %s1989_s27  ;;  %v1196_v40 = vstv %s1843_s30  ;;  %s3555_s30 = sld [smem:[#allocation2 + $0x5e]] }
 0x3a1   :  { %v1174_v13 = vpop.permute.xlu2 %1173 }
 0x3a9   :  { %v1190_v29 = vpop.permute.xlu2 %1189 }
 0x3b1   :  { %v1222_v14 = vpop.permute.xlu2 %1221 }
 0x3b8   :  { %v1162_v5 = vpop.permute.xlu1 %1161 }
 0x3b9   :  { %v1160_v20 = vpop.permute.xlu0 %1159  ;;  %v1238_v21 = vpop.permute.xlu2 %1237 }
 0x3ba   :  { %v1163_v18 = vsel %vm125_vm8, %v1160_v20, %v1162_v5  ;;  %v1164_v37 = vsel %vm125_vm8, %v1162_v5, %v1160_v20 }
 0x3bb   :  { %v1165_v39 = vsel %vm87_vm10, %v1164_v37, 0.0  ;;  %v1166_v6 = vsel %vm88_vm11, %v1163_v18, 0.0 }
 0x3bc   :  { %v1169_v24 = vmul.f32 %v1168_v33, %v1165_v39  ;;  %v1170_v4 = vmul.f32 %v1168_v33, %v1166_v6 }
 0x3be   :  { %v1171_v43 = vadd.f32 %v1169_v24, %v1142_v9  ;;  %v1172_v49 = vadd.f32 %v1170_v4, %v1143_v2 }
 0x3c0   :  { %v1188_v11 = vpop.permute.xlu1 %1187 }
 0x3c1   :  { %v1191_v30 = vsel %vm3708_vm14, %v1188_v11, %v1190_v29  ;;  %v1192_v7 = vsel %vm3709_vm9, %v1190_v29, %v1188_v11  ;;  %v1176_v15 = vpop.permute.xlu0 %1175  ;;  %vm3713_vm14 = vcmp.lt.s32.totalorder %v2272_v34, 15  ;;  %vm3714_vm9 = vcmp.lt.s32.totalorder %v2275_v35, 15 }
 0x3c2   :  { %v1177_v41 = vsel %vm3710_vm1, %v1174_v13, %v1176_v15  ;;  %v1178_v45 = vsel %vm3711_vm0, %v1176_v15, %v1174_v13  ;;  %v1193_v48 = vsel %vm91_vm15, %v1192_v7, 0.0  ;;  %v1194_v58 = vsel %vm3712_vm7, %v1191_v30, 0.0 }
 0x3c3   :  { %v1179_v25 = vsel %vm89_vm12, %v1178_v45, 0.0  ;;  %v1180_v60 = vsel %vm90_vm13, %v1177_v41, 0.0  ;;  %v1197_v36 = vmul.f32 %v1196_v40, %v1193_v48  ;;  %v1198_v32 = vmul.f32 %v1196_v40, %v1194_v58 }
 0x3c4   :  { %v1183_v55 = vmul.f32 %v1182_v47, %v1179_v25  ;;  %v1184_v17 = vmul.f32 %v1182_v47, %v1180_v60  ;;  %vm3715_vm1 = vcmp.lt.s32.totalorder %v2069_v44, 125  ;;  %vm3717_vm7 = vcmp.lt.s32.totalorder %v2275_v35, 14 }
 0x3c5   :  { %vm3716_vm0 = vmmov %vm3715_vm1  ;;  %v1265_v58 = vstv %s1848_s13  ;;  %v1286_v60 = vstv %s1849_s14  ;;  %s1763_s13 = sshll.u32 %s1993_s12, 4  ;;  %s1764_s13 = int_to_ptr.vmem [resolvable:$true] %s1763_s13 }
 0x3c6   :  { %v1185_v26 = vadd.f32 %v1183_v55, %v1171_v43  ;;  %v1186_v50 = vadd.f32 %v1184_v17, %v1172_v49  ;;  %v1400_v49 = vpop.permute.xlu2 %1399 }
 0x3c8   :  { %v1199_v52 = vadd.f32 %v1197_v36, %v1185_v26  ;;  %v1200_v12 = vadd.f32 %v1198_v32, %v1186_v50  ;;  %v1210_v19 = vpop.permute.xlu1 %1209 }
 0x3c9   :  { %v1208_v62 = vpop.permute.xlu0 %1207 }
 0x3ca   :  { %v1205_v46 = vadd.f32 %v1203_v1, %v1199_v52  ;;  %v1206_v51 = vadd.f32 %v1204_v38, %v1200_v12  ;;  %v1211_v22 = vsel %vm188_vm6, %v1208_v62, %v1210_v19  ;;  %v1212_v57 = vsel %vm188_vm6, %v1210_v19, %v1208_v62 }
 0x3cb   :  { %v1213_v54 = vsel %vm3713_vm14, %v1211_v22, 0.0  ;;  %v1214_v9 = vsel %vm3714_vm9, %v1212_v57, 0.0  ;;  %vm3718_vm14 = vcmp.lt.s32.totalorder %v2069_v44, 112  ;;  %v1307_v57 = vstv %s1850_s15 }
 0x3cc   :  { %v1217_v2 = vmul.f32 %v1216_v56, %v1213_v54  ;;  %v1218_v3 = vmul.f32 %v1216_v56, %v1214_v9  ;;  %vm3719_vm9 = vmmov %vm3718_vm14 }
 0x3ce   :  { %v1219_v10 = vadd.f32 %v1217_v2, %v1205_v46  ;;  %v1220_v27 = vadd.f32 %v1218_v3, %v1206_v51  ;;  %v1280_v45 = vpop.permute.xlu2 %1279 }
 0x3d0   :  { %v1236_v59 = vpop.permute.xlu1 %1235 }
 0x3d1   :  { %v1239_v8 = vsel %vm3715_vm1, %v1236_v59, %v1238_v21  ;;  %v1240_v0 = vsel %vm3716_vm0, %v1238_v21, %v1236_v59  ;;  %v1224_v63 = vpop.permute.xlu0 %1223  ;;  %vm3720_vm1 = vcmp.lt.s32.totalorder %v2224_v16, 240  ;;  %vm3721_vm0 = vcmp.lt.s32.totalorder %v2069_v44, 2 }
 0x3d2   :  { %v1225_v13 = vsel %vm207_vm5, %v1222_v14, %v1224_v63  ;;  %v1226_v5 = vsel %vm207_vm5, %v1224_v63, %v1222_v14  ;;  %v1241_v33 = vsel %vm97_vm3, %v1239_v8, 0.0  ;;  %v1242_v20 = vsel %vm98_vm4, %v1240_v0, 0.0 }
 0x3d3   :  { %v1227_v29 = vsel %vm95_vm2, %v1225_v13, 0.0  ;;  %v1228_v18 = vsel %vm3717_vm7, %v1226_v5, 0.0  ;;  %v1245_v6 = vmul.f32 %v1244_v23, %v1241_v33  ;;  %v1246_v24 = vmul.f32 %v1244_v23, %v1242_v20  ;;  %vm3722_vm7 = vmmov %vm3721_vm0 }
 0x3d4   :  { %v1231_v37 = vmul.f32 %v1230_v61, %v1227_v29  ;;  %v1232_v39 = vmul.f32 %v1230_v61, %v1228_v18 }
 0x3d6   :  { %v1233_v4 = vadd.f32 %v1231_v37, %v1219_v10  ;;  %v1234_v43 = vadd.f32 %v1232_v39, %v1220_v27  ;;  %v1299_v22 = vpop.permute.xlu2 %1298 }
 0x3d8   :  { %v1398_v11 = vpop.permute.xlu1 %1397  ;;  %v1247_v30 = vadd.f32 %v1245_v6, %v1233_v4  ;;  %v1248_v7 = vadd.f32 %v1246_v24, %v1234_v43 }
 0x3d9   :  { %v3263_v47 = vsel %vm3718_vm14, %v1398_v11, %v1400_v49  ;;  %v1402_v15 = vsel %vm3719_vm9, %v1400_v49, %v1398_v11  ;;  %v1257_v40 = vpop.permute.xlu0 %1256  ;;  %vm3723_vm14 = vcmp.lt.s32.totalorder %v2069_v44, 1 }
 0x3da   :  { %v3269_v41 = vsel %vm3720_vm1, %v1402_v15, 0.0  ;;  %1405 = vrot.lane.b32.xlu0 %v3263_v47, %s1984_s21  ;;  %1419 = vrot.lane.b32.xlu2 %v3263_v47, %s1985_s23  ;;  %vm3724_vm9 = vmmov %vm3723_vm14  ;;  %vm3725_vm1 = vcmp.ge.s32.totalorder %v2275_v35, 1 }
 0x3db   :  { %1407 = vrot.lane.b32.xlu1 %v3269_v41, %s1984_s21 }
 0x3de   :  { %v1610_v5 = vpop.permute.xlu2 %1609 }
 0x3e0   :  { %v1278_v48 = vpop.permute.xlu1 %1277 }
 0x3e1   :  { %v1259_v25 = vpop.permute.xlu0 %1258  ;;  %v1281_v14 = vsel %vm3721_vm0, %v1278_v48, %v1280_v45  ;;  %v1282_v55 = vsel %vm3722_vm7, %v1280_v45, %v1278_v48  ;;  %vm3726_vm0 = vcmp.lt.s32.totalorder %v2069_v44, 96 }
 0x3e2   :  { %v1260_v17 = vsel %vm125_vm8, %v1257_v40, %v1259_v25  ;;  %v1261_v31 = vsel %vm125_vm8, %v1259_v25, %v1257_v40  ;;  %1421 = vrot.lane.b32.xlu0 %v3269_v41, %s1985_s23  ;;  %1435 = vrot.lane.b32.xlu2 %v3269_v41, %s1986_s24  ;;  %v1283_v36 = vsel %vm89_vm12, %v1282_v55, 0.0  ;;  %v1284_v32 = vsel %vm90_vm13, %v1281_v14, 0.0  ;;  %vm3727_vm7 = vmmov %vm3726_vm0 }
 0x3e3   :  { %v1262_v26 = vsel %vm87_vm10, %v1261_v31, 0.0  ;;  %v1263_v50 = vsel %vm88_vm11, %v1260_v17, 0.0  ;;  %1433 = vrot.lane.b32.xlu1 %v3263_v47, %s1986_s24  ;;  %v1287_v19 = vmul.f32 %v1286_v60, %v1283_v36  ;;  %v1288_v1 = vmul.f32 %v1286_v60, %v1284_v32 }
 0x3e4   :  { %v1266_v52 = vmul.f32 %v1265_v58, %v1262_v26  ;;  %v1267_v12 = vmul.f32 %v1265_v58, %v1263_v50  ;;  %v1385_v36 = vstv %s3387_s16 }
 0x3e6   :  { %v1268_v38 = vadd.f32 %v1266_v52, %v1247_v30  ;;  %v1269_v56 = vadd.f32 %v1267_v12, %v1248_v7 }
 0x3e8   :  { %v1289_v62 = vadd.f32 %v1287_v19, %v1268_v38  ;;  %v1290_v46 = vadd.f32 %v1288_v1, %v1269_v56  ;;  %v1505_v10 = vpop.permute.xlu1 %1504 }
 0x3e9   :  { %v1503_v51 = vpop.permute.xlu0 %1502 }
 0x3ea   :  { %1453 = vrot.lane.b32.xlu0 %v3263_v47, %s1987_s25  ;;  %1467 = vrot.lane.b32.xlu2 %v3263_v47, %s1988_s26  ;;  %v1507_v8 = vsel %vm3726_vm0, %v1505_v10, %v1503_v51  ;;  %v3323_v63 = vsel %vm3727_vm7, %v1503_v51, %v1505_v10  ;;  %vm3731_vm0 = vcmp.lt.s32.totalorder %v2224_v16, 208  ;;  %vm3732_vm7 = vcmp.lt.s32.totalorder %v2272_v34, 15 }
 0x3eb   :  { %1455 = vrot.lane.b32.xlu1 %v3269_v41, %s1987_s25 }
 0x3f0   :  { %v1608_v13 = vpop.permute.xlu1 %1607 }
 0x3f1   :  { %v1301_v54 = vpop.permute.xlu0 %1300 }
 0x3f2   :  { %v1302_v9 = vsel %vm3723_vm14, %v1299_v22, %v1301_v54  ;;  %v1303_v2 = vsel %vm3724_vm9, %v1301_v54, %v1299_v22  ;;  %1469 = vrot.lane.b32.xlu0 %v3269_v41, %s1988_s26  ;;  %1483 = vrot.lane.b32.xlu2 %v3269_v41, %s1989_s27  ;;  %vm3728_vm14 = vcmp.lt.s32.totalorder %v2224_v16, 224  ;;  %vm3729_vm9 = vcmp.lt.s32.totalorder %v2069_v44, 80  ;;  %v1356_v16 = vpop.permute.xlu2 %1355 }
 0x3f3   :  { %v1304_v3 = vsel %vm91_vm15, %v1303_v2, 0.0  ;;  %v1305_v21 = vsel %vm3725_vm1, %v1302_v9, 0.0  ;;  %1481 = vrot.lane.b32.xlu1 %v3263_v47, %s1989_s27  ;;  %v3327_v23 = vsel %vm3728_vm14, %v1507_v8, 0.0  ;;  %v1612_v33 = vsel %vm3729_vm9, %v1610_v5, %v1608_v13  ;;  %vm3730_vm1 = vmmov %vm3729_vm9 }
 0x3f4   :  { %v1308_v27 = vmul.f32 %v1307_v57, %v1304_v3  ;;  %v1309_v59 = vmul.f32 %v1307_v57, %v1305_v21  ;;  %v3357_v20 = vsel %vm3730_vm1, %v1608_v13, %v1610_v5  ;;  %v3361_v29 = vsel %vm3731_vm0, %v1612_v33, 0.0 }
 0x3f5   :  { %vm3733_vm14 = vcmp.lt.s32.totalorder %v2275_v35, 15  ;;  %vm3734_vm9 = vcmp.lt.s32.totalorder %v2069_v44, 125  ;;  %vm3735_vm1 = vcmp.lt.s32.totalorder %v2275_v35, 14 }
 0x3f6   :  { %v1310_v0 = vadd.f32 %v1308_v27, %v1289_v62  ;;  %v1311_v61 = vadd.f32 %v1309_v59, %v1290_v46  ;;  %vm3736_vm0 = vmmov %vm3734_vm9 }
 0x3f8   :  { %v1337_v6 = vpop.permute.xlu1 %1336  ;;  %v1325_v31 = vadd.f32 %v3061_v53, %v1310_v0  ;;  %v1326_v26 = vadd.f32 %v3063_v28, %v1311_v61 }
 0x3f9   :  { %v1335_v39 = vpop.permute.xlu0 %1334 }
 0x3fa   :  { %1510 = vrot.lane.b32.xlu0 %v3323_v63, %s1984_s21  ;;  %1524 = vrot.lane.b32.xlu2 %v3323_v63, %s1985_s23  ;;  %v1379_v18 = vpop.permute.xlu2 %1378  ;;  %v1338_v43 = vsel %vm188_vm6, %v1335_v39, %v1337_v6  ;;  %v1339_v49 = vsel %vm188_vm6, %v1337_v6, %v1335_v39 }
 0x3fb   :  { %1512 = vrot.lane.b32.xlu1 %v3327_v23, %s1984_s21  ;;  %v1340_v40 = vsel %vm3732_vm7, %v1338_v43, 0.0  ;;  %v1341_v45 = vsel %vm3733_vm14, %v1339_v49, 0.0  ;;  %vm3737_vm7 = vcmp.lt.s32.totalorder %v2069_v44, 2 }
 0x3fc   :  { %vm3738_vm14 = vmmov %vm3737_vm7 }
 0x400   :  { %v1377_v11 = vpop.permute.xlu1 %1376 }
 0x401   :  { %v1358_v4 = vpop.permute.xlu0 %1357  ;;  %v1380_v48 = vsel %vm3734_vm9, %v1377_v11, %v1379_v18  ;;  %v1381_v14 = vsel %vm3736_vm0, %v1379_v18, %v1377_v11  ;;  %vm3739_vm9 = vcmp.lt.s32.totalorder %v2069_v44, 1  ;;  %vm3741_vm0 = vcmp.ge.s32.totalorder %v2275_v35, 1 }
 0x402   :  { %1526 = vrot.lane.b32.xlu0 %v3327_v23, %s1985_s23  ;;  %1540 = vrot.lane.b32.xlu2 %v3327_v23, %s1986_s24  ;;  %v1359_v30 = vsel %vm207_vm5, %v1356_v16, %v1358_v4  ;;  %v1360_v7 = vsel %vm207_vm5, %v1358_v4, %v1356_v16  ;;  %v1382_v32 = vsel %vm97_vm3, %v1380_v48, 0.0  ;;  %v1383_v12 = vsel %vm98_vm4, %v1381_v14, 0.0 }
 0x403   :  { %1538 = vrot.lane.b32.xlu1 %v3323_v63, %s1986_s24  ;;  %v1361_v25 = vsel %vm95_vm2, %v1359_v30, 0.0  ;;  %v1362_v60 = vsel %vm3735_vm1, %v1360_v7, 0.0  ;;  %v1386_v56 = vmul.f32 %v1385_v36, %v1382_v32  ;;  %v1387_v46 = vmul.f32 %v1385_v36, %v1383_v12  ;;  %vm3740_vm1 = vmmov %vm3739_vm9 }
 0x404   :  { %v1462_v12 = vstv %s1859_s18 }
 0x40a   :  { %1558 = vrot.lane.b32.xlu0 %v3323_v63, %s1987_s25  ;;  %1572 = vrot.lane.b32.xlu2 %v3323_v63, %s1988_s26 }
 0x40b   :  { %1560 = vrot.lane.b32.xlu1 %v3327_v23, %s1987_s25 }
 0x412   :  { %1574 = vrot.lane.b32.xlu0 %v3327_v23, %s1988_s26  ;;  %1588 = vrot.lane.b32.xlu2 %v3327_v23, %s1989_s27 }
 0x413   :  { %1586 = vrot.lane.b32.xlu1 %v3323_v63, %s1989_s27 }
 0x41a   :  { %1629 = vrot.lane.b32.xlu2 %v3357_v20, %s1985_s23  ;;  %1615 = vrot.lane.b32.xlu0 %v3357_v20, %s1984_s21 }
 0x41b   :  { %1617 = vrot.lane.b32.xlu1 %v3361_v29, %s1984_s21  ;;  %s1852_s21 = sld [smem:[#allocation2 + $0x4a]] }
 0x421   :  { %v1343_v15 = vstv %s1852_s21  ;;  %s1765_s21 = sshll.u32 %s3617_s2, 4  ;;  %s1766_s21 = int_to_ptr.hbm [resolvable:$true] %s1765_s21 }
 0x422   :  { %1645 = vrot.lane.b32.xlu2 %v3361_v29, %s1986_s24  ;;  %1631 = vrot.lane.b32.xlu0 %v3361_v29, %s1985_s23  ;;  %v1344_v55 = vmul.f32 %v1343_v15, %v1340_v40  ;;  %v1345_v17 = vmul.f32 %v1343_v15, %v1341_v45  ;;  %v1448_v40 = vstv %s1858_s17 }
 0x423   :  { %1643 = vrot.lane.b32.xlu1 %v3357_v20, %s1986_s24  ;;  %s1853_s24 = sld [smem:[#allocation2 + $0x4b]]  ;;  %v1450_v14 = vmul.f32 %v1448_v40, %v3269_v41 }
 0x424   :  { %v1346_v38 = vadd.f32 %v1344_v55, %v1325_v31  ;;  %v1347_v53 = vadd.f32 %v1345_v17, %v1326_v26 }
 0x429   :  { %v1364_v58 = vstv %s1853_s24 }
 0x42a   :  { %1677 = vrot.lane.b32.xlu2 %v3357_v20, %s1988_s26  ;;  %1663 = vrot.lane.b32.xlu0 %v3357_v20, %s1987_s25  ;;  %v1365_v50 = vmul.f32 %v1364_v58, %v1361_v25  ;;  %v1366_v52 = vmul.f32 %v1364_v58, %v1362_v60  ;;  %v1449_v60 = vmul.f32 %v1448_v40, %v3263_v47 }
 0x42b   :  { %1665 = vrot.lane.b32.xlu1 %v3361_v29, %s1987_s25  ;;  %s3401_s25 = sld [smem:[#allocation2 + $0x4d]] }
 0x42c   :  { %v1367_v57 = vadd.f32 %v1365_v50, %v1346_v38  ;;  %v1368_v54 = vadd.f32 %v1366_v52, %v1347_v53  ;;  %v1476_v53 = vstv %s1860_s19 }
 0x42e   :  { %v1388_v10 = vadd.f32 %v1386_v56, %v1367_v57  ;;  %v1389_v27 = vadd.f32 %v1387_v46, %v1368_v54  ;;  %v1490_v57 = vstv %s3451_s0 }
 0x431   :  { %v1414_v51 = vstv %s3401_s25 }
 0x432   :  { %1693 = vrot.lane.b32.xlu2 %v3361_v29, %s1989_s27  ;;  %1679 = vrot.lane.b32.xlu0 %v3361_v29, %s1988_s26  ;;  %s3418_s26 = sld [smem:[#allocation2 + $0x4e]] }
 0x433   :  { %1691 = vrot.lane.b32.xlu1 %v3357_v20, %s1989_s27  ;;  %s3420_s27 = sld [smem:[#allocation2 + $0x4f]] }
 0x434   :  { %v1420_v37 = vpop.permute.xlu2 %1419 }
 0x438   :  { %v1428_v59 = vstv %s3418_s26 }
 0x439   :  { %v1442_v0 = vstv %s3420_s27 }
 0x43c   :  { %v1436_v24 = vpop.permute.xlu2 %1435 }
 0x444   :  { %v1468_v19 = vpop.permute.xlu2 %1467 }
 0x44c   :  { %v1406_v1 = vpop.permute.xlu0 %1405  ;;  %v1484_v61 = vpop.permute.xlu2 %1483 }
 0x44d   :  { %v1408_v62 = vpop.permute.xlu1 %1407 }
 0x44e   :  { %v1409_v28 = vsel %vm125_vm8, %v1406_v1, %v1408_v62  ;;  %v1410_v22 = vsel %vm125_vm8, %v1408_v62, %v1406_v1 }
 0x44f   :  { %v1411_v9 = vsel %vm87_vm10, %v1410_v22, 0.0  ;;  %v1412_v2 = vsel %vm88_vm11, %v1409_v28, 0.0 }
 0x450   :  { %v1415_v3 = vmul.f32 %v1414_v51, %v1411_v9  ;;  %v1416_v21 = vmul.f32 %v1414_v51, %v1412_v2 }
 0x452   :  { %v1417_v13 = vadd.f32 %v1415_v3, %v1388_v10  ;;  %v1418_v5 = vadd.f32 %v1416_v21, %v1389_v27 }
 0x454   :  { %v1422_v8 = vpop.permute.xlu0 %1421  ;;  %v1525_v36 = vpop.permute.xlu2 %1524 }
 0x455   :  { %v1423_v33 = vsel %vm3737_vm7, %v1420_v37, %v1422_v8  ;;  %v1424_v16 = vsel %vm3738_vm14, %v1422_v8, %v1420_v37  ;;  %v1434_v18 = vpop.permute.xlu1 %1433  ;;  %vm3742_vm7 = vcmp.lt.s32.totalorder %v2272_v34, 15  ;;  %vm3743_vm14 = vcmp.lt.s32.totalorder %v2275_v35, 15 }
 0x456   :  { %v1425_v39 = vsel %vm89_vm12, %v1424_v16, 0.0  ;;  %v1426_v6 = vsel %vm90_vm13, %v1423_v33, 0.0  ;;  %v1437_v4 = vsel %vm3739_vm9, %v1434_v18, %v1436_v24  ;;  %v1438_v43 = vsel %vm3740_vm1, %v1436_v24, %v1434_v18 }
 0x457   :  { %v1429_v49 = vmul.f32 %v1428_v59, %v1425_v39  ;;  %v1430_v11 = vmul.f32 %v1428_v59, %v1426_v6  ;;  %v1439_v30 = vsel %vm91_vm15, %v1438_v43, 0.0  ;;  %v1440_v37 = vsel %vm3741_vm0, %v1437_v4, 0.0 }
 0x458   :  { %v1443_v7 = vmul.f32 %v1442_v0, %v1439_v30  ;;  %v1444_v15 = vmul.f32 %v1442_v0, %v1440_v37  ;;  %vm3744_vm9 = vcmp.lt.s32.totalorder %v2275_v35, 14  ;;  %vm3745_vm1 = vcmp.lt.s32.totalorder %v2069_v44, 125 }
 0x459   :  { %v1431_v45 = vadd.f32 %v1429_v49, %v1417_v13  ;;  %v1432_v48 = vadd.f32 %v1430_v11, %v1418_v5  ;;  %vm3746_vm0 = vmmov %vm3745_vm1  ;;  %v1519_v59 = vstv %s3461_s22  ;;  %v1533_v30 = vstv %s3480_s3 }
 0x45b   :  { %v1445_v58 = vadd.f32 %v1443_v7, %v1431_v45  ;;  %v1446_v25 = vadd.f32 %v1444_v15, %v1432_v48  ;;  %v1547_v7 = vstv %s3482_s4 }
 0x45c   :  { %v1454_v24 = vpop.permute.xlu0 %1453  ;;  %v1541_v51 = vpop.permute.xlu2 %1540 }
 0x45d   :  { %v1451_v55 = vadd.f32 %v1449_v60, %v1445_v58  ;;  %v1452_v17 = vadd.f32 %v1450_v14, %v1446_v25  ;;  %v1456_v31 = vpop.permute.xlu1 %1455 }
 0x45e   :  { %v1457_v32 = vsel %vm188_vm6, %v1454_v24, %v1456_v31  ;;  %v1458_v26 = vsel %vm188_vm6, %v1456_v31, %v1454_v24 }
 0x45f   :  { %v1459_v1 = vsel %vm3742_vm7, %v1457_v32, 0.0  ;;  %v1460_v38 = vsel %vm3743_vm14, %v1458_v26, 0.0  ;;  %vm3747_vm7 = vcmp.lt.s32.totalorder %v2069_v44, 2 }
 0x460   :  { %v1463_v28 = vmul.f32 %v1462_v12, %v1459_v1  ;;  %v1464_v22 = vmul.f32 %v1462_v12, %v1460_v38  ;;  %vm3748_vm14 = vmmov %vm3747_vm7 }
 0x462   :  { %v1465_v10 = vadd.f32 %v1463_v28, %v1451_v55  ;;  %v1466_v27 = vadd.f32 %v1464_v22, %v1452_v17 }
 0x464   :  { %v1470_v50 = vpop.permute.xlu0 %1469  ;;  %v1573_v43 = vpop.permute.xlu2 %1572 }
 0x465   :  { %v1471_v47 = vsel %vm207_vm5, %v1468_v19, %v1470_v50  ;;  %v1472_v41 = vsel %vm207_vm5, %v1470_v50, %v1468_v19  ;;  %v1482_v52 = vpop.permute.xlu1 %1481  ;;  %v1553_v50 = vstv %s1865_s20 }
 0x466   :  { %v1473_v56 = vsel %vm95_vm2, %v1471_v47, 0.0  ;;  %v1474_v62 = vsel %vm3744_vm9, %v1472_v41, 0.0  ;;  %v1485_v19 = vsel %vm3745_vm1, %v1482_v52, %v1484_v61  ;;  %v1486_v46 = vsel %vm3746_vm0, %v1484_v61, %v1482_v52 }
 0x467   :  { %v1477_v54 = vmul.f32 %v1476_v53, %v1473_v56  ;;  %v1478_v9 = vmul.f32 %v1476_v53, %v1474_v62  ;;  %v1487_v2 = vsel %vm97_vm3, %v1485_v19, 0.0  ;;  %v1488_v3 = vsel %vm98_vm4, %v1486_v46, 0.0 }
 0x468   :  { %v1491_v0 = vmul.f32 %v1490_v57, %v1487_v2  ;;  %v1492_v61 = vmul.f32 %v1490_v57, %v1488_v3  ;;  %vm3749_vm9 = vcmp.lt.s32.totalorder %v2069_v44, 1  ;;  %vm3751_vm0 = vcmp.ge.s32.totalorder %v2275_v35, 1 }
 0x469   :  { %v1479_v33 = vadd.f32 %v1477_v54, %v1465_v10  ;;  %v1480_v16 = vadd.f32 %v1478_v9, %v1466_v27  ;;  %vm3750_vm1 = vmmov %vm3749_vm9  ;;  %v1554_v1 = vmul.f32 %v1553_v50, %v3323_v63  ;;  %v1555_v38 = vmul.f32 %v1553_v50, %v3327_v23 }
 0x46a   :  { %v1567_v54 = vstv %s1866_s5 }
 0x46b   :  { %v1493_v49 = vadd.f32 %v1491_v0, %v1479_v33  ;;  %v1494_v11 = vadd.f32 %v1492_v61, %v1480_v16 }
 0x46c   :  { %v1511_v21 = vpop.permute.xlu0 %1510  ;;  %v1589_v56 = vpop.permute.xlu2 %1588 }
 0x46d   :  { %v1513_v8 = vpop.permute.xlu1 %1512 }
 0x46e   :  { %v1514_v13 = vsel %vm125_vm8, %v1511_v21, %v1513_v8  ;;  %v1515_v5 = vsel %vm125_vm8, %v1513_v8, %v1511_v21  ;;  %v1581_v21 = vstv %s1867_s6 }
 0x46f   :  { %v1516_v18 = vsel %vm87_vm10, %v1515_v5, 0.0  ;;  %v1517_v39 = vsel %vm88_vm11, %v1514_v13, 0.0  ;;  %v1595_v13 = vstv %s3513_s7 }
 0x470   :  { %v1520_v6 = vmul.f32 %v1519_v59, %v1516_v18  ;;  %v1521_v4 = vmul.f32 %v1519_v59, %v1517_v39 }
 0x472   :  { %v1522_v15 = vadd.f32 %v1520_v6, %v1493_v49  ;;  %v1523_v40 = vadd.f32 %v1521_v4, %v1494_v11 }
 0x474   :  { %v1527_v37 = vpop.permute.xlu0 %1526  ;;  %v1630_v3 = vpop.permute.xlu2 %1629 }
 0x475   :  { %v1528_v45 = vsel %vm3747_vm7, %v1525_v36, %v1527_v37  ;;  %v1529_v48 = vsel %vm3748_vm14, %v1527_v37, %v1525_v36  ;;  %v1539_v58 = vpop.permute.xlu1 %1538  ;;  %vm3752_vm7 = vcmp.lt.s32.totalorder %v2272_v34, 15  ;;  %vm3753_vm14 = vcmp.lt.s32.totalorder %v2275_v35, 15 }
 0x476   :  { %v1530_v25 = vsel %vm89_vm12, %v1529_v48, 0.0  ;;  %v1531_v60 = vsel %vm90_vm13, %v1528_v45, 0.0  ;;  %v1542_v14 = vsel %vm3749_vm9, %v1539_v58, %v1541_v51  ;;  %v1543_v24 = vsel %vm3750_vm1, %v1541_v51, %v1539_v58 }
 0x477   :  { %v1534_v55 = vmul.f32 %v1533_v30, %v1530_v25  ;;  %v1535_v17 = vmul.f32 %v1533_v30, %v1531_v60  ;;  %v1544_v31 = vsel %vm91_vm15, %v1543_v24, 0.0  ;;  %v1545_v36 = vsel %vm3751_vm0, %v1542_v14, 0.0 }
 0x478   :  { %v1548_v32 = vmul.f32 %v1547_v7, %v1544_v31  ;;  %v1549_v26 = vmul.f32 %v1547_v7, %v1545_v36  ;;  %vm3754_vm9 = vcmp.lt.s32.totalorder %v2275_v35, 14  ;;  %vm3755_vm1 = vcmp.lt.s32.totalorder %v2069_v44, 125 }
 0x479   :  { %v1536_v47 = vadd.f32 %v1534_v55, %v1522_v15  ;;  %v1537_v41 = vadd.f32 %v1535_v17, %v1523_v40  ;;  %vm3756_vm0 = vmmov %vm3755_vm1  ;;  %v1638_v55 = vstv %s3542_s28  ;;  %v1652_v31 = vstv %s3544_s29 }
 0x47b   :  { %v1550_v52 = vadd.f32 %v1548_v32, %v1536_v47  ;;  %v1551_v12 = vadd.f32 %v1549_v26, %v1537_v41 }
 0x47c   :  { %v1559_v53 = vpop.permute.xlu0 %1558  ;;  %v1646_v58 = vpop.permute.xlu2 %1645 }
 0x47d   :  { %v1556_v62 = vadd.f32 %v1554_v1, %v1550_v52  ;;  %v1557_v19 = vadd.f32 %v1555_v38, %v1551_v12  ;;  %v1561_v46 = vpop.permute.xlu1 %1560 }
 0x47e   :  { %v1562_v51 = vsel %vm188_vm6, %v1559_v53, %v1561_v46  ;;  %v1563_v28 = vsel %vm188_vm6, %v1561_v46, %v1559_v53 }
 0x47f   :  { %v1564_v9 = vsel %vm3752_vm7, %v1562_v51, 0.0  ;;  %v1565_v2 = vsel %vm3753_vm14, %v1563_v28, 0.0  ;;  %vm3761_vm14 = vcmp.ge.s32.totalorder %v2275_v35, 1  ;;  %v1658_v51 = vstv %s3555_s30 }
 0x480   :  { %v1568_v0 = vmul.f32 %v1567_v54, %v1564_v9  ;;  %v1569_v61 = vmul.f32 %v1567_v54, %v1565_v2  ;;  %v1659_v54 = vmul.f32 %v1658_v51, %v3357_v20  ;;  %v1660_v9 = vmul.f32 %v1658_v51, %v3361_v29 }
 0x482   :  { %v1570_v6 = vadd.f32 %v1568_v0, %v1556_v62  ;;  %v1571_v4 = vadd.f32 %v1569_v61, %v1557_v19 }
 0x484   :  { %v1575_v22 = vpop.permute.xlu0 %1574 }
 0x485   :  { %v1576_v63 = vsel %vm207_vm5, %v1573_v43, %v1575_v22  ;;  %v1577_v23 = vsel %vm207_vm5, %v1575_v22, %v1573_v43  ;;  %v1587_v57 = vpop.permute.xlu1 %1586  ;;  %v1624_v43 = vstv %s3523_s8 }
 0x486   :  { %v1578_v10 = vsel %vm95_vm2, %v1576_v63, 0.0  ;;  %v1579_v27 = vsel %vm3754_vm9, %v1577_v23, 0.0  ;;  %v1590_v59 = vsel %vm3755_vm1, %v1587_v57, %v1589_v56  ;;  %v1591_v8 = vsel %vm3756_vm0, %v1589_v56, %v1587_v57  ;;  %v1678_v63 = vpop.permute.xlu2 %1677 }
 0x487   :  { %v1582_v5 = vmul.f32 %v1581_v21, %v1578_v10  ;;  %v1583_v33 = vmul.f32 %v1581_v21, %v1579_v27  ;;  %v1592_v16 = vsel %vm97_vm3, %v1590_v59, 0.0  ;;  %v1593_v18 = vsel %vm98_vm4, %v1591_v8, 0.0 }
 0x488   :  { %v1596_v11 = vmul.f32 %v1595_v13, %v1592_v16  ;;  %v1597_v30 = vmul.f32 %v1595_v13, %v1593_v18  ;;  %v1672_v27 = vstv %s1873_s9  ;;  %v1686_v13 = vstv %s1874_s10 }
 0x489   :  { %v1584_v15 = vadd.f32 %v1582_v5, %v1570_v6  ;;  %v1585_v40 = vadd.f32 %v1583_v33, %v1571_v4  ;;  %v1700_v33 = vstv %s1875_s11 }
 0x48b   :  { %v1598_v14 = vadd.f32 %v1596_v11, %v1584_v15  ;;  %v1599_v24 = vadd.f32 %v1597_v30, %v1585_v40 }
 0x48c   :  { %v1616_v39 = vpop.permute.xlu0 %1615 }
 0x48d   :  { %v1618_v49 = vpop.permute.xlu1 %1617 }
 0x48e   :  { %v1619_v37 = vsel %vm125_vm8, %v1616_v39, %v1618_v49  ;;  %v1620_v7 = vsel %vm125_vm8, %v1618_v49, %v1616_v39  ;;  %vm3757_vm8 = vcmp.lt.s32.totalorder %v2069_v44, 2  ;;  %v1694_v16 = vpop.permute.xlu2 %1693 }
 0x48f   :  { %v1621_v45 = vsel %vm87_vm10, %v1620_v7, 0.0  ;;  %v1622_v48 = vsel %vm88_vm11, %v1619_v37, 0.0  ;;  %vm3758_vm10 = vmmov %vm3757_vm8  ;;  %vm3759_vm11 = vcmp.lt.s32.totalorder %v2069_v44, 1 }
 0x490   :  { %v1625_v25 = vmul.f32 %v1624_v43, %v1621_v45  ;;  %v1626_v60 = vmul.f32 %v1624_v43, %v1622_v48  ;;  %vm3760_vm7 = vmmov %vm3759_vm11 }
 0x492   :  { %v1627_v36 = vadd.f32 %v1625_v25, %v1598_v14  ;;  %v1628_v32 = vadd.f32 %v1626_v60, %v1599_v24 }
 0x494   :  { %v1632_v17 = vpop.permute.xlu0 %1631 }
 0x495   :  { %v1633_v26 = vsel %vm3757_vm8, %v1630_v3, %v1632_v17  ;;  %v1634_v50 = vsel %vm3758_vm10, %v1632_v17, %v1630_v3  ;;  %v1644_v47 = vpop.permute.xlu1 %1643  ;;  %vm1746_vm10 = vcmask 1040384  }
 0x496   :  { %v1635_v41 = vsel %vm89_vm12, %v1634_v50, 0.0  ;;  %v1636_v52 = vsel %vm90_vm13, %v1633_v26, 0.0  ;;  %v1647_v12 = vsel %vm3759_vm11, %v1644_v47, %v1646_v58  ;;  %v1648_v1 = vsel %vm3760_vm7, %v1646_v58, %v1644_v47 }
 0x497   :  { %v1639_v38 = vmul.f32 %v1638_v55, %v1635_v41  ;;  %v1640_v53 = vmul.f32 %v1638_v55, %v1636_v52  ;;  %v1649_v56 = vsel %vm91_vm15, %v1648_v1, 0.0  ;;  %v1650_v62 = vsel %vm3761_vm14, %v1647_v12, 0.0  ;;  %vm3765_vm15 = vmmov %vm3756_vm0 }
 0x498   :  { %v1653_v19 = vmul.f32 %v1652_v31, %v1649_v56  ;;  %v1654_v46 = vmul.f32 %v1652_v31, %v1650_v62  ;;  %vm3762_vm12 = vcmp.lt.s32.totalorder %v2272_v34, 15  ;;  %vm3763_vm13 = vcmp.lt.s32.totalorder %v2275_v35, 15 }
 0x499   :  { %v1641_v28 = vadd.f32 %v1639_v38, %v1627_v36  ;;  %v1642_v22 = vadd.f32 %v1640_v53, %v1628_v32  ;;  %vm1748_vm11 = vcmask 1041409   ;;  %vm1755_vm14 = vcmp.lt.s32.totalorder %v70_v42, 256 }
 0x49b   :  { %v1655_v23 = vadd.f32 %v1653_v19, %v1641_v28  ;;  %v1656_v57 = vadd.f32 %v1654_v46, %v1642_v22 }
 0x49c   :  { %v1664_v2 = vpop.permute.xlu0 %1663 }
 0x49d   :  { %v1661_v3 = vadd.f32 %v1659_v54, %v1655_v23  ;;  %v1662_v21 = vadd.f32 %v1660_v9, %v1656_v57  ;;  %v1666_v10 = vpop.permute.xlu1 %1665 }
 0x49e   :  { %v1667_v59 = vsel %vm188_vm6, %v1664_v2, %v1666_v10  ;;  %v1668_v8 = vsel %vm188_vm6, %v1666_v10, %v1664_v2  ;;  %vm3764_vm6 = vmmov %vm3754_vm9 }
 0x49f   :  { %v1669_v0 = vsel %vm3762_vm12, %v1667_v59, 0.0  ;;  %v1670_v20 = vsel %vm3763_vm13, %v1668_v8, 0.0  ;;  %vm3766_vm9 = vmmov %vm3756_vm0 }
 0x4a0   :  { %v1673_v29 = vmul.f32 %v1672_v27, %v1669_v0  ;;  %v1674_v61 = vmul.f32 %v1672_v27, %v1670_v20 }
 0x4a2   :  { %v1675_v18 = vadd.f32 %v1673_v29, %v1661_v3  ;;  %v1676_v39 = vadd.f32 %v1674_v61, %v1662_v21 }
 0x4a4   :  { %v1680_v5 = vpop.permute.xlu0 %1679 }
 0x4a5   :  { %v1681_v6 = vsel %vm207_vm5, %v1678_v63, %v1680_v5  ;;  %v1682_v4 = vsel %vm207_vm5, %v1680_v5, %v1678_v63  ;;  %v1692_v43 = vpop.permute.xlu1 %1691 }
 0x4a6   :  { %v1683_v49 = vsel %vm95_vm2, %v1681_v6, 0.0  ;;  %v1684_v11 = vsel %vm3764_vm6, %v1682_v4, 0.0  ;;  %v1695_v30 = vsel %vm3765_vm15, %v1692_v43, %v1694_v16  ;;  %v1696_v37 = vsel %vm3766_vm9, %v1694_v16, %v1692_v43 }
 0x4a7   :  { %v1687_v7 = vmul.f32 %v1686_v13, %v1683_v49  ;;  %v1688_v15 = vmul.f32 %v1686_v13, %v1684_v11  ;;  %v1697_v40 = vsel %vm97_vm3, %v1695_v30, 0.0  ;;  %v1698_v45 = vsel %vm98_vm4, %v1696_v37, 0.0 }
 0x4a8   :  { %v1701_v48 = vmul.f32 %v1700_v33, %v1697_v40  ;;  %v1702_v58 = vmul.f32 %v1700_v33, %v1698_v45 }
 0x4a9   :  { %v1689_v25 = vadd.f32 %v1687_v7, %v1675_v18  ;;  %v1690_v60 = vadd.f32 %v1688_v15, %v1676_v39 }
 0x4ab   :  { %v1703_v14 = vadd.f32 %v1701_v48, %v1689_v25  ;;  %v1704_v24 = vadd.f32 %v1702_v58, %v1690_v60 }
 0x4ad   :  { %v1876_v55 = vmul.f32 -1.442695, %v1703_v14  ;;  %v1877_v17 = vmul.f32 -1.442695, %v1704_v24 }
 0x4af   :  { %1895 = vpow2.f32 %v1876_v55 }
 0x4b0   :  { %1897 = vpow2.f32 %v1877_v17 }
 0x4b5   :  { %v1896_v44 = vpop.eup %1895 }
 0x4b6   :  { %v1898_v31 = vpop.eup %1897  ;;  %v1711_v36 = vadd.f32 1.0, %v1896_v44 }
 0x4b7   :  { %v1712_v32 = vadd.f32 1.0, %v1898_v31 }
 0x4b8   :  { %1899 = vrcp.f32 %v1711_v36  ;;  %vm1718_vm4 = vweird.f32 %v1711_v36  ;;  %v1724_v56 = vand.u32 2147483648, %v1711_v36  ;;  %v1722_v19 = vand.u32 2147483647, %v1711_v36 }
 0x4b9   :  { %1901 = vrcp.f32 %v1712_v32  ;;  %v1739_v12 = vand.u32 2147483648, %v1712_v32  ;;  %v1737_v38 = vand.u32 2147483647, %v1712_v32  ;;  %vm1733_vm1 = vweird.f32 %v1712_v32 }
 0x4ba   :  { %v1725_v63 = vor.u32 1.1754944e-38, %v1724_v56  ;;  %vm1723_vm7 = vcmp.eq.f32.partialorder %v1722_v19, 8.507059e+37 }
 0x4bb   :  { %v1740_v51 = vor.u32 1.1754944e-38, %v1739_v12  ;;  %vm1738_vm8 = vcmp.eq.f32.partialorder %v1737_v38, 8.507059e+37 }
 0x4be   :  { %v1900_v34 = vpop.eup %1899 }
 0x4bf   :  { %v1902_v26 = vpop.eup %1901  ;;  %v1714_v35 = vmul.f32 %v1900_v34, %v1711_v36  ;;  %vm1719_vm2 = vweird.f32 %v1900_v34 }
 0x4c0   :  { %v1729_v50 = vmul.f32 %v1902_v26, %v1712_v32  ;;  %vm1734_vm3 = vweird.f32 %v1902_v26  ;;  %vm3602_vm5 = vmor %vm1718_vm4, %vm1719_vm2 }
 0x4c1   :  { %v1715_v47 = vsub.f32 1.0, %v1714_v35  ;;  %vm1735_vm0 = vmor %vm1733_vm1, %vm1734_vm3 }
 0x4c2   :  { %v1730_v41 = vsub.f32 1.0, %v1729_v50 }
 0x4c3   :  { %v1716_v52 = vmul.f32 %v1900_v34, %v1715_v47 }
 0x4c4   :  { %v1731_v1 = vmul.f32 %v1902_v26, %v1730_v41 }
 0x4c5   :  { %v1717_v53 = vadd.f32 %v1900_v34, %v1716_v52 }
 0x4c6   :  { %v1732_v46 = vadd.f32 %v1902_v26, %v1731_v1 }
 0x4c7   :  { %v1721_v28 = vsel %vm3602_vm5, %v1900_v34, %v1717_v53 }
 0x4c8   :  { %v1736_v22 = vsel %vm1735_vm0, %v1902_v26, %v1732_v46  ;;  %v1726_v54 = vsel %vm1723_vm7, %v1725_v63, %v1721_v28 }
 0x4c9   :  { %v1741_v23 = vsel %vm1738_vm8, %v1740_v51, %v1736_v22 }
 0x4ca   :  { %v1745_v57 = vrot.slane %v1741_v23, 7 }
 0x4cc   :  { %v1747_v9 = vsel %vm1746_vm10, %v1726_v54, %v1745_v57  ;;  %v1749_v2 = vsel %vm1748_vm11, %v1726_v54, %v1745_v57 }
 0x4cd   :  { %v1750_v3 = vrot.slane %v1749_v2, 1  ;;  %1757 = vst.msk [vmem:[#allocation7] sm:$0x3] %vm1755_vm14, %v1747_v9 }
 0x4cf   :  { %1758 = vst.msk [vmem:[#allocation7 + $0x2] sm:$0x3] %vm1755_vm14, %v1750_v3 }
 0x4d0   :  { %1771 = dma.vmem_to_hbm [thread:$0]  %s1764_s13, 64, %s1766_s21, [#allocation4], %s1982_s1, %s1982_s1, %s1985_s23  }
 0x4d1   :  { %1975 = dma.done.wait [#allocation4], 64  }
 0x4d2   :  { %1976 = vsyncadd [#allocation4], 4294967232 }
 0x4d3   :  { %1776 = vsyncpa [#allocation3], 1 }
 0x4d4   :  { %1777 = vsyncpa [#allocation4], 1 }
 0x4d5   :  { %1778 = vsyncpa [#allocation5], 1 }

</bundles_post_ra>
